<compile_context>
chip_gen: v6e
topology: v6e:2x2x1
jax: 0.10.0
libtpu: 0.0.40
codegen_flags: <defaults>
</compile_context>

<pallas_src>
import functools

import jax
import jax.numpy as jnp
from jax.experimental import pallas as pl
from jax.experimental.pallas import tpu as pltpu

K = 320
K2 = 1024
IN_FEATURES = 20
OUT_FEATURES = 4
BN_EPS = 1e-5

_LAYERS = ("net1", "net2", "net10", "net11", "net12", "net3")
# The bulk of the parameters; tiny first/last layers stay bf16 even in int8 mode.
_QUANTIZED_LAYERS = frozenset(("net2", "net10", "net11", "net12"))


# --------------------------------------------------------------------------- helpers
def _round_up(n, m):
    return ((n + m - 1) // m) * m


def _tpu_generation():
    """Best-effort TPU generation from device_kind (0 if unknown)."""
    try:
        kind = jax.devices()[0].device_kind.lower().replace(" ", "")
    except Exception:
        return 0
    for gen in (7, 6, 5, 4):
        if f"v{gen}" in kind or f"tpu{gen}" in kind:
            return gen
    return 0


def default_config():
    """Pick weight format / activation dtype per TPU generation."""
    gen = _tpu_generation()
    # int8 weights on v5e/v6e (int MXU path, halves weight DMA); bf16 elsewhere.
    weight_format = "int8" if gen in (5, 6) else "bf16"
    # bf16 activations on v6e/v7x (bf16 VALU); f32 on v5e/older/unknown.
    act_dtype_name = "bfloat16" if gen >= 6 else "float32"
    return weight_format, act_dtype_name


# --------------------------------------------------------------------------- kernel
def _make_kernel(act_dtype):
    """Fully-fused MLP forward on one batch tile.

    Each layer i is parameterized by (w, s, b):
      w : [f_in, f_out] bf16 or int8 (BN folded in, optionally int8-quantized)
      s : [1, f_out]    f32 per-output-channel dequant scale (ones for bf16 layers)
      b : [1, f_out]    f32 bias (BN shift folded in)
    Matmuls run on the MXU in bf16 with f32 accumulation; intermediates never leave
    VMEM/vregs. `act_dtype` controls the inter-layer activation precision.
    """

    def kernel(x_ref, *refs):
        o_ref = refs[-1]
        p = refs[:-1]  # 6 x (w_ref, s_ref, b_ref)

        def dense(h, idx):
            w_ref, s_ref, b_ref = p[3 * idx], p[3 * idx + 1], p[3 * idx + 2]
            y = jnp.dot(
                h.astype(jnp.bfloat16),
                w_ref[...].astype(jnp.bfloat16),   # int8 -> bf16 dequant (unscaled)
                preferred_element_type=jnp.float32,
            )
            return y * s_ref[...] + b_ref[...]      # per-channel scale, then bias

        def relu(v):
            return jnp.maximum(v, 0.0).astype(act_dtype)

        x = x_ref[...].astype(jnp.float32)
        a = relu(dense(x, 0))                                   # net1
        b = (relu(dense(a, 1)) + a).astype(act_dtype)           # net2 + residual
        h1 = relu(dense(b, 2))                                  # net10
        h2 = relu(dense(h1, 3))                                 # net11
        h3 = relu(dense(h2, 4))                                 # net12
        c = jax.nn.sigmoid(dense(h3, 5))                        # net3
        o_ref[...] = c.astype(o_ref.dtype)

    return kernel


# --------------------------------------------------------------------------- wrapper
def _select_batch_tile(batch, max_tile):
    """Batch tile: multiple of 8 sublanes; >=2 grid steps once batch >= 16 so the
    'parallel' grid axis can use both v7x TensorCores; capped so per-tile VMEM stays
    bounded (tile=512 -> <2 MiB for the widest intermediate)."""
    if batch <= 8:
        return 8
    return min(max_tile, max(8, _round_up(-(-batch // 2), 8)))


def fused_forward(fused_params, x, *, act_dtype_name="float32", batch_tile=512):
    act_dtype = jnp.bfloat16 if act_dtype_name == "bfloat16" else jnp.float32
    batch = x.shape[0]

    tb = _select_batch_tile(batch, batch_tile)
    steps = -(-batch // tb)
    padded = steps * tb
    if padded != batch:
        # Pad instead of falling back to one huge tile (keeps per-tile VMEM bounded).
        x = jnp.pad(x, ((0, padded - batch), (0, 0)))

    def _const_spec(p):
        # Constant block index -> fetched from HBM only once across the whole grid.
        return pl.BlockSpec(p.shape, lambda i: (0, 0))

    in_specs = [pl.BlockSpec((tb, IN_FEATURES), lambda i: (i, 0))]
    in_specs += [_const_spec(p) for p in fused_params]

    out = pl.pallas_call(
        _make_kernel(act_dtype),
        out_shape=jax.ShapeDtypeStruct((padded, OUT_FEATURES), jnp.float32),
        grid=(steps,),
        in_specs=in_specs,
        out_specs=pl.BlockSpec((tb, OUT_FEATURES), lambda i: (i, 0)),
        compiler_params=pltpu.CompilerParams(
            dimension_semantics=("parallel",),
            vmem_limit_bytes=32 << 20,  # safe headroom even on v7x's 64 MiB VMEM
        ),
    )(x, *fused_params)

    return out[:batch] if padded != batch else out


@functools.partial(jax.jit, static_argnames=("act_dtype_name", "batch_tile"))
def model_forward(fused_params, x, *, act_dtype_name="float32", batch_tile=512):
    return fused_forward(
        fused_params, x, act_dtype_name=act_dtype_name, batch_tile=batch_tile
    )


# --------------------------------------------------------------------------- params
def _init_block(key, f_in, f_out):
    """Deterministic init matching the module's layer shapes.

    Linear: PyTorch default U(-1/sqrt(f_in), 1/sqrt(f_in)); BatchNorm1d gamma/beta
    perturbed from (1, 0), running stats perturbed from (0, 1) (eval-mode semantics).
    """
    k_w, k_b, k_g, k_be, k_m, k_v = jax.random.split(key, 6)
    bound = 1.0 / jnp.sqrt(jnp.float32(f_in))
    w = jax.random.uniform(k_w, (f_out, f_in), jnp.float32, -bound, bound)
    b = jax.random.uniform(k_b, (f_out,), jnp.float32, -bound, bound)
    gamma = 1.0 + 0.1 * jax.random.normal(k_g, (f_in,), jnp.float32)
    beta = 0.1 * jax.random.normal(k_be, (f_in,), jnp.float32)
    running_mean = 0.1 * jax.random.normal(k_m, (f_in,), jnp.float32)
    running_var = 1.0 + 0.1 * jax.random.uniform(k_v, (f_in,), jnp.float32)
    return {
        "w_t": jnp.asarray(w.T),  # [f_in, f_out] so the kernel computes x @ w_t
        "b": b,
        "bn": (gamma, beta, running_mean, running_var),
    }


def init_model_params(key):
    keys = jax.random.split(key, 6)
    return {
        "net1": _init_block(keys[0], IN_FEATURES, K),
        "net2": _init_block(keys[1], K, K),
        "net10": _init_block(keys[2], K, K2),
        "net11": _init_block(keys[3], K2, K2),
        "net12": _init_block(keys[4], K2, K),
        "net3": _init_block(keys[5], K, OUT_FEATURES),
        # net13 is declared in the PyTorch __init__ but never used in forward().
    }


def _fold_block(block):
    """Fold eval-mode BatchNorm into the following Linear (f32):
    W' = diag(scale) @ W,  b' = b + shift @ W."""
    gamma, beta, running_mean, running_var = block["bn"]
    scale = gamma * jax.lax.rsqrt(running_var + BN_EPS)   # [f_in]
    shift = beta - running_mean * scale                    # [f_in]
    w_t = block["w_t"]                                     # [f_in, f_out] f32
    w_folded = scale[:, None] * w_t
    b_folded = (block["b"] + shift @ w_t).reshape(1, -1).astype(jnp.float32)
    return w_folded, b_folded


def prepare_fused_params(params, *, weight_format="bf16"):
    """Precompute BN-folded weights ONCE (outside the jitted forward).

    weight_format: "bf16", or "int8" (per-output-channel symmetric quantization of
    the four big layers; tiny first/last layers stay bf16). Returns a flat tuple of
    6 x (w, scale, bias).
    """
    out = []
    for name in _LAYERS:
        w, b = _fold_block(params[name])                       # f32 [f_in,f_out], [1,f_out]
        f_out = w.shape[1]
        if weight_format == "int8" and name in _QUANTIZED_LAYERS:
            amax = jnp.max(jnp.abs(w), axis=0, keepdims=True)  # [1, f_out]
            s = jnp.maximum(amax / 127.0, jnp.float32(1e-12))
            w_q = jnp.clip(jnp.round(w / s), -127.0, 127.0).astype(jnp.int8)
            out.extend((w_q, s.astype(jnp.float32), b))
        else:
            out.extend(
                (w.astype(jnp.bfloat16), jnp.ones((1, f_out), jnp.float32), b)
            )
    return tuple(out)


# --------------------------------------------------------------------------- main
if __name__ == "__main__":
    key = jax.random.PRNGKey(0)
    k_params, k_x = jax.random.split(key)

    params = init_model_params(k_params)
    weight_format, act_dtype_name = default_config()
    fused_params = prepare_fused_params(params, weight_format=weight_format)

    batch = 8
    x = jax.random.normal(k_x, (batch, IN_FEATURES), jnp.float32)

    out = model_forward(fused_params, x, act_dtype_name=act_dtype_name)
    out = jax.block_until_ready(out)

    assert out.shape == (batch, OUT_FEATURES), out.shape
    assert out.dtype == jnp.float32
    assert bool(jnp.all(jnp.isfinite(out)))
    assert bool(jnp.all((out >= 0.0) & (out <= 1.0)))  # sigmoid output range

    print("KERNEL_OK")
</pallas_src>

<mosaic_0001>
module attributes {stable_mosaic.version = 11 : i64} {
  func.func @kernel(%arg0: i32, %arg1: memref<8x20xf32, #tpu.memory_space<vmem>>, %arg2: memref<20x320xbf16, #tpu.memory_space<vmem>>, %arg3: memref<1x320xf32, #tpu.memory_space<vmem>>, %arg4: memref<1x320xf32, #tpu.memory_space<vmem>>, %arg5: memref<320x320xbf16, #tpu.memory_space<vmem>>, %arg6: memref<1x320xf32, #tpu.memory_space<vmem>>, %arg7: memref<1x320xf32, #tpu.memory_space<vmem>>, %arg8: memref<320x1024xbf16, #tpu.memory_space<vmem>>, %arg9: memref<1x1024xf32, #tpu.memory_space<vmem>>, %arg10: memref<1x1024xf32, #tpu.memory_space<vmem>>, %arg11: memref<1024x1024xbf16, #tpu.memory_space<vmem>>, %arg12: memref<1x1024xf32, #tpu.memory_space<vmem>>, %arg13: memref<1x1024xf32, #tpu.memory_space<vmem>>, %arg14: memref<1024x320xbf16, #tpu.memory_space<vmem>>, %arg15: memref<1x320xf32, #tpu.memory_space<vmem>>, %arg16: memref<1x320xf32, #tpu.memory_space<vmem>>, %arg17: memref<320x4xbf16, #tpu.memory_space<vmem>>, %arg18: memref<1x4xf32, #tpu.memory_space<vmem>>, %arg19: memref<1x4xf32, #tpu.memory_space<vmem>>, %arg20: memref<8x4xf32, #tpu.memory_space<vmem>>) attributes {dimension_semantics = [#tpu.dimension_semantics<parallel>], iteration_bounds = array<i64: 1>, scalar_prefetch = 0 : i64, scratch_operands = 0 : i64, tpu.core_type = #tpu.core_type<tc>, window_params = [{transform_indices = @transform_0, window_bounds = array<i64: 8, 20>}, {pipeline_mode = #tpu.pipeline_mode<synchronous>, transform_indices = @transform_1, window_bounds = array<i64: 20, 320>}, {pipeline_mode = #tpu.pipeline_mode<synchronous>, transform_indices = @transform_2, window_bounds = array<i64: 1, 320>}, {pipeline_mode = #tpu.pipeline_mode<synchronous>, transform_indices = @transform_3, window_bounds = array<i64: 1, 320>}, {pipeline_mode = #tpu.pipeline_mode<synchronous>, transform_indices = @transform_4, window_bounds = array<i64: 320, 320>}, {pipeline_mode = #tpu.pipeline_mode<synchronous>, transform_indices = @transform_5, window_bounds = array<i64: 1, 320>}, {pipeline_mode = #tpu.pipeline_mode<synchronous>, transform_indices = @transform_6, window_bounds = array<i64: 1, 320>}, {pipeline_mode = #tpu.pipeline_mode<synchronous>, transform_indices = @transform_7, window_bounds = array<i64: 320, 1024>}, {pipeline_mode = #tpu.pipeline_mode<synchronous>, transform_indices = @transform_8, window_bounds = array<i64: 1, 1024>}, {pipeline_mode = #tpu.pipeline_mode<synchronous>, transform_indices = @transform_9, window_bounds = array<i64: 1, 1024>}, {pipeline_mode = #tpu.pipeline_mode<synchronous>, transform_indices = @transform_10, window_bounds = array<i64: 1024, 1024>}, {pipeline_mode = #tpu.pipeline_mode<synchronous>, transform_indices = @transform_11, window_bounds = array<i64: 1, 1024>}, {pipeline_mode = #tpu.pipeline_mode<synchronous>, transform_indices = @transform_12, window_bounds = array<i64: 1, 1024>}, {pipeline_mode = #tpu.pipeline_mode<synchronous>, transform_indices = @transform_13, window_bounds = array<i64: 1024, 320>}, {pipeline_mode = #tpu.pipeline_mode<synchronous>, transform_indices = @transform_14, window_bounds = array<i64: 1, 320>}, {pipeline_mode = #tpu.pipeline_mode<synchronous>, transform_indices = @transform_15, window_bounds = array<i64: 1, 320>}, {pipeline_mode = #tpu.pipeline_mode<synchronous>, transform_indices = @transform_16, window_bounds = array<i64: 320, 4>}, {pipeline_mode = #tpu.pipeline_mode<synchronous>, transform_indices = @transform_17, window_bounds = array<i64: 1, 4>}, {pipeline_mode = #tpu.pipeline_mode<synchronous>, transform_indices = @transform_18, window_bounds = array<i64: 1, 4>}, {transform_indices = @transform_19, window_bounds = array<i64: 8, 4>}]} {
    %c0 = arith.constant 0 : index
    %c0_0 = arith.constant 0 : index
    %0 = vector.load %arg1[%c0, %c0_0] : memref<8x20xf32, #tpu.memory_space<vmem>>, vector<8x20xf32>
    %1 = arith.truncf %0 : vector<8x20xf32> to vector<8x20xbf16>
    %c0_1 = arith.constant 0 : index
    %c0_2 = arith.constant 0 : index
    %2 = vector.load %arg2[%c0_1, %c0_2] : memref<20x320xbf16, #tpu.memory_space<vmem>>, vector<20x320xbf16>
    %cst = arith.constant dense<0.000000e+00> : vector<8x320xf32>
    %3 = tpu.matmul %1, %2, %cst {dimension_numbers = #tpu.dot_dimension_numbers<[1], [0], [0], [1], [0, 0, 1, 1], [], []>} : vector<8x20xbf16>, vector<20x320xbf16>, vector<8x320xf32> -> vector<8x320xf32>
    %c0_3 = arith.constant 0 : index
    %c0_4 = arith.constant 0 : index
    %4 = vector.load %arg3[%c0_3, %c0_4] : memref<1x320xf32, #tpu.memory_space<vmem>>, vector<1x320xf32>
    %5 = vector.broadcast %4 : vector<1x320xf32> to vector<8x320xf32>
    %6 = arith.mulf %3, %5 : vector<8x320xf32>
    %c0_5 = arith.constant 0 : index
    %c0_6 = arith.constant 0 : index
    %7 = vector.load %arg4[%c0_5, %c0_6] : memref<1x320xf32, #tpu.memory_space<vmem>>, vector<1x320xf32>
    %8 = vector.broadcast %7 : vector<1x320xf32> to vector<8x320xf32>
    %9 = arith.addf %6, %8 : vector<8x320xf32>
    %cst_7 = arith.constant 0.000000e+00 : f32
    %10 = vector.broadcast %cst_7 : f32 to vector<8x320xf32>
    %11 = arith.maximumf %9, %10 : vector<8x320xf32>
    %12 = arith.truncf %11 : vector<8x320xf32> to vector<8x320xbf16>
    %c0_8 = arith.constant 0 : index
    %c0_9 = arith.constant 0 : index
    %13 = vector.load %arg5[%c0_8, %c0_9] : memref<320x320xbf16, #tpu.memory_space<vmem>>, vector<320x320xbf16>
    %cst_10 = arith.constant dense<0.000000e+00> : vector<8x320xf32>
    %14 = tpu.matmul %12, %13, %cst_10 {dimension_numbers = #tpu.dot_dimension_numbers<[1], [0], [0], [1], [0, 0, 1, 1], [], []>} : vector<8x320xbf16>, vector<320x320xbf16>, vector<8x320xf32> -> vector<8x320xf32>
    %c0_11 = arith.constant 0 : index
    %c0_12 = arith.constant 0 : index
    %15 = vector.load %arg6[%c0_11, %c0_12] : memref<1x320xf32, #tpu.memory_space<vmem>>, vector<1x320xf32>
    %16 = vector.broadcast %15 : vector<1x320xf32> to vector<8x320xf32>
    %17 = arith.mulf %14, %16 : vector<8x320xf32>
    %c0_13 = arith.constant 0 : index
    %c0_14 = arith.constant 0 : index
    %18 = vector.load %arg7[%c0_13, %c0_14] : memref<1x320xf32, #tpu.memory_space<vmem>>, vector<1x320xf32>
    %19 = vector.broadcast %18 : vector<1x320xf32> to vector<8x320xf32>
    %20 = arith.addf %17, %19 : vector<8x320xf32>
    %cst_15 = arith.constant 0.000000e+00 : f32
    %21 = vector.broadcast %cst_15 : f32 to vector<8x320xf32>
    %22 = arith.maximumf %20, %21 : vector<8x320xf32>
    %23 = arith.addf %22, %11 : vector<8x320xf32>
    %24 = arith.truncf %23 : vector<8x320xf32> to vector<8x320xbf16>
    %c0_16 = arith.constant 0 : index
    %c0_17 = arith.constant 0 : index
    %25 = vector.load %arg8[%c0_16, %c0_17] : memref<320x1024xbf16, #tpu.memory_space<vmem>>, vector<320x1024xbf16>
    %cst_18 = arith.constant dense<0.000000e+00> : vector<8x1024xf32>
    %26 = tpu.matmul %24, %25, %cst_18 {dimension_numbers = #tpu.dot_dimension_numbers<[1], [0], [0], [1], [0, 0, 1, 1], [], []>} : vector<8x320xbf16>, vector<320x1024xbf16>, vector<8x1024xf32> -> vector<8x1024xf32>
    %c0_19 = arith.constant 0 : index
    %c0_20 = arith.constant 0 : index
    %27 = vector.load %arg9[%c0_19, %c0_20] : memref<1x1024xf32, #tpu.memory_space<vmem>>, vector<1x1024xf32>
    %28 = vector.broadcast %27 : vector<1x1024xf32> to vector<8x1024xf32>
    %29 = arith.mulf %26, %28 : vector<8x1024xf32>
    %c0_21 = arith.constant 0 : index
    %c0_22 = arith.constant 0 : index
    %30 = vector.load %arg10[%c0_21, %c0_22] : memref<1x1024xf32, #tpu.memory_space<vmem>>, vector<1x1024xf32>
    %31 = vector.broadcast %30 : vector<1x1024xf32> to vector<8x1024xf32>
    %32 = arith.addf %29, %31 : vector<8x1024xf32>
    %cst_23 = arith.constant 0.000000e+00 : f32
    %33 = vector.broadcast %cst_23 : f32 to vector<8x1024xf32>
    %34 = arith.maximumf %32, %33 : vector<8x1024xf32>
    %35 = arith.truncf %34 : vector<8x1024xf32> to vector<8x1024xbf16>
    %c0_24 = arith.constant 0 : index
    %c0_25 = arith.constant 0 : index
    %36 = vector.load %arg11[%c0_24, %c0_25] : memref<1024x1024xbf16, #tpu.memory_space<vmem>>, vector<1024x1024xbf16>
    %cst_26 = arith.constant dense<0.000000e+00> : vector<8x1024xf32>
    %37 = tpu.matmul %35, %36, %cst_26 {dimension_numbers = #tpu.dot_dimension_numbers<[1], [0], [0], [1], [0, 0, 1, 1], [], []>} : vector<8x1024xbf16>, vector<1024x1024xbf16>, vector<8x1024xf32> -> vector<8x1024xf32>
    %c0_27 = arith.constant 0 : index
    %c0_28 = arith.constant 0 : index
    %38 = vector.load %arg12[%c0_27, %c0_28] : memref<1x1024xf32, #tpu.memory_space<vmem>>, vector<1x1024xf32>
    %39 = vector.broadcast %38 : vector<1x1024xf32> to vector<8x1024xf32>
    %40 = arith.mulf %37, %39 : vector<8x1024xf32>
    %c0_29 = arith.constant 0 : index
    %c0_30 = arith.constant 0 : index
    %41 = vector.load %arg13[%c0_29, %c0_30] : memref<1x1024xf32, #tpu.memory_space<vmem>>, vector<1x1024xf32>
    %42 = vector.broadcast %41 : vector<1x1024xf32> to vector<8x1024xf32>
    %43 = arith.addf %40, %42 : vector<8x1024xf32>
    %cst_31 = arith.constant 0.000000e+00 : f32
    %44 = vector.broadcast %cst_31 : f32 to vector<8x1024xf32>
    %45 = arith.maximumf %43, %44 : vector<8x1024xf32>
    %46 = arith.truncf %45 : vector<8x1024xf32> to vector<8x1024xbf16>
    %c0_32 = arith.constant 0 : index
    %c0_33 = arith.constant 0 : index
    %47 = vector.load %arg14[%c0_32, %c0_33] : memref<1024x320xbf16, #tpu.memory_space<vmem>>, vector<1024x320xbf16>
    %cst_34 = arith.constant dense<0.000000e+00> : vector<8x320xf32>
    %48 = tpu.matmul %46, %47, %cst_34 {dimension_numbers = #tpu.dot_dimension_numbers<[1], [0], [0], [1], [0, 0, 1, 1], [], []>} : vector<8x1024xbf16>, vector<1024x320xbf16>, vector<8x320xf32> -> vector<8x320xf32>
    %c0_35 = arith.constant 0 : index
    %c0_36 = arith.constant 0 : index
    %49 = vector.load %arg15[%c0_35, %c0_36] : memref<1x320xf32, #tpu.memory_space<vmem>>, vector<1x320xf32>
    %50 = vector.broadcast %49 : vector<1x320xf32> to vector<8x320xf32>
    %51 = arith.mulf %48, %50 : vector<8x320xf32>
    %c0_37 = arith.constant 0 : index
    %c0_38 = arith.constant 0 : index
    %52 = vector.load %arg16[%c0_37, %c0_38] : memref<1x320xf32, #tpu.memory_space<vmem>>, vector<1x320xf32>
    %53 = vector.broadcast %52 : vector<1x320xf32> to vector<8x320xf32>
    %54 = arith.addf %51, %53 : vector<8x320xf32>
    %cst_39 = arith.constant 0.000000e+00 : f32
    %55 = vector.broadcast %cst_39 : f32 to vector<8x320xf32>
    %56 = arith.maximumf %54, %55 : vector<8x320xf32>
    %57 = arith.truncf %56 : vector<8x320xf32> to vector<8x320xbf16>
    %c0_40 = arith.constant 0 : index
    %c0_41 = arith.constant 0 : index
    %58 = vector.load %arg17[%c0_40, %c0_41] : memref<320x4xbf16, #tpu.memory_space<vmem>>, vector<320x4xbf16>
    %cst_42 = arith.constant dense<0.000000e+00> : vector<8x4xf32>
    %59 = tpu.matmul %57, %58, %cst_42 {dimension_numbers = #tpu.dot_dimension_numbers<[1], [0], [0], [1], [0, 0, 1, 1], [], []>} : vector<8x320xbf16>, vector<320x4xbf16>, vector<8x4xf32> -> vector<8x4xf32>
    %c0_43 = arith.constant 0 : index
    %c0_44 = arith.constant 0 : index
    %60 = vector.load %arg18[%c0_43, %c0_44] : memref<1x4xf32, #tpu.memory_space<vmem>>, vector<1x4xf32>
    %61 = vector.broadcast %60 : vector<1x4xf32> to vector<8x4xf32>
    %62 = arith.mulf %59, %61 : vector<8x4xf32>
    %c0_45 = arith.constant 0 : index
    %c0_46 = arith.constant 0 : index
    %63 = vector.load %arg19[%c0_45, %c0_46] : memref<1x4xf32, #tpu.memory_space<vmem>>, vector<1x4xf32>
    %64 = vector.broadcast %63 : vector<1x4xf32> to vector<8x4xf32>
    %65 = arith.addf %62, %64 : vector<8x4xf32>
    %66 = arith.negf %65 : vector<8x4xf32>
    %67 = math.exp %66 : vector<8x4xf32>
    %cst_47 = arith.constant 1.000000e+00 : f32
    %68 = vector.broadcast %cst_47 : f32 to vector<8x4xf32>
    %69 = arith.addf %68, %67 : vector<8x4xf32>
    %70 = arith.divf %68, %69 : vector<8x4xf32>
    %c0_48 = arith.constant 0 : index
    %c0_49 = arith.constant 0 : index
    %71 = vector.load %arg20[%c0_48, %c0_49] : memref<8x4xf32, #tpu.memory_space<vmem>>, vector<8x4xf32>
    tpu.vector_store %arg20[%c0_48, %c0_49], %70 {strides = array<i32>} : memref<8x4xf32, #tpu.memory_space<vmem>>, vector<8x4xf32>,
    return
  }
  func.func @transform_0(%arg0: i32) -> (i32, i32) {
    %c0_i32 = arith.constant 0 : i32
    %c0_i32_0 = arith.constant 0 : i32
    return %arg0, %c0_i32 : i32, i32
  }
  func.func @transform_1(%arg0: i32) -> (i32, i32) {
    %c0_i32 = arith.constant 0 : i32
    %c0_i32_0 = arith.constant 0 : i32
    %c0_i32_1 = arith.constant 0 : i32
    return %c0_i32, %c0_i32_0 : i32, i32
  }
  func.func @transform_2(%arg0: i32) -> (i32, i32) {
    %c0_i32 = arith.constant 0 : i32
    %c0_i32_0 = arith.constant 0 : i32
    %c0_i32_1 = arith.constant 0 : i32
    return %c0_i32, %c0_i32_0 : i32, i32
  }
  func.func @transform_3(%arg0: i32) -> (i32, i32) {
    %c0_i32 = arith.constant 0 : i32
    %c0_i32_0 = arith.constant 0 : i32
    %c0_i32_1 = arith.constant 0 : i32
    return %c0_i32, %c0_i32_0 : i32, i32
  }
  func.func @transform_4(%arg0: i32) -> (i32, i32) {
    %c0_i32 = arith.constant 0 : i32
    %c0_i32_0 = arith.constant 0 : i32
    %c0_i32_1 = arith.constant 0 : i32
    return %c0_i32, %c0_i32_0 : i32, i32
  }
  func.func @transform_5(%arg0: i32) -> (i32, i32) {
    %c0_i32 = arith.constant 0 : i32
    %c0_i32_0 = arith.constant 0 : i32
    %c0_i32_1 = arith.constant 0 : i32
    return %c0_i32, %c0_i32_0 : i32, i32
  }
  func.func @transform_6(%arg0: i32) -> (i32, i32) {
    %c0_i32 = arith.constant 0 : i32
    %c0_i32_0 = arith.constant 0 : i32
    %c0_i32_1 = arith.constant 0 : i32
    return %c0_i32, %c0_i32_0 : i32, i32
  }
  func.func @transform_7(%arg0: i32) -> (i32, i32) {
    %c0_i32 = arith.constant 0 : i32
    %c0_i32_0 = arith.constant 0 : i32
    %c0_i32_1 = arith.constant 0 : i32
    return %c0_i32, %c0_i32_0 : i32, i32
  }
  func.func @transform_8(%arg0: i32) -> (i32, i32) {
    %c0_i32 = arith.constant 0 : i32
    %c0_i32_0 = arith.constant 0 : i32
    %c0_i32_1 = arith.constant 0 : i32
    return %c0_i32, %c0_i32_0 : i32, i32
  }
  func.func @transform_9(%arg0: i32) -> (i32, i32) {
    %c0_i32 = arith.constant 0 : i32
    %c0_i32_0 = arith.constant 0 : i32
    %c0_i32_1 = arith.constant 0 : i32
    return %c0_i32, %c0_i32_0 : i32, i32
  }
  func.func @transform_10(%arg0: i32) -> (i32, i32) {
    %c0_i32 = arith.constant 0 : i32
    %c0_i32_0 = arith.constant 0 : i32
    %c0_i32_1 = arith.constant 0 : i32
    return %c0_i32, %c0_i32_0 : i32, i32
  }
  func.func @transform_11(%arg0: i32) -> (i32, i32) {
    %c0_i32 = arith.constant 0 : i32
    %c0_i32_0 = arith.constant 0 : i32
    %c0_i32_1 = arith.constant 0 : i32
    return %c0_i32, %c0_i32_0 : i32, i32
  }
  func.func @transform_12(%arg0: i32) -> (i32, i32) {
    %c0_i32 = arith.constant 0 : i32
    %c0_i32_0 = arith.constant 0 : i32
    %c0_i32_1 = arith.constant 0 : i32
    return %c0_i32, %c0_i32_0 : i32, i32
  }
  func.func @transform_13(%arg0: i32) -> (i32, i32) {
    %c0_i32 = arith.constant 0 : i32
    %c0_i32_0 = arith.constant 0 : i32
    %c0_i32_1 = arith.constant 0 : i32
    return %c0_i32, %c0_i32_0 : i32, i32
  }
  func.func @transform_14(%arg0: i32) -> (i32, i32) {
    %c0_i32 = arith.constant 0 : i32
    %c0_i32_0 = arith.constant 0 : i32
    %c0_i32_1 = arith.constant 0 : i32
    return %c0_i32, %c0_i32_0 : i32, i32
  }
  func.func @transform_15(%arg0: i32) -> (i32, i32) {
    %c0_i32 = arith.constant 0 : i32
    %c0_i32_0 = arith.constant 0 : i32
    %c0_i32_1 = arith.constant 0 : i32
    return %c0_i32, %c0_i32_0 : i32, i32
  }
  func.func @transform_16(%arg0: i32) -> (i32, i32) {
    %c0_i32 = arith.constant 0 : i32
    %c0_i32_0 = arith.constant 0 : i32
    %c0_i32_1 = arith.constant 0 : i32
    return %c0_i32, %c0_i32_0 : i32, i32
  }
  func.func @transform_17(%arg0: i32) -> (i32, i32) {
    %c0_i32 = arith.constant 0 : i32
    %c0_i32_0 = arith.constant 0 : i32
    %c0_i32_1 = arith.constant 0 : i32
    return %c0_i32, %c0_i32_0 : i32, i32
  }
  func.func @transform_18(%arg0: i32) -> (i32, i32) {
    %c0_i32 = arith.constant 0 : i32
    %c0_i32_0 = arith.constant 0 : i32
    %c0_i32_1 = arith.constant 0 : i32
    return %c0_i32, %c0_i32_0 : i32, i32
  }
  func.func @transform_19(%arg0: i32) -> (i32, i32) {
    %c0_i32 = arith.constant 0 : i32
    %c0_i32_0 = arith.constant 0 : i32
    return %arg0, %c0_i32 : i32, i32
  }
}

</mosaic_0001>

<bundles_post_ra>
// kernel: model_forward.1
= control target key start
LH: loop header
LB: loop body
LE: loop exit
PB: predicated region body
PF: predicated region fallthrough
CT: control target
= control target key end

     0   :  { %s11786_s0 = inlined_call_operand.hbm [shape: f32[8,20], index: 0, kind: input, shape index: {}]   ;;  %s11787_s1 = inlined_call_operand.hbm [shape: bf16[20,320], index: 1, kind: input, shape index: {}]   ;;  %s11788_s2 = inlined_call_operand.hbm [shape: f32[1,320], index: 2, kind: input, shape index: {}]   ;;  %s11789_s3 = inlined_call_operand.hbm [shape: f32[1,320], index: 3, kind: input, shape index: {}]   ;;  %s11790_s4 = inlined_call_operand.hbm [shape: bf16[320,320], index: 4, kind: input, shape index: {}]   ;;  %s11791_s5 = inlined_call_operand.hbm [shape: f32[1,320], index: 5, kind: input, shape index: {}]   ;;  %s11792_s6 = inlined_call_operand.hbm [shape: f32[1,320], index: 6, kind: input, shape index: {}]   ;;  %s11793_s7 = inlined_call_operand.vmem [shape: bf16[320,1024], index: 7, kind: input, shape index: {}]   ;;  %s11794_s8 = inlined_call_operand.hbm [shape: f32[1,1024], index: 8, kind: input, shape index: {}]   ;;  %s11795_s9 = inlined_call_operand.hbm [shape: f32[1,1024], index: 9, kind: input, shape index: {}]   ;;  %s11796_s10 = inlined_call_operand.hbm [shape: bf16[1024,1024], index: 10, kind: input, shape index: {}]   ;;  %s11797_s11 = inlined_call_operand.hbm [shape: f32[1,1024], index: 11, kind: input, shape index: {}]   ;;  %s11798_s12 = inlined_call_operand.hbm [shape: f32[1,1024], index: 12, kind: input, shape index: {}]   ;;  %s11799_s13 = inlined_call_operand.vmem [shape: bf16[1024,320], index: 13, kind: input, shape index: {}]   ;;  %s11800_s14 = inlined_call_operand.hbm [shape: f32[1,320], index: 14, kind: input, shape index: {}]   ;;  %s11801_s15 = inlined_call_operand.hbm [shape: f32[1,320], index: 15, kind: input, shape index: {}]   ;;  %s11802_s16 = inlined_call_operand.vmem [shape: bf16[320,4], index: 16, kind: input, shape index: {}]   ;;  %s11803_s17 = inlined_call_operand.hbm [shape: f32[1,4], index: 17, kind: input, shape index: {}]   ;;  %s11804_s18 = inlined_call_operand.hbm [shape: f32[1,4], index: 18, kind: input, shape index: {}]   ;;  %s11805_s19 = inlined_call_operand.vmem [shape: f32[8,4], index: 19, kind: output, shape index: {}]  }
   0x1   :  { %11806 = sst [smem:[#allocation36_spill]] %s11786_s0 }
   0x2   :  { %11807 = sst [smem:[#allocation37_spill]] %s11787_s1 }
   0x3   :  { %11808 = sst [smem:[#allocation38_spill]] %s11788_s2 }
   0x4   :  { %11809 = sst [smem:[#allocation39_spill]] %s11789_s3 }
   0x5   :  { %24 = vsyncpa [#allocation3], 0 }
   0x6   :  { %25 = vsyncpa [#allocation5], 0 }
   0x7   :  { %26 = vsyncpa [#allocation8], 0 }
   0x8   :  { %27 = vsyncpa [#allocation11], 0 }
   0x9   :  { %28 = vsyncpa [#allocation14], 0 }
   0xa   :  { %29 = vsyncpa [#allocation17], 0 }
   0xb   :  { %30 = vsyncpa [#allocation20], 0 }
   0xc   :  { %31 = vsyncpa [#allocation23], 0 }
   0xd   :  { %32 = vsyncpa [#allocation26], 0  ;;  %s10093_s0 = smov [#allocation4]  }
   0xe   :  { %s48_s30 = sshll.u32 %s10093_s0, 4  ;;  %s49_s30 = int_to_ptr.vmem [resolvable:$true] %s48_s30 }
   0xf   :  { %s9763_s20 = scalar_lea.vmem %s49_s30, 576  ;;  %p9768_p1 = scmp.lt.s32.totalorder %s49_s30, %s49_s30 }
  0x10   :  { %p9764_p0 = scmp.ne.s32.totalorder %s49_s30, %s9763_s20  ;;  %p9769_p2 = scmp.lt.s32.totalorder %s9763_s20, %s9763_s20 }
  0x12   :  { %p9770_p3 = por %p9769_p2, %p9768_p1 }
  0x14   :  { %p9771_p4 = pnand %p9770_p3, %p9764_p0 }
  0x16   :  { %9774 = shalt.err (!%p9771_p4)
}
  0x17   :  { %s10094_s21 = smov 192   ;;  %s10095_s1 = smov 12  }
  0x18   :  { %s11810_s23 = sld [smem:[#allocation37_spill]]  ;;  %s10096_s24 = smov [#allocation7]  }
  0x19   :  { %s71_s25 = sshll.u32 %s10096_s24, 4  ;;  %s10097_s3 = smov [#allocation10]   ;;  %s72_s25 = int_to_ptr.vmem [resolvable:$true] %s71_s25 }
  0x1a   :  { %s93_s26 = sshll.u32 %s10097_s3, 4  ;;  %s9783_s27 = scalar_lea.vmem %s72_s25, 48  ;;  %s94_s26 = int_to_ptr.vmem [resolvable:$true] %s93_s26 }
  0x1b   :  { %p9784_p5 = scmp.ne.s32.totalorder %s72_s25, %s9783_s27  ;;  %s9787_s28 = scalar_lea.vmem %s72_s25, 64 }
  0x1c   :  { %p9788_p6 = scmp.lt.s32.totalorder %s72_s25, %s72_s25  ;;  %p9789_p7 = scmp.lt.s32.totalorder %s9787_s28, %s9783_s27 }
  0x1e   :  { %54 = dma.hbm_to_vmem [thread:$0]  %s11810_s23, 576, %s49_s30, [#allocation5], %s10094_s21, %s10094_s21, %s10095_s1  }
  0x1f   :  { %p9790_p8 = por %p9789_p7, %p9788_p6 }
  0x21   :  { %p9791_p9 = pnand %p9790_p8, %p9784_p5 }
  0x23   :  { %9794 = shalt.err (!%p9791_p9)
}
  0x24   :  { %s11811_s20 = sld [smem:[#allocation39_spill]]  ;;  %s9803_s22 = scalar_lea.vmem %s94_s26, 48 }
  0x25   :  { %p9804_p10 = scmp.ne.s32.totalorder %s94_s26, %s9803_s22  ;;  %s9807_s30 = scalar_lea.vmem %s94_s26, 64 }
  0x26   :  { %p9808_p11 = scmp.lt.s32.totalorder %s94_s26, %s94_s26  ;;  %p9809_p12 = scmp.lt.s32.totalorder %s9807_s30, %s9803_s22 }
  0x28   :  { %p9810_p13 = por %p9809_p12, %p9808_p11 }
  0x2a   :  { %74 = dma.hbm_to_vmem [thread:$0]  %s11811_s20, 48, %s72_s25, [#allocation8]  }
  0x2b   :  { %p9811_p0 = pnand %p9810_p13, %p9804_p10 }
  0x2d   :  { %9814 = shalt.err (!%p9811_p0)
}
  0x2e   :  { %96 = dma.hbm_to_vmem [thread:$0]  %s11791_s5, 48, %s94_s26, [#allocation11]  }
  0x2f   :  { %s10098_s24 = smov [#allocation13]   ;;  %s10099_s27 = smov [#allocation16]  }
  0x30   :  { %s115_s3 = sshll.u32 %s10098_s24, 4  ;;  %s134_s28 = sshll.u32 %s10099_s27, 4  ;;  %s116_s3 = int_to_ptr.vmem [resolvable:$true] %s115_s3  ;;  %s135_s28 = int_to_ptr.vmem [resolvable:$true] %s134_s28 }
  0x31   :  { %s9823_s29 = scalar_lea.vmem %s116_s3, 128  ;;  %p9828_p2 = scmp.lt.s32.totalorder %s116_s3, %s116_s3 }
  0x32   :  { %p9824_p1 = scmp.ne.s32.totalorder %s116_s3, %s9823_s29  ;;  %p9829_p3 = scmp.lt.s32.totalorder %s9823_s29, %s9823_s29 }
  0x34   :  { %p9830_p4 = por %p9829_p3, %p9828_p2 }
  0x36   :  { %p9831_p5 = pnand %p9830_p4, %p9824_p1 }
  0x38   :  { %9834 = shalt.err (!%p9831_p5)
}
  0x39   :  { %118 = dma.hbm_to_vmem [thread:$0]  %s11794_s8, 128, %s116_s3, [#allocation14]  }
  0x3a   :  { %s9843_s20 = scalar_lea.vmem %s135_s28, 65536  ;;  %p9848_p7 = scmp.lt.s32.totalorder %s135_s28, %s135_s28 }
  0x3b   :  { %p9844_p6 = scmp.ne.s32.totalorder %s135_s28, %s9843_s20  ;;  %p9849_p8 = scmp.lt.s32.totalorder %s9843_s20, %s9843_s20 }
  0x3d   :  { %p9850_p9 = por %p9849_p8, %p9848_p7 }
  0x3f   :  { %p9851_p10 = pnand %p9850_p9, %p9844_p6 }
  0x41   :  { %9854 = shalt.err (!%p9851_p10)
}
  0x42   :  { %s10100_s5 = smov 512   ;;  %s10101_s26 = smov 32  }
  0x43   :  { %140 = dma.hbm_to_vmem [thread:$0]  %s11796_s10, 65536, %s135_s28, [#allocation17], %s10100_s5, %s10100_s5, %s10101_s26  }
  0x44   :  { %s10102_s2 = smov [#allocation19]   ;;  %s10103_s24 = smov [#allocation22]  }
  0x45   :  { %s157_s23 = sshll.u32 %s10102_s2, 4  ;;  %s179_s27 = sshll.u32 %s10103_s24, 4  ;;  %s158_s23 = int_to_ptr.vmem [resolvable:$true] %s157_s23  ;;  %s180_s27 = int_to_ptr.vmem [resolvable:$true] %s179_s27 }
  0x46   :  { %s9863_s8 = scalar_lea.vmem %s158_s23, 128  ;;  %p9868_p12 = scmp.lt.s32.totalorder %s158_s23, %s158_s23 }
  0x47   :  { %p9864_p11 = scmp.ne.s32.totalorder %s158_s23, %s9863_s8  ;;  %p9869_p13 = scmp.lt.s32.totalorder %s9863_s8, %s9863_s8 }
  0x49   :  { %p9870_p0 = por %p9869_p13, %p9868_p12 }
  0x4b   :  { %p9871_p1 = pnand %p9870_p0, %p9864_p11 }
  0x4d   :  { %9874 = shalt.err (!%p9871_p1)
}
  0x4e   :  { %160 = dma.hbm_to_vmem [thread:$0]  %s11798_s12, 128, %s158_s23, [#allocation20]  }
  0x4f   :  { %s9883_s25 = scalar_lea.vmem %s180_s27, 48  ;;  %s9887_s10 = scalar_lea.vmem %s180_s27, 64 }
  0x50   :  { %p9884_p2 = scmp.ne.s32.totalorder %s180_s27, %s9883_s25  ;;  %p9888_p3 = scmp.lt.s32.totalorder %s180_s27, %s180_s27 }
  0x51   :  { %p9889_p4 = scmp.lt.s32.totalorder %s9887_s10, %s9883_s25 }
  0x53   :  { %p9890_p5 = por %p9889_p4, %p9888_p3 }
  0x55   :  { %p9891_p6 = pnand %p9890_p5, %p9884_p2 }
  0x57   :  { %9894 = shalt.err (!%p9891_p6)
}
  0x58   :  { %182 = dma.hbm_to_vmem [thread:$0]  %s11801_s15, 48, %s180_s27, [#allocation23]  }
  0x59   :  { %s10104_s20 = smov [#allocation2]   ;;  %s10105_s26 = smov [#allocation6]  }
  0x5a   :  { %s39_s5 = sshll.u32 %s10104_s20, 4  ;;  %s61_s22 = sshll.u32 %s10105_s26, 4  ;;  %s40_s5 = int_to_ptr.vmem [resolvable:$true] %s39_s5  ;;  %s62_s22 = int_to_ptr.vmem [resolvable:$true] %s61_s22 }
  0x5b   :  { %s9903_s30 = scalar_lea.vmem %s40_s5, 128  ;;  %p9908_p8 = scmp.lt.s32.totalorder %s40_s5, %s40_s5 }
  0x5c   :  { %p9904_p7 = scmp.ne.s32.totalorder %s40_s5, %s9903_s30  ;;  %p9909_p9 = scmp.lt.s32.totalorder %s9903_s30, %s9903_s30 }
  0x5e   :  { %p9910_p10 = por %p9909_p9, %p9908_p8 }
  0x60   :  { %p9911_p11 = pnand %p9910_p10, %p9904_p7 }
  0x62   :  { %9914 = shalt.err (!%p9911_p11)
}
  0x63   :  { %s11812_s23 = sld [smem:[#allocation36_spill]]  ;;  %s9923_s24 = scalar_lea.vmem %s62_s22, 48 }
  0x64   :  { %p9924_p12 = scmp.ne.s32.totalorder %s62_s22, %s9923_s24  ;;  %s9927_s15 = scalar_lea.vmem %s62_s22, 64 }
  0x65   :  { %p9928_p13 = scmp.lt.s32.totalorder %s62_s22, %s62_s22  ;;  %p9929_p0 = scmp.lt.s32.totalorder %s9927_s15, %s9923_s24 }
  0x67   :  { %p9930_p1 = por %p9929_p0, %p9928_p13 }
  0x69   :  { %42 = dma.hbm_to_vmem [thread:$0]  %s11812_s23, 128, %s40_s5, [#allocation3]  }
  0x6a   :  { %p9931_p2 = pnand %p9930_p1, %p9924_p12 }
  0x6c   :  { %9934 = shalt.err (!%p9931_p2)
}
  0x6d   :  { %s11813_s3 = sld [smem:[#allocation38_spill]]  ;;  %s10106_s29 = smov [#allocation9]  }
  0x6e   :  { %s80_s25 = sshll.u32 %s10106_s29, 4  ;;  %s10107_s10 = smov [#allocation12]   ;;  %s81_s25 = int_to_ptr.vmem [resolvable:$true] %s80_s25 }
  0x6f   :  { %s103_s28 = sshll.u32 %s10107_s10, 4  ;;  %s9943_s0 = scalar_lea.vmem %s81_s25, 7680  ;;  %s104_s28 = int_to_ptr.vmem [resolvable:$true] %s103_s28 }
  0x70   :  { %p9944_p3 = scmp.ne.s32.totalorder %s81_s25, %s9943_s0  ;;  %p9948_p4 = scmp.lt.s32.totalorder %s81_s25, %s81_s25 }
  0x71   :  { %p9949_p5 = scmp.lt.s32.totalorder %s9943_s0, %s9943_s0 }
  0x73   :  { %64 = dma.hbm_to_vmem [thread:$0]  %s11813_s3, 48, %s62_s22, [#allocation5]  }
  0x74   :  { %p9950_p6 = por %p9949_p5, %p9948_p4 }
  0x76   :  { %p9951_p7 = pnand %p9950_p6, %p9944_p3 }
  0x78   :  { %9954 = shalt.err (!%p9951_p7)
}
  0x79   :  { %86 = dma.hbm_to_vmem [thread:$0]  %s11790_s4, 7680, %s81_s25, [#allocation8], %s10094_s21, %s10094_s21, %s10095_s1  }
  0x7a   :  { %s9963_s26 = scalar_lea.vmem %s104_s28, 48  ;;  %s9967_s22 = scalar_lea.vmem %s104_s28, 64 }
  0x7b   :  { %p9964_p8 = scmp.ne.s32.totalorder %s104_s28, %s9963_s26  ;;  %p9968_p9 = scmp.lt.s32.totalorder %s104_s28, %s104_s28 }
  0x7c   :  { %p9969_p10 = scmp.lt.s32.totalorder %s9967_s22, %s9963_s26 }
  0x7e   :  { %p9970_p11 = por %p9969_p10, %p9968_p9 }
  0x80   :  { %p9971_p12 = pnand %p9970_p11, %p9964_p8 }
  0x82   :  { %9974 = shalt.err (!%p9971_p12)
}
  0x83   :  { %106 = dma.hbm_to_vmem [thread:$0]  %s11792_s6, 48, %s104_s28, [#allocation11]  }
  0x84   :  { %s10108_s2 = smov [#allocation15]   ;;  %s10109_s24 = smov [#allocation18]  }
  0x85   :  { %s125_s23 = sshll.u32 %s10108_s2, 4  ;;  %s147_s15 = sshll.u32 %s10109_s24, 4  ;;  %s126_s23 = int_to_ptr.vmem [resolvable:$true] %s125_s23  ;;  %s148_s15 = int_to_ptr.vmem [resolvable:$true] %s147_s15 }
  0x86   :  { %s9983_s27 = scalar_lea.vmem %s126_s23, 128  ;;  %p9988_p0 = scmp.lt.s32.totalorder %s126_s23, %s126_s23 }
  0x87   :  { %p9984_p13 = scmp.ne.s32.totalorder %s126_s23, %s9983_s27  ;;  %p9989_p1 = scmp.lt.s32.totalorder %s9983_s27, %s9983_s27 }
  0x89   :  { %p9990_p2 = por %p9989_p1, %p9988_p0 }
  0x8b   :  { %p9991_p3 = pnand %p9990_p2, %p9984_p13 }
  0x8d   :  { %9994 = shalt.err (!%p9991_p3)
}
  0x8e   :  { %128 = dma.hbm_to_vmem [thread:$0]  %s11795_s9, 128, %s126_s23, [#allocation14]  }
  0x8f   :  { %s10003_s1 = scalar_lea.vmem %s148_s15, 128  ;;  %p10008_p5 = scmp.lt.s32.totalorder %s148_s15, %s148_s15 }
  0x90   :  { %p10004_p4 = scmp.ne.s32.totalorder %s148_s15, %s10003_s1  ;;  %p10009_p6 = scmp.lt.s32.totalorder %s10003_s1, %s10003_s1 }
  0x92   :  { %p10010_p7 = por %p10009_p6, %p10008_p5 }
  0x94   :  { %p10011_p8 = pnand %p10010_p7, %p10004_p4 }
  0x96   :  { %10014 = shalt.err (!%p10011_p8)
}
  0x97   :  { %150 = dma.hbm_to_vmem [thread:$0]  %s11797_s11, 128, %s148_s15, [#allocation17]  }
  0x98   :  { %s10110_s3 = smov [#allocation21]   ;;  %s10111_s25 = smov [#allocation24]  }
  0x99   :  { %s169_s29 = sshll.u32 %s10110_s3, 4  ;;  %s191_s10 = sshll.u32 %s10111_s25, 4  ;;  %s170_s29 = int_to_ptr.vmem [resolvable:$true] %s169_s29  ;;  %s192_s10 = int_to_ptr.vmem [resolvable:$true] %s191_s10 }
  0x9a   :  { %s10023_s28 = scalar_lea.vmem %s170_s29, 48  ;;  %s10027_s9 = scalar_lea.vmem %s170_s29, 64 }
  0x9b   :  { %p10024_p9 = scmp.ne.s32.totalorder %s170_s29, %s10023_s28  ;;  %p10028_p10 = scmp.lt.s32.totalorder %s170_s29, %s170_s29 }
  0x9c   :  { %p10029_p11 = scmp.lt.s32.totalorder %s10027_s9, %s10023_s28 }
  0x9e   :  { %p10030_p12 = por %p10029_p11, %p10028_p10 }
  0xa0   :  { %p10031_p13 = pnand %p10030_p12, %p10024_p9 }
  0xa2   :  { %10034 = shalt.err (!%p10031_p13)
}
  0xa3   :  { %172 = dma.hbm_to_vmem [thread:$0]  %s11800_s14, 48, %s170_s29, [#allocation20]  }
  0xa4   :  { %s10043_s5 = scalar_lea.vmem %s192_s10, 16  ;;  %s10047_s11 = scalar_lea.vmem %s192_s10, 32 }
  0xa5   :  { %p10044_p0 = scmp.ne.s32.totalorder %s192_s10, %s10043_s5  ;;  %p10048_p1 = scmp.lt.s32.totalorder %s192_s10, %s192_s10 }
  0xa6   :  { %p10049_p2 = scmp.lt.s32.totalorder %s10047_s11, %s10043_s5 }
  0xa8   :  { %p10050_p3 = por %p10049_p2, %p10048_p1 }
  0xaa   :  { %p10051_p4 = pnand %p10050_p3, %p10044_p0 }
  0xac   :  { %10054 = shalt.err (!%p10051_p4)
}
  0xad   :  { %194 = dma.hbm_to_vmem [thread:$0]  %s11803_s17, 16, %s192_s10, [#allocation23]  }
  0xae   :  { %s10112_s30 = smov [#allocation25]  }
  0xaf   :  { %s201_s12 = sshll.u32 %s10112_s30, 4  ;;  %s202_s12 = int_to_ptr.vmem [resolvable:$true] %s201_s12 }
  0xb0   :  { %s10063_s2 = scalar_lea.vmem %s202_s12, 16  ;;  %s10067_s23 = scalar_lea.vmem %s202_s12, 32 }
  0xb1   :  { %p10064_p5 = scmp.ne.s32.totalorder %s202_s12, %s10063_s2  ;;  %p10068_p6 = scmp.lt.s32.totalorder %s202_s12, %s202_s12 }
  0xb2   :  { %p10069_p7 = scmp.lt.s32.totalorder %s10067_s23, %s10063_s2 }
  0xb4   :  { %p10070_p8 = por %p10069_p7, %p10068_p6 }
  0xb6   :  { %p10071_p9 = pnand %p10070_p8, %p10064_p5 }
  0xb8   :  { %10074 = shalt.err (!%p10071_p9)
}
  0xb9   :  { %204 = dma.hbm_to_vmem [thread:$0]  %s11804_s18, 16, %s202_s12, [#allocation26]  }
  0xba   :  { %10075 = dma.done.wait [#allocation3], 128  }
  0xbb   :  { %10076 = vsyncadd [#allocation3], 4294967168 }
  0xbc   :  { %10077 = dma.done.wait [#allocation5], 624  }
  0xbd   :  { %10078 = vsyncadd [#allocation5], 4294966672 }
  0xbe   :  { %10079 = dma.done.wait [#allocation8], 7728  }
  0xbf   :  { %10080 = vsyncadd [#allocation8], 4294959568 }
  0xc0   :  { %10081 = dma.done.wait [#allocation11], 96  }
  0xc1   :  { %10082 = vsyncadd [#allocation11], 4294967200 }
  0xc2   :  { %10083 = dma.done.wait [#allocation14], 256  }
  0xc3   :  { %10084 = vsyncadd [#allocation14], 4294967040 }
  0xc4   :  { %10085 = dma.done.wait [#allocation17], 65664  }
  0xc5   :  { %10086 = vsyncadd [#allocation17], 4294901632 }
  0xc6   :  { %10087 = dma.done.wait [#allocation20], 176  }
  0xc7   :  { %10088 = vsyncadd [#allocation20], 4294967120 }
  0xc8   :  { %10089 = dma.done.wait [#allocation23], 64  }
  0xc9   :  { %10090 = vsyncadd [#allocation23], 4294967232 }
  0xca   :  { %10091 = dma.done.wait [#allocation26], 16  }
  0xcb   :  { %10092 = vsyncadd [#allocation26], 4294967280  ;;  %v10113_v0 = vmov 0   ;;  %v260_v1 = vld [vmem:[#allocation4 + $0x18] sm:$0x33]  ;;  %vm290_vm0 = vcmask 1041408   ;;  %v383_v58 = vlaneseq }
  0xcc   :  { %332 = vmatprep.mubr.bf16.mxu1 %v10113_v0  ;;  %v8227_v2 = vcombine.high %v260_v1, %v260_v1  ;;  %v8226_v3 = vcombine.low %v260_v1, %v260_v1  ;;  %v9388_v4 = vld [vmem:[#allocation4 + $0x4] ss:$12 sps:$4 sm:$0xff]   ;;  %v9390_v5 = vld [vmem:[#allocation4] ss:$12 sps:$4 sm:$0xff]   ;;  %v254_v6 = vld [vmem:[#allocation2] sm:$0xff]  ;;  %vm286_vm1 = vcmask 162816  }
  0xcd   :  { %v9391_v8 = vld [vmem:[#allocation4 + $0x20] ss:$0 sps:$4 sm:$0x33]   ;;  %v9393_v9 = vld [vmem:[#allocation9 + $0xac] ss:$12 sps:$4 sm:$0xff]   ;;  %v255_v12 = vpack.c.bf16 %v254_v6, %v254_v6  ;;  %v10114_v14 = vmov 0.0  }
  0xce   :  { %8229 = vmatprep.subr.msk.bf16.mxu1 %vm290_vm0, %v8227_v2  ;;  %v292_v7 = vsel %vm290_vm0, %v8226_v3, 0  ;;  %v9395_v10 = vld [vmem:[#allocation9 + $0xa8] ss:$12 sps:$4 sm:$0xff]   ;;  %831 = vmatprep.subr.bf16.mxu0 %v9393_v9  ;;  %v9398_v13 = vld [vmem:[#allocation9 + $0x90] ss:$12 sps:$4 sm:$0xff]   ;;  %v298_v15 = vsel %vm290_vm0, %v9391_v8, 0 }
  0xcf   :  { %313 = vmatpush1.bf16.msra.mxu1 %v292_v7  ;;  %v9396_v11 = vld [vmem:[#allocation9 + $0x94] ss:$12 sps:$4 sm:$0xff]   ;;  %832 = vmatpush1.bf16.msra.mxu0 %v9395_v10  ;;  %v9399_v16 = vld [vmem:[#allocation9 + $0x7c] ss:$12 sps:$4 sm:$0xff]   ;;  %v9401_v17 = vld [vmem:[#allocation9 + $0x78] ss:$12 sps:$4 sm:$0xff]  }
  0xd0   :  { %314 = vmatprep.subr.bf16.mxu1 %v9388_v4  ;;  %833 = vmatprep.subr.bf16.mxu0 %v9396_v11  ;;  %v9392_v18 = vld [vmem:[#allocation4 + $0x8] ss:$12 sps:$4 sm:$0xff]   ;;  %vm10115_vm2 = vmmov 0   ;;  %v9402_v19 = vld [vmem:[#allocation9 + $0x64] ss:$12 sps:$4 sm:$0xff]   ;;  %v10287_v59 = vshrl.u32 %v383_v58, 7 }
  0xd1   :  { %v9404_v20 = vld [vmem:[#allocation9 + $0x60] ss:$12 sps:$4 sm:$0xff]   ;;  %v9407_v22 = vld [vmem:[#allocation9 + $0x48] ss:$12 sps:$4 sm:$0xff]   ;;  %v9410_v24 = vld [vmem:[#allocation9 + $0x30] ss:$12 sps:$4 sm:$0xff]  }
  0xd2   :  { %v9405_v21 = vld [vmem:[#allocation9 + $0x4c] ss:$12 sps:$4 sm:$0xff]   ;;  %v9408_v23 = vld [vmem:[#allocation9 + $0x34] ss:$12 sps:$4 sm:$0xff]   ;;  %v9411_v25 = vld [vmem:[#allocation9 + $0x1c] ss:$12 sps:$4 sm:$0xff]  }
  0xd3   :  { %315 = vmatpush1.bf16.msra.mxu1 %v9390_v5  ;;  %834 = vmatpush1.bf16.msra.mxu0 %v9398_v13  ;;  %v9413_v26 = vld [vmem:[#allocation9 + $0x18] ss:$12 sps:$4 sm:$0xff]   ;;  %v9416_v28 = vld [vmem:[#allocation9] ss:$12 sps:$4 sm:$0xff]   ;;  %v9419_v30 = vld [vmem:[#allocation9 + $0x168] ss:$12 sps:$4 sm:$0xff]  }
  0xd4   :  { %9331 = vmatprep.subr.bf16.mxu1 %v10114_v14  ;;  %835 = vmatprep.subr.bf16.mxu0 %v9399_v16  ;;  %v9414_v27 = vld [vmem:[#allocation9 + $0x4] ss:$12 sps:$4 sm:$0xff]   ;;  %v9417_v29 = vld [vmem:[#allocation9 + $0x16c] ss:$12 sps:$4 sm:$0xff]   ;;  %v9420_v31 = vld [vmem:[#allocation9 + $0x154] ss:$12 sps:$4 sm:$0xff]  }
  0xd5   :  { %v9422_v32 = vld [vmem:[#allocation9 + $0x150] ss:$12 sps:$4 sm:$0xff]   ;;  %v9425_v34 = vld [vmem:[#allocation9 + $0x138] ss:$12 sps:$4 sm:$0xff]   ;;  %v9428_v36 = vld [vmem:[#allocation9 + $0x120] ss:$12 sps:$4 sm:$0xff]  }
  0xd6   :  { %8230 = vmatmul.mubr.msk.bf16.vlgmr.msra.gmra.mxu1 %vm286_vm1, %v255_v12  ;;  %v9423_v33 = vld [vmem:[#allocation9 + $0x13c] ss:$12 sps:$4 sm:$0xff]   ;;  %v9426_v35 = vld [vmem:[#allocation9 + $0x124] ss:$12 sps:$4 sm:$0xff]   ;;  %v9429_v37 = vld [vmem:[#allocation9 + $0x10c] ss:$12 sps:$4 sm:$0xff]  }
  0xd7   :  { %9332 = vmatpush3.bf16.msra.mxu1 %v298_v15  ;;  %9335 = vmatprep.mubr.msk.bf16.mxu1 %vm10115_vm2, %v10114_v14  ;;  %v9431_v38 = vld [vmem:[#allocation9 + $0x108] ss:$12 sps:$4 sm:$0xff]   ;;  %v9436_v40 = vld [vmem:[#allocation9 + $0x1cc] ss:$12 sps:$4 sm:$0xff]   ;;  %v9437_v42 = vld [vmem:[#allocation9 + $0xf0] ss:$12 sps:$4 sm:$0xff]  }
  0xd8   :  { %9333 = vmatprep.subr.bf16.mxu1 %v10114_v14  ;;  %836 = vmatpush1.bf16.msra.mxu0 %v9401_v17  ;;  %v9432_v39 = vld [vmem:[#allocation9 + $0xf4] ss:$12 sps:$4 sm:$0xff]   ;;  %v9438_v43 = vld [vmem:[#allocation9 + $0xdc] ss:$12 sps:$4 sm:$0xff]   ;;  %v9443_v46 = vld [vmem:[#allocation9 + $0xd8] ss:$12 sps:$4 sm:$0xff]  }
  0xd9   :  { %837 = vmatprep.subr.bf16.mxu0 %v9402_v19  ;;  %v9434_v41 = vld [vmem:[#allocation9 + $0x1c8] ss:$12 sps:$4 sm:$0xff]   ;;  %v9440_v45 = vld [vmem:[#allocation9 + $0x1b0] ss:$12 sps:$4 sm:$0xff]   ;;  %v9446_v49 = vld [vmem:[#allocation9 + $0x198] ss:$12 sps:$4 sm:$0xff]  }
  0xda   :  { %v9442_v44 = vld [vmem:[#allocation9 + $0x1b4] ss:$12 sps:$4 sm:$0xff]   ;;  %v9444_v47 = vld [vmem:[#allocation9 + $0xc4] ss:$12 sps:$4 sm:$0xff]   ;;  %v9448_v48 = vld [vmem:[#allocation9 + $0x19c] ss:$12 sps:$4 sm:$0xff]  }
  0xdb   :  { %9334 = vmatpush3.bf16.msra.mxu1 %v9392_v18  ;;  %v9449_v50 = vld [vmem:[#allocation9 + $0xc0] ss:$12 sps:$4 sm:$0xff]   ;;  %v9452_v51 = vld [vmem:[#allocation9 + $0x184] ss:$12 sps:$4 sm:$0xff]   ;;  %v10290_v60 = vsub.s32 0, %v10287_v59  ;;  %v10293_v62 = vsub.s32 1, %v10287_v59 }
  0xdc   :  { %838 = vmatpush1.bf16.msra.mxu0 %v9404_v20  ;;  %880 = vmatprep.subr.bf16.mxu1 %v9436_v40  ;;  %v9450_v52 = vld [vmem:[#allocation9 + $0x180] ss:$12 sps:$4 sm:$0xff]   ;;  %v9453_v53 = vld [vmem:[#allocation9 + $0x170] ss:$12 sps:$4 sm:$0xff]   ;;  %v381_v61 = vld [vmem:[#allocation6] sm:$0x7] }
  0xdd   :  { %839 = vmatprep.subr.bf16.mxu0 %v9405_v21  ;;  %v1098_v54 = vld [vmem:[%s11793_s7 + $0x1c0] sm:$0xff]  ;;  %v401_v63 = vld [vmem:[#allocation7] sm:$0x7]  ;;  %v386_v1 = vrot.slane %v381_v61, %v10290_v60  ;;  %v390_v3 = vrot.slane %v381_v61, %v10293_v62  ;;  %v10300_v7 = vsub.s32 2, %v10287_v59  ;;  %vm827_vm3 = vcmask 523264  }
  0xde   :  { %9336 = vmatmul.mubr.msk.bf16.vlgmr.msra.gmra.mxu1 %vm286_vm1, %v255_v12  ;;  %v1102_v55 = vld [vmem:[%s11793_s7 + $0x1e0] sm:$0xff]  ;;  %v406_v2 = vrot.slane %v401_v63, %v10290_v60  ;;  %v410_v6 = vrot.slane %v401_v63, %v10293_v62  ;;  %vm8208_vm4 = vcmask 31744  }
  0xdf   :  { %904 = vmatprep.mubr.bf16.mxu1 %v10113_v0  ;;  %881 = vmatpush1.bf16.msra.mxu1 %v9434_v41  ;;  %v8350_v56 = vcombine.low %v1098_v54, %v1102_v55  ;;  %v8351_v57 = vcombine.high %v1098_v54, %v1102_v55  ;;  %v394_v13 = vrot.slane %v381_v61, %v10300_v7  ;;  %v1090_v19 = vld [vmem:[%s11793_s7 + $0x180] sm:$0xff]  ;;  %v9456_v41 = vld [vmem:[#allocation9 + $0x98] ss:$12 sps:$4 sm:$0xff]  }
  0xe0   :  { %840 = vmatpush1.bf16.msra.mxu0 %v9407_v22  ;;  %882 = vmatprep.subr.bf16.mxu1 %v9442_v44  ;;  %v414_v18 = vrot.slane %v401_v63, %v10300_v7  ;;  %v1094_v20 = vld [vmem:[%s11793_s7 + $0x1a0] sm:$0xff] }
  0xe1   :  { %841 = vmatprep.subr.bf16.mxu0 %v9408_v23  ;;  %v1066_v44 = vld [vmem:[%s11793_s7 + $0xc0] sm:$0xff] }
  0xe2   :  { %v9461_v55 = vld [vmem:[#allocation9 + $0x110] ss:$12 sps:$4 sm:$0xff]  }
  0xe3   :  { %883 = vmatpush1.bf16.msra.mxu1 %v9440_v45  ;;  %v1070_v45 = vld [vmem:[%s11793_s7 + $0xe0] sm:$0xff] }
  0xe4   :  { %842 = vmatpush1.bf16.msra.mxu0 %v9410_v24  ;;  %884 = vmatprep.subr.bf16.mxu1 %v9448_v48  ;;  %v8319_v48 = vcombine.high %v1066_v44, %v1070_v45  ;;  %v9462_v61 = vld [vmem:[#allocation9 + $0x50] ss:$12 sps:$4 sm:$0xff]  }
  0xe5   :  { %843 = vmatprep.subr.bf16.mxu0 %v9411_v25 }
  0xe7   :  { %885 = vmatpush1.bf16.msra.mxu1 %v9446_v49  ;;  %v9459_v49 = vld [vmem:[#allocation9 + $0x128] ss:$12 sps:$4 sm:$0xff]  }
  0xe8   :  { %844 = vmatpush1.bf16.msra.mxu0 %v9413_v26  ;;  %886 = vmatprep.subr.bf16.mxu1 %v9452_v51  ;;  %v8343_v26 = vcombine.high %v1090_v19, %v1094_v20  ;;  %v1062_v51 = vld [vmem:[%s11793_s7 + $0xa0] sm:$0xff] }
  0xe9   :  { %845 = vmatprep.subr.bf16.mxu0 %v9414_v27 }
  0xeb   :  { %887 = vmatpush1.bf16.msra.mxu1 %v9450_v52  ;;  %v8318_v52 = vcombine.low %v1066_v44, %v1070_v45  ;;  %v1114_v45 = vld [vmem:[%s11793_s7 + $0x240] sm:$0xff] }
  0xec   :  { %846 = vmatpush1.bf16.msra.mxu0 %v9416_v28  ;;  %9189 = vmatprep.subr.bf16.mxu1 %v9453_v53  ;;  %v9460_v53 = vld [vmem:[#allocation9 + $0x68] ss:$12 sps:$4 sm:$0xff]  }
  0xed   :  { %847 = vmatprep.subr.bf16.mxu0 %v9417_v29  ;;  %v1082_v29 = vld [vmem:[%s11793_s7 + $0x140] sm:$0xff] }
  0xf0   :  { %848 = vmatpush2.bf16.msra.mxu0 %v9419_v30  ;;  %v1086_v30 = vld [vmem:[%s11793_s7 + $0x160] sm:$0xff] }
  0xf1   :  { %849 = vmatprep.subr.bf16.mxu0 %v9420_v31  ;;  %v8334_v40 = vcombine.low %v1082_v29, %v1086_v30 }
  0xf4   :  { %850 = vmatpush2.bf16.msra.mxu0 %v9422_v32  ;;  %v8342_v32 = vcombine.low %v1090_v19, %v1094_v20  ;;  %v1158_v19 = vld [vmem:[%s11793_s7 + $0x3a0] sm:$0xff] }
  0xf5   :  { %851 = vmatprep.subr.bf16.mxu0 %v9423_v33 }
  0xf8   :  { %852 = vmatpush2.bf16.msra.mxu0 %v9425_v34  ;;  %v9454_v34 = vld [vmem:[#allocation9 + $0xb0] ss:$12 sps:$4 sm:$0xff]  }
  0xf9   :  { %853 = vmatprep.subr.bf16.mxu0 %v9426_v35 }
  0xfc   :  { %854 = vmatpush2.bf16.msra.mxu0 %v9428_v36  ;;  %v9455_v36 = vld [vmem:[#allocation9 + $0x158] ss:$12 sps:$4 sm:$0xff]  }
  0xfd   :  { %855 = vmatprep.subr.bf16.mxu0 %v9429_v37  ;;  %v8335_v37 = vcombine.high %v1082_v29, %v1086_v30  ;;  %v9470_v30 = vld [vmem:[#allocation9 + $0x1b8] ss:$12 sps:$4 sm:$0xff]  }
 0x100   :  { %856 = vmatpush2.bf16.msra.mxu0 %v9431_v38  ;;  %v1074_v38 = vld [vmem:[%s11793_s7 + $0x100] sm:$0xff] }
 0x101   :  { %857 = vmatprep.subr.bf16.mxu0 %v9432_v39  ;;  %v1078_v39 = vld [vmem:[%s11793_s7 + $0x120] sm:$0xff] }
 0x104   :  { %858 = vmatpush2.bf16.msra.mxu0 %v9437_v42  ;;  %v8327_v42 = vcombine.high %v1074_v38, %v1078_v39 }
 0x105   :  { %859 = vmatprep.subr.bf16.mxu0 %v9438_v43  ;;  %v9457_v43 = vld [vmem:[#allocation9 + $0x140] ss:$12 sps:$4 sm:$0xff]  }
 0x108   :  { %860 = vmatpush2.bf16.msra.mxu0 %v9443_v46  ;;  %v8326_v46 = vcombine.low %v1074_v38, %v1078_v39  ;;  %v1130_v38 = vld [vmem:[%s11793_s7 + $0x2c0] sm:$0xff] }
 0x109   :  { %861 = vmatprep.subr.bf16.mxu0 %v9444_v47  ;;  %v9458_v47 = vld [vmem:[#allocation9 + $0x80] ss:$12 sps:$4 sm:$0xff]  }
 0x10c   :  { %862 = vmatpush2.bf16.msra.mxu0 %v9449_v50  ;;  %v1058_v50 = vld [vmem:[%s11793_s7 + $0x80] sm:$0xff] }
 0x10d   :  { %2005 = vmatprep.subr.bf16.mxu0 %v8351_v57  ;;  %v8311_v54 = vcombine.high %v1058_v50, %v1062_v51  ;;  %v1054_v57 = vld [vmem:[%s11793_s7 + $0x60] sm:$0xff]  ;;  %v8310_v58 = vcombine.low %v1058_v50, %v1062_v51 }
 0x10e   :  { %v1110_v50 = vld [vmem:[%s11793_s7 + $0x220] sm:$0xff] }
 0x196   :  { %v334_v4 = vpop.f32.mrf.mxu1 }
 0x197   :  { %v398_v5 = vmul.f32 %v386_v1, %v334_v4  ;;  %v9463_v1 = vld [vmem:[#allocation9 + $0xf8] ss:$12 sps:$4 sm:$0xff]  }
 0x198   :  { %v336_v8 = vpop.f32.mrf.mxu1 }
 0x199   :  { %v418_v9 = vadd.f32 %v406_v2, %v398_v5  ;;  %v399_v10 = vmul.f32 %v390_v3, %v336_v8  ;;  %v1042_v2 = vld [vmem:[%s11793_s7] sm:$0xff]  ;;  %v9464_v5 = vld [vmem:[#allocation9 + $0x38] ss:$12 sps:$4 sm:$0xff]  }
 0x19a   :  { %v338_v11 = vpop.f32.mrf.mxu1  ;;  %v1046_v3 = vld [vmem:[%s11793_s7 + $0x20] sm:$0xff] }
 0x19b   :  { %v419_v12 = vadd.f32 %v410_v6, %v399_v10  ;;  %v10303_v15 = vmax.f32 %v418_v9, 0.0  ;;  %v8295_v6 = vcombine.high %v1042_v2, %v1046_v3  ;;  %v9465_v8 = vld [vmem:[#allocation9 + $0xe0] ss:$12 sps:$4 sm:$0xff]   ;;  %v8294_v11 = vcombine.low %v1042_v2, %v1046_v3 }
 0x19c   :  { %v339_v16 = vpop.f32.mrf.mxu1  ;;  %v1162_v9 = vld [vmem:[%s11793_s7 + $0x3c0] sm:$0xff] }
 0x19d   :  { %v10305_v17 = vmax.f32 %v419_v12, 0.0  ;;  %v10318_v25 = vpack.c.bf16 %v10303_v15, %v10303_v15  ;;  %v1166_v10 = vld [vmem:[%s11793_s7 + $0x3e0] sm:$0xff]  ;;  %v9467_v16 = vld [vmem:[#allocation9 + $0xc8] ss:$12 sps:$4 sm:$0xff]  }
 0x19e   :  { %v375_v21 = vpop.f32.mrf.mxu1  ;;  %v9466_v12 = vld [vmem:[#allocation9 + $0x20] ss:$12 sps:$4 sm:$0xff]   ;;  %v8414_v20 = vcombine.low %v1162_v9, %v1166_v10 }
 0x19f   :  { %v400_v22 = vmul.f32 %v394_v13, %v375_v21  ;;  %v425_v23 = vpack.c.bf16 %v10305_v17, %v10305_v17  ;;  %v8415_v13 = vcombine.high %v1162_v9, %v1166_v10  ;;  %v9468_v21 = vld [vmem:[#allocation9 + $0x8] ss:$12 sps:$4 sm:$0xff]   ;;  %v1190_v2 = vld [vmem:[%s11793_s7 + $0x4a0] sm:$0xff] }
 0x1a0   :  { %v9337_v24 = vpop.f32.mrf.mxu1  ;;  %v1170_v10 = vld [vmem:[%s11793_s7 + $0x400] sm:$0xff] }
 0x1a1   :  { %v420_v27 = vadd.f32 %v414_v18, %v400_v22  ;;  %863 = vmatprep.mubr.bf16.mxu0 %v425_v23  ;;  %v1154_v18 = vld [vmem:[%s11793_s7 + $0x380] sm:$0xff] }
 0x1a2   :  { %v378_v28 = vpop.f32.mrf.mxu1  ;;  %864 = vmatmul.mubr.bf16.vlgmr.msra.gmra.mxu0 %v10318_v25  ;;  %v8407_v22 = vcombine.high %v1154_v18, %v1158_v19  ;;  %v1150_v24 = vld [vmem:[%s11793_s7 + $0x360] sm:$0xff] }
 0x1a3   :  { %v10327_v31 = vmax.f32 %v420_v27, 0.0  ;;  %2006 = vmatpush1.bf16.msra.mxu0 %v8350_v56  ;;  %v1050_v56 = vld [vmem:[%s11793_s7 + $0x40] sm:$0xff] }
 0x1a4   :  { %v9338_v33 = vpop.f32.mrf.mxu1  ;;  %2007 = vmatprep.subr.bf16.mxu0 %v8343_v26  ;;  %v8303_v63 = vcombine.high %v1050_v56, %v1054_v57  ;;  %v8302_v4 = vcombine.low %v1050_v56, %v1054_v57  ;;  %v8406_v26 = vcombine.low %v1154_v18, %v1158_v19  ;;  %v9469_v27 = vld [vmem:[#allocation9 + $0x1d0] ss:$12 sps:$4 sm:$0xff]   ;;  %v10465_v18 = vld [vmem:[%s11793_s7 + $0x1e8] sm:$0xff] }
 0x1a5   :  { %v10331_v35 = vpack.c.bf16 %v10327_v31, %v10327_v31  ;;  %v9472_v33 = vld [vmem:[#allocation9 + $0x188] ss:$12 sps:$4 sm:$0xff]  }
 0x1a7   :  { %8292 = vmatmul.mubr.msk.bf16.vlgmr.msra.gmra.mxu1 %vm827_vm3, %v10331_v35  ;;  %2008 = vmatpush1.bf16.msra.mxu0 %v8342_v32  ;;  %v9471_v32 = vld [vmem:[#allocation9 + $0x1a0] ss:$12 sps:$4 sm:$0xff]  }
 0x1a8   :  { %9190 = vmatpush3.bf16.msra.mxu1 %v9454_v34  ;;  %945 = vmatprep.mubr.bf16.mxu1 %v425_v23  ;;  %v1146_v23 = vld [vmem:[%s11793_s7 + $0x340] sm:$0xff] }
 0x1a9   :  { %9191 = vmatprep.subr.bf16.mxu1 %v9455_v36  ;;  %2009 = vmatprep.subr.bf16.mxu0 %v8335_v37  ;;  %v8399_v28 = vcombine.high %v1146_v23, %v1150_v24  ;;  %v8398_v29 = vcombine.low %v1146_v23, %v1150_v24  ;;  %v1142_v34 = vld [vmem:[%s11793_s7 + $0x320] sm:$0xff]  ;;  %v1013_v24 = vld [vmem:[#allocation12] sm:$0x7] }
 0x1ab   :  { %2010 = vmatpush1.bf16.msra.mxu0 %v8334_v40 }
 0x1ac   :  { %9192 = vmatpush3.bf16.msra.mxu1 %v9456_v41  ;;  %2011 = vmatprep.subr.bf16.mxu0 %v8327_v42  ;;  %v1122_v41 = vld [vmem:[%s11793_s7 + $0x280] sm:$0xff] }
 0x1ad   :  { %9193 = vmatprep.subr.bf16.mxu1 %v9457_v43  ;;  %v1126_v42 = vld [vmem:[%s11793_s7 + $0x2a0] sm:$0xff] }
 0x1ae   :  { %v8375_v43 = vcombine.high %v1122_v41, %v1126_v42  ;;  %v8374_v44 = vcombine.low %v1122_v41, %v1126_v42 }
 0x1af   :  { %2012 = vmatpush1.bf16.msra.mxu0 %v8326_v46  ;;  %v1118_v46 = vld [vmem:[%s11793_s7 + $0x260] sm:$0xff] }
 0x1b0   :  { %9194 = vmatpush3.bf16.msra.mxu1 %v9458_v47  ;;  %2013 = vmatprep.subr.bf16.mxu0 %v8319_v48  ;;  %v8367_v47 = vcombine.high %v1114_v45, %v1118_v46  ;;  %v8366_v48 = vcombine.low %v1114_v45, %v1118_v46  ;;  %v1187_v46 = vld [vmem:[%s11793_s7 + $0x488] sm:$0xff] }
 0x1b1   :  { %9195 = vmatprep.subr.bf16.mxu1 %v9459_v49  ;;  %v1106_v49 = vld [vmem:[%s11793_s7 + $0x200] sm:$0xff] }
 0x1b2   :  { %v8358_v51 = vcombine.low %v1106_v49, %v1110_v50 }
 0x1b3   :  { %2014 = vmatpush1.bf16.msra.mxu0 %v8318_v52  ;;  %v8359_v52 = vcombine.high %v1106_v49, %v1110_v50 }
 0x1b4   :  { %9196 = vmatpush3.bf16.msra.mxu1 %v9460_v53  ;;  %2015 = vmatprep.subr.bf16.mxu0 %v8311_v54  ;;  %v1194_v53 = vld [vmem:[%s11793_s7 + $0x4c0] sm:$0xff] }
 0x1b5   :  { %9197 = vmatprep.subr.bf16.mxu1 %v9461_v55  ;;  %v1198_v54 = vld [vmem:[%s11793_s7 + $0x4e0] sm:$0xff]  ;;  %v10432_v55 = vld [vmem:[%s11793_s7 + $0x4c8] sm:$0xff] }
 0x1b6   :  { %v8446_v56 = vcombine.low %v1194_v53, %v1198_v54  ;;  %v8447_v57 = vcombine.high %v1194_v53, %v1198_v54  ;;  %v1171_v53 = vld [vmem:[%s11793_s7 + $0x408] sm:$0xff] }
 0x1b7   :  { %2016 = vmatpush1.bf16.msra.mxu0 %v8310_v58  ;;  %v1199_v58 = vld [vmem:[%s11793_s7 + $0x4e8] sm:$0xff] }
 0x1b8   :  { %9198 = vmatpush3.bf16.msra.mxu1 %v9462_v61  ;;  %2017 = vmatprep.subr.bf16.mxu0 %v8303_v63  ;;  %v8448_v61 = vcombine.low %v10432_v55, %v1199_v58  ;;  %v8449_v63 = vcombine.high %v10432_v55, %v1199_v58  ;;  %v1175_v54 = vld [vmem:[%s11793_s7 + $0x428] sm:$0xff]  ;;  %v1104_v58 = vld [vmem:[%s11793_s7 + $0x1f0] sm:$0xff] }
 0x1b9   :  { %9199 = vmatprep.subr.bf16.mxu1 %v9463_v1  ;;  %v1186_v1 = vld [vmem:[%s11793_s7 + $0x480] sm:$0xff] }
 0x1ba   :  { %v8439_v3 = vcombine.high %v1186_v1, %v1190_v2 }
 0x1bb   :  { %2018 = vmatpush1.bf16.msra.mxu0 %v8302_v4  ;;  %v8438_v4 = vcombine.low %v1186_v1, %v1190_v2 }
 0x1bc   :  { %9200 = vmatpush3.bf16.msra.mxu1 %v9464_v5  ;;  %2019 = vmatprep.subr.bf16.mxu0 %v8295_v6  ;;  %v1178_v5 = vld [vmem:[%s11793_s7 + $0x440] sm:$0xff] }
 0x1bd   :  { %9201 = vmatprep.subr.bf16.mxu1 %v9465_v8  ;;  %v1182_v6 = vld [vmem:[%s11793_s7 + $0x460] sm:$0xff] }
 0x1be   :  { %v8431_v8 = vcombine.high %v1178_v5, %v1182_v6  ;;  %v8430_v9 = vcombine.low %v1178_v5, %v1182_v6 }
 0x1bf   :  { %2020 = vmatpush1.bf16.msra.mxu0 %v8294_v11  ;;  %v1174_v11 = vld [vmem:[%s11793_s7 + $0x420] sm:$0xff] }
 0x1c0   :  { %9202 = vmatpush3.bf16.msra.mxu1 %v9466_v12  ;;  %2021 = vmatprep.subr.bf16.mxu0 %v8415_v13  ;;  %v8423_v12 = vcombine.high %v1170_v10, %v1174_v11  ;;  %v8422_v13 = vcombine.low %v1170_v10, %v1174_v11  ;;  %v1026_v10 = vrot.slane %v1013_v24, %v10300_v7 }
 0x1c1   :  { %9203 = vmatprep.subr.bf16.mxu1 %v9467_v16  ;;  %v10460_v16 = vld [vmem:[%s11793_s7 + $0x1c8] sm:$0xff] }
 0x1c2   :  { %v8353_v19 = vcombine.high %v10460_v16, %v10465_v18 }
 0x1c3   :  { %2022 = vmatpush2.bf16.msra.mxu0 %v8414_v20  ;;  %v8352_v20 = vcombine.low %v10460_v16, %v10465_v18  ;;  %v1079_v16 = vld [vmem:[%s11793_s7 + $0x128] sm:$0xff]  ;;  %v1076_v18 = vld [vmem:[%s11793_s7 + $0x110] sm:$0xff] }
 0x1c4   :  { %9204 = vmatpush3.bf16.msra.mxu1 %v9468_v21  ;;  %2023 = vmatprep.subr.bf16.mxu0 %v8407_v22  ;;  %v993_v22 = vld [vmem:[#allocation10] sm:$0x7] }
 0x1c5   :  { %9339 = vmatprep.subr.bf16.mxu1 %v10114_v14  ;;  %v1006_v6 = vrot.slane %v993_v22, %v10300_v7 }
 0x1c7   :  { %946 = vmatmul.mubr.bf16.vlgmr.msra.gmra.mxu1 %v10318_v25  ;;  %2024 = vmatpush2.bf16.msra.mxu0 %v8406_v26  ;;  %v1138_v25 = vld [vmem:[%s11793_s7 + $0x300] sm:$0xff] }
 0x1c8   :  { %9340 = vmatpush3.bf16.msra.mxu1 %v9469_v27  ;;  %9347 = vmatprep.mubr.msk.bf16.mxu1 %vm10115_vm2, %v10114_v14  ;;  %v8390_v36 = vcombine.low %v1138_v25, %v1142_v34  ;;  %v8391_v37 = vcombine.high %v1138_v25, %v1142_v34  ;;  %v998_v27 = vrot.slane %v993_v22, %v10290_v60 }
 0x1c9   :  { %9341 = vmatprep.subr.bf16.mxu1 %v10114_v14  ;;  %2025 = vmatprep.subr.bf16.mxu0 %v8399_v28 }
 0x1cb   :  { %2026 = vmatpush2.bf16.msra.mxu0 %v8398_v29 }
 0x1cc   :  { %9342 = vmatpush3.bf16.msra.mxu1 %v9470_v30  ;;  %2027 = vmatprep.subr.bf16.mxu0 %v8391_v37  ;;  %v1018_v30 = vrot.slane %v1013_v24, %v10290_v60  ;;  %v1022_v37 = vrot.slane %v1013_v24, %v10293_v62  ;;  %v1092_v24 = vld [vmem:[%s11793_s7 + $0x190] sm:$0xff] }
 0x1cd   :  { %9343 = vmatprep.subr.bf16.mxu1 %v10114_v14 }
 0x1cf   :  { %2028 = vmatpush2.bf16.msra.mxu0 %v8390_v36 }
 0x1d0   :  { %9344 = vmatpush3.bf16.msra.mxu1 %v9471_v32 }
 0x1d1   :  { %9345 = vmatprep.subr.bf16.mxu1 %v10114_v14 }
 0x1d4   :  { %9346 = vmatpush3.bf16.msra.mxu1 %v9472_v33  ;;  %v1002_v33 = vrot.slane %v993_v22, %v10293_v62  ;;  %v1095_v22 = vld [vmem:[%s11793_s7 + $0x1a8] sm:$0xff] }
 0x1d5   :  { %2054 = vmatprep.subr.bf16.mxu1 %v8447_v57  ;;  %v1100_v57 = vld [vmem:[%s11793_s7 + $0x1d0] sm:$0xff] }
 0x1d7   :  { %9348 = vmatmul.mubr.msk.bf16.vlgmr.msra.gmra.mxu1 %vm827_vm3, %v10331_v35  ;;  %v1134_v35 = vld [vmem:[%s11793_s7 + $0x2e0] sm:$0xff] }
 0x1d8   :  { %2078 = vmatprep.mubr.bf16.mxu1 %v10113_v0  ;;  %v8383_v39 = vcombine.high %v1130_v38, %v1134_v35  ;;  %v8382_v40 = vcombine.low %v1130_v38, %v1134_v35  ;;  %2055 = vmatpush1.bf16.msra.mxu1 %v8446_v56  ;;  %v8425_v56 = vcombine.high %v1171_v53, %v1175_v54 }
 0x1d9   :  { %2056 = vmatprep.subr.bf16.mxu1 %v8439_v3 }
 0x1da   :  { %2029 = vmatprep.subr.bf16.mxu0 %v8383_v39 }
 0x1db   :  { %2030 = vmatpush2.bf16.msra.mxu0 %v8382_v40 }
 0x1dc   :  { %2031 = vmatprep.subr.bf16.mxu0 %v8375_v43  ;;  %2057 = vmatpush1.bf16.msra.mxu1 %v8438_v4 }
 0x1dd   :  { %2058 = vmatprep.subr.bf16.mxu1 %v8431_v8 }
 0x1df   :  { %2032 = vmatpush2.bf16.msra.mxu0 %v8374_v44 }
 0x1e0   :  { %2033 = vmatprep.subr.bf16.mxu0 %v8367_v47  ;;  %2059 = vmatpush1.bf16.msra.mxu1 %v8430_v9  ;;  %v1191_v47 = vld [vmem:[%s11793_s7 + $0x4a8] sm:$0xff] }
 0x1e1   :  { %2060 = vmatprep.subr.bf16.mxu1 %v8423_v12  ;;  %v8441_v50 = vcombine.high %v1187_v46, %v1191_v47 }
 0x1e3   :  { %2034 = vmatpush2.bf16.msra.mxu0 %v8366_v48 }
 0x1e4   :  { %2035 = vmatprep.subr.bf16.mxu0 %v8359_v52  ;;  %2061 = vmatpush1.bf16.msra.mxu1 %v8422_v13 }
 0x1e5   :  { %2087 = vmatprep.subr.bf16.mxu1 %v8353_v19 }
 0x1e7   :  { %2036 = vmatpush2.bf16.msra.mxu0 %v8358_v51  ;;  %v8440_v51 = vcombine.low %v1187_v46, %v1191_v47  ;;  %v1071_v46 = vld [vmem:[%s11793_s7 + $0xe8] sm:$0xff]  ;;  %v1068_v47 = vld [vmem:[%s11793_s7 + $0xd0] sm:$0xff] }
 0x1e8   :  { %2136 = vmatprep.subr.bf16.mxu0 %v8449_v63  ;;  %v8355_v63 = vcombine.high %v1100_v57, %v1104_v58 }
 0x262   :  { %v865_v21 = vpop.f32.mrf.mxu0 }
 0x264   :  { %v867_v23 = vpop.f32.mrf.mxu0 }
 0x266   :  { %v869_v26 = vpop.f32.mrf.mxu0 }
 0x267   :  { %v906_v28 = vpop.f32.mrf.mxu1  ;;  %v1091_v26 = vld [vmem:[%s11793_s7 + $0x188] sm:$0xff] }
 0x268   :  { %v907_v29 = vadd.f32 %v906_v28, %v865_v21  ;;  %v870_v32 = vpop.f32.mrf.mxu0  ;;  %v1096_v28 = vld [vmem:[%s11793_s7 + $0x1b0] sm:$0xff] }
 0x269   :  { %v908_v25 = vpop.f32.mrf.mxu1  ;;  %v1083_v32 = vld [vmem:[%s11793_s7 + $0x148] sm:$0xff] }
 0x26a   :  { %v1010_v34 = vmul.f32 %v998_v27, %v907_v29  ;;  %v909_v36 = vadd.f32 %v908_v25, %v867_v23  ;;  %v8354_v29 = vcombine.low %v1100_v57, %v1104_v58  ;;  %v1087_v25 = vld [vmem:[%s11793_s7 + $0x168] sm:$0xff] }
 0x26b   :  { %v910_v38 = vpop.f32.mrf.mxu1 }
 0x26c   :  { %v1030_v35 = vadd.f32 %v1018_v30, %v1010_v34  ;;  %v1011_v39 = vmul.f32 %v1002_v33, %v909_v36  ;;  %v8347_v33 = vcombine.high %v1092_v24, %v1096_v28  ;;  %v1084_v34 = vld [vmem:[%s11793_s7 + $0x150] sm:$0xff]  ;;  %v8346_v38 = vcombine.low %v1092_v24, %v1096_v28 }
 0x26d   :  { %v911_v40 = vpop.f32.mrf.mxu1  ;;  %v1088_v36 = vld [vmem:[%s11793_s7 + $0x170] sm:$0xff] }
 0x26e   :  { %v1033_v41 = vmax.f32 %v1030_v35, 0.0  ;;  %v1031_v42 = vadd.f32 %v1022_v37, %v1011_v39  ;;  %v8344_v37 = vcombine.low %v1091_v26, %v1095_v22  ;;  %v8337_v35 = vcombine.high %v1083_v32, %v1087_v25  ;;  %v1075_v40 = vld [vmem:[%s11793_s7 + $0x108] sm:$0xff]  ;;  %v1164_v24 = vld [vmem:[%s11793_s7 + $0x3d0] sm:$0xff] }
 0x26f   :  { %v8339_v39 = vcombine.high %v1084_v34, %v1088_v36  ;;  %v1168_v28 = vld [vmem:[%s11793_s7 + $0x3f0] sm:$0xff] }
 0x270   :  { %v1034_v43 = vmax.f32 %v1031_v42, 0.0  ;;  %v1036_v44 = vadd.f32 %v1033_v41, %v10303_v15  ;;  %v1179_v15 = vld [vmem:[%s11793_s7 + $0x448] sm:$0xff]  ;;  %v8336_v41 = vcombine.low %v1083_v32, %v1087_v25  ;;  %v8338_v42 = vcombine.low %v1084_v34, %v1088_v36  ;;  %v1156_v36 = vld [vmem:[%s11793_s7 + $0x390] sm:$0xff] }
 0x271   :  { %v1155_v25 = vld [vmem:[%s11793_s7 + $0x388] sm:$0xff] }
 0x272   :  { %v1037_v45 = vadd.f32 %v1034_v43, %v10305_v17  ;;  %v10485_v49 = vpack.c.bf16 %v1036_v44, %v1036_v44  ;;  %v1183_v17 = vld [vmem:[%s11793_s7 + $0x468] sm:$0xff]  ;;  %v8329_v43 = vcombine.high %v1075_v40, %v1079_v16 }
 0x273   :  { %v8433_v52 = vcombine.high %v1179_v15, %v1183_v17  ;;  %v8432_v55 = vcombine.low %v1179_v15, %v1183_v17  ;;  %v8328_v15 = vcombine.low %v1075_v40, %v1079_v16  ;;  %v1159_v34 = vld [vmem:[%s11793_s7 + $0x3a8] sm:$0xff] }
 0x274   :  { %v10483_v48 = vpack.c.bf16 %v1037_v45, %v1037_v45  ;;  %v1067_v45 = vld [vmem:[%s11793_s7 + $0xc8] sm:$0xff] }
 0x275   :  { %v8320_v57 = vcombine.low %v1067_v45, %v1071_v46  ;;  %v1147_v16 = vld [vmem:[%s11793_s7 + $0x348] sm:$0xff] }
 0x276   :  { %2037 = vmatprep.mubr.bf16.mxu0 %v10483_v48 }
 0x277   :  { %2038 = vmatmul.mubr.bf16.vlgmr.msra.gmra.mxu0 %v10485_v49 }
 0x278   :  { %2137 = vmatpush1.bf16.msra.mxu0 %v8448_v61  ;;  %2160 = vmatprep.mubr.bf16.mxu0 %v10113_v0  ;;  %v8424_v61 = vcombine.low %v1171_v53, %v1175_v54  ;;  %v1059_v53 = vld [vmem:[%s11793_s7 + $0x88] sm:$0xff] }
 0x279   :  { %2138 = vmatprep.subr.bf16.mxu0 %v8441_v50  ;;  %v1072_v50 = vld [vmem:[%s11793_s7 + $0xf0] sm:$0xff]  ;;  %v1063_v54 = vld [vmem:[%s11793_s7 + $0xa8] sm:$0xff] }
 0x27a   :  { %v8322_v58 = vcombine.low %v1068_v47, %v1072_v50 }
 0x27c   :  { %2139 = vmatpush1.bf16.msra.mxu0 %v8440_v51  ;;  %v8321_v51 = vcombine.high %v1067_v45, %v1071_v46  ;;  %v1139_v46 = vld [vmem:[%s11793_s7 + $0x308] sm:$0xff] }
 0x27d   :  { %2140 = vmatprep.subr.bf16.mxu0 %v8433_v52  ;;  %v8323_v52 = vcombine.high %v1068_v47, %v1072_v50  ;;  %v1143_v47 = vld [vmem:[%s11793_s7 + $0x328] sm:$0xff]  ;;  %v1140_v50 = vld [vmem:[%s11793_s7 + $0x310] sm:$0xff] }
 0x280   :  { %2141 = vmatpush1.bf16.msra.mxu0 %v8432_v55  ;;  %v1060_v55 = vld [vmem:[%s11793_s7 + $0x90] sm:$0xff] }
 0x281   :  { %2142 = vmatprep.subr.bf16.mxu0 %v8425_v56  ;;  %v1064_v56 = vld [vmem:[%s11793_s7 + $0xb0] sm:$0xff] }
 0x284   :  { %2143 = vmatpush1.bf16.msra.mxu0 %v8424_v61  ;;  %v8313_v61 = vcombine.high %v1059_v53, %v1063_v54 }
 0x285   :  { %2169 = vmatprep.subr.bf16.mxu0 %v8355_v63  ;;  %v8315_v63 = vcombine.high %v1060_v55, %v1064_v56 }
 0x287   :  { %v9205_v1 = vpop.f32.mrf.mxu1 }
 0x289   :  { %v9206_v2 = vpop.f32.mrf.mxu1 }
 0x28a   :  { %v9207_v5 = vadd.f32 %v9206_v2, %v9205_v1  ;;  %v1051_v1 = vld [vmem:[%s11793_s7 + $0x48] sm:$0xff] }
 0x28b   :  { %v9208_v3 = vpop.f32.mrf.mxu1  ;;  %v1055_v2 = vld [vmem:[%s11793_s7 + $0x68] sm:$0xff] }
 0x28c   :  { %v1052_v3 = vld [vmem:[%s11793_s7 + $0x50] sm:$0xff] }
 0x28d   :  { %v9209_v4 = vpop.f32.mrf.mxu1 }
 0x28e   :  { %v1056_v4 = vld [vmem:[%s11793_s7 + $0x70] sm:$0xff] }
 0x297   :  { %v987_v8 = vpop.f32.mrf.mxu1 }
 0x298   :  { %v988_v9 = vadd.f32 %v9207_v5, %v987_v8  ;;  %v8312_v5 = vcombine.low %v1059_v53, %v1063_v54  ;;  %v8305_v8 = vcombine.high %v1051_v1, %v1055_v2  ;;  %v1131_v54 = vld [vmem:[%s11793_s7 + $0x2c8] sm:$0xff] }
 0x299   :  { %v9349_v11 = vpop.f32.mrf.mxu1 }
 0x29a   :  { %v1012_v12 = vmul.f32 %v1006_v6, %v988_v9  ;;  %v8314_v6 = vcombine.low %v1060_v55, %v1064_v56  ;;  %v8307_v9 = vcombine.high %v1052_v3, %v1056_v4  ;;  %v1047_v11 = vld [vmem:[%s11793_s7 + $0x28] sm:$0xff]  ;;  %v1132_v56 = vld [vmem:[%s11793_s7 + $0x2d0] sm:$0xff] }
 0x29b   :  { %v990_v13 = vpop.f32.mrf.mxu1  ;;  %v1135_v55 = vld [vmem:[%s11793_s7 + $0x2e8] sm:$0xff] }
 0x29c   :  { %v1032_v19 = vadd.f32 %v1026_v10, %v1012_v12  ;;  %v1043_v10 = vld [vmem:[%s11793_s7 + $0x8] sm:$0xff]  ;;  %v1044_v12 = vld [vmem:[%s11793_s7 + $0x10] sm:$0xff] }
 0x29d   :  { %v9350_v21 = vpop.f32.mrf.mxu1  ;;  %v1048_v13 = vld [vmem:[%s11793_s7 + $0x30] sm:$0xff] }
 0x29e   :  { %v1035_v23 = vmax.f32 %v1032_v19, 0.0  ;;  %v8304_v19 = vcombine.low %v1051_v1, %v1055_v2  ;;  %v8306_v21 = vcombine.low %v1052_v3, %v1056_v4  ;;  %v8298_v32 = vcombine.low %v1044_v12, %v1048_v13  ;;  %v1123_v2 = vld [vmem:[%s11793_s7 + $0x288] sm:$0xff]  ;;  %v1124_v4 = vld [vmem:[%s11793_s7 + $0x290] sm:$0xff] }
 0x29f   :  { %v1127_v3 = vld [vmem:[%s11793_s7 + $0x2a8] sm:$0xff] }
 0x2a0   :  { %v1038_v27 = vadd.f32 %v1035_v23, %v10327_v31  ;;  %v8345_v31 = vcombine.high %v1091_v26, %v1095_v22  ;;  %v8297_v23 = vcombine.high %v1043_v10, %v1047_v11  ;;  %v8299_v26 = vcombine.high %v1044_v12, %v1048_v13  ;;  %v1167_v22 = vld [vmem:[%s11793_s7 + $0x3e8] sm:$0xff]  ;;  %v1116_v13 = vld [vmem:[%s11793_s7 + $0x250] sm:$0xff] }
 0x2a1   :  { %v1119_v12 = vld [vmem:[%s11793_s7 + $0x268] sm:$0xff] }
 0x2a2   :  { %v10523_v30 = vpack.c.bf16 %v1038_v27, %v1038_v27  ;;  %v1163_v27 = vld [vmem:[%s11793_s7 + $0x3c8] sm:$0xff] }
 0x2a4   :  { %8454 = vmatmul.mubr.msk.bf16.vlgmr.msra.gmra.mxu1 %vm827_vm3, %v10523_v30  ;;  %8455 = vmatmul.mubr.msk.bf16.vlgmr.msra.gmra.mxu0 %vm827_vm3, %v10523_v30 }
 0x2a5   :  { %2088 = vmatpush1.bf16.msra.mxu1 %v8352_v20  ;;  %2170 = vmatpush1.bf16.msra.mxu0 %v8354_v29  ;;  %v1080_v20 = vld [vmem:[%s11793_s7 + $0x130] sm:$0xff]  ;;  %v8296_v29 = vcombine.low %v1043_v10, %v1047_v11  ;;  %v1115_v11 = vld [vmem:[%s11793_s7 + $0x248] sm:$0xff] }
 0x2a6   :  { %2119 = vmatprep.mubr.bf16.mxu1 %v10483_v48  ;;  %2201 = vmatprep.mubr.bf16.mxu0 %v10483_v48  ;;  %v8331_v44 = vcombine.high %v1076_v18, %v1080_v20  ;;  %v8330_v17 = vcombine.low %v1076_v18, %v1080_v20  ;;  %v1151_v18 = vld [vmem:[%s11793_s7 + $0x368] sm:$0xff]  ;;  %v1148_v20 = vld [vmem:[%s11793_s7 + $0x350] sm:$0xff] }
 0x2a7   :  { %2089 = vmatprep.subr.bf16.mxu1 %v8345_v31  ;;  %2171 = vmatprep.subr.bf16.mxu0 %v8347_v33  ;;  %v8417_v31 = vcombine.high %v1163_v27, %v1167_v22  ;;  %v8419_v33 = vcombine.high %v1164_v24, %v1168_v28 }
 0x2a9   :  { %2090 = vmatpush1.bf16.msra.mxu1 %v8344_v37  ;;  %2172 = vmatpush1.bf16.msra.mxu0 %v8346_v38  ;;  %v1160_v37 = vld [vmem:[%s11793_s7 + $0x3b0] sm:$0xff]  ;;  %v8416_v38 = vcombine.low %v1163_v27, %v1167_v22  ;;  %v1107_v22 = vld [vmem:[%s11793_s7 + $0x208] sm:$0xff] }
 0x2aa   :  { %2091 = vmatprep.subr.bf16.mxu1 %v8337_v35  ;;  %2173 = vmatprep.subr.bf16.mxu0 %v8339_v39  ;;  %v8418_v35 = vcombine.low %v1164_v24, %v1168_v28  ;;  %v8409_v39 = vcombine.high %v1155_v25, %v1159_v34  ;;  %v8411_v40 = vcombine.high %v1156_v36, %v1160_v37  ;;  %v1111_v24 = vld [vmem:[%s11793_s7 + $0x228] sm:$0xff]  ;;  %v1108_v28 = vld [vmem:[%s11793_s7 + $0x210] sm:$0xff] }
 0x2ad   :  { %2092 = vmatpush1.bf16.msra.mxu1 %v8336_v41  ;;  %2174 = vmatpush1.bf16.msra.mxu0 %v8338_v42  ;;  %v1152_v41 = vld [vmem:[%s11793_s7 + $0x370] sm:$0xff]  ;;  %v8408_v42 = vcombine.low %v1155_v25, %v1159_v34 }
 0x2ae   :  { %2093 = vmatprep.subr.bf16.mxu1 %v8329_v43  ;;  %2175 = vmatprep.subr.bf16.mxu0 %v8331_v44  ;;  %v8410_v43 = vcombine.low %v1156_v36, %v1160_v37  ;;  %v8401_v44 = vcombine.high %v1147_v16, %v1151_v18  ;;  %v8403_v45 = vcombine.high %v1148_v20, %v1152_v41  ;;  %v1196_v34 = vld [vmem:[%s11793_s7 + $0x4d0] sm:$0xff]  ;;  %v1197_v37 = vld [vmem:[%s11793_s7 + $0x4d8] sm:$0xff] }
 0x2af   :  { %v1200_v36 = vld [vmem:[%s11793_s7 + $0x4f0] sm:$0xff] }
 0x2b1   :  { %2094 = vmatpush1.bf16.msra.mxu1 %v8328_v15  ;;  %2176 = vmatpush1.bf16.msra.mxu0 %v8330_v17  ;;  %v1144_v15 = vld [vmem:[%s11793_s7 + $0x330] sm:$0xff]  ;;  %v8400_v17 = vcombine.low %v1147_v16, %v1151_v18 }
 0x2b2   :  { %2095 = vmatprep.subr.bf16.mxu1 %v8321_v51  ;;  %2177 = vmatprep.subr.bf16.mxu0 %v8323_v52  ;;  %v8402_v51 = vcombine.low %v1148_v20, %v1152_v41  ;;  %v8393_v52 = vcombine.high %v1139_v46, %v1143_v47  ;;  %v8395_v53 = vcombine.high %v1140_v50, %v1144_v15  ;;  %v1188_v18 = vld [vmem:[%s11793_s7 + $0x490] sm:$0xff]  ;;  %v1189_v41 = vld [vmem:[%s11793_s7 + $0x498] sm:$0xff] }
 0x2b3   :  { %v1192_v20 = vld [vmem:[%s11793_s7 + $0x4b0] sm:$0xff] }
 0x2b5   :  { %2096 = vmatpush1.bf16.msra.mxu1 %v8320_v57  ;;  %2178 = vmatpush1.bf16.msra.mxu0 %v8322_v58  ;;  %v1136_v57 = vld [vmem:[%s11793_s7 + $0x2f0] sm:$0xff]  ;;  %v8392_v58 = vcombine.low %v1139_v46, %v1143_v47 }
 0x2b6   :  { %2097 = vmatprep.subr.bf16.mxu1 %v8313_v61  ;;  %2179 = vmatprep.subr.bf16.mxu0 %v8315_v63  ;;  %v8394_v61 = vcombine.low %v1140_v50, %v1144_v15  ;;  %v8385_v63 = vcombine.high %v1131_v54, %v1135_v55  ;;  %v8387_v1 = vcombine.high %v1132_v56, %v1136_v57  ;;  %v1180_v47 = vld [vmem:[%s11793_s7 + $0x450] sm:$0xff]  ;;  %v1181_v15 = vld [vmem:[%s11793_s7 + $0x458] sm:$0xff] }
 0x2b7   :  { %v1184_v50 = vld [vmem:[%s11793_s7 + $0x470] sm:$0xff] }
 0x2b9   :  { %2098 = vmatpush1.bf16.msra.mxu1 %v8312_v5  ;;  %2180 = vmatpush1.bf16.msra.mxu0 %v8314_v6  ;;  %v1128_v5 = vld [vmem:[%s11793_s7 + $0x2b0] sm:$0xff]  ;;  %v8384_v6 = vcombine.low %v1131_v54, %v1135_v55 }
 0x2ba   :  { %2099 = vmatprep.subr.bf16.mxu1 %v8305_v8  ;;  %2181 = vmatprep.subr.bf16.mxu0 %v8307_v9  ;;  %v8386_v8 = vcombine.low %v1132_v56, %v1136_v57  ;;  %v8377_v9 = vcombine.high %v1123_v2, %v1127_v3  ;;  %v8379_v10 = vcombine.high %v1124_v4, %v1128_v5  ;;  %v1172_v55 = vld [vmem:[%s11793_s7 + $0x410] sm:$0xff]  ;;  %v1173_v57 = vld [vmem:[%s11793_s7 + $0x418] sm:$0xff] }
 0x2bb   :  { %v1176_v56 = vld [vmem:[%s11793_s7 + $0x430] sm:$0xff] }
 0x2bd   :  { %2100 = vmatpush1.bf16.msra.mxu1 %v8304_v19  ;;  %2182 = vmatpush1.bf16.msra.mxu0 %v8306_v21  ;;  %v1120_v19 = vld [vmem:[%s11793_s7 + $0x270] sm:$0xff]  ;;  %v8376_v21 = vcombine.low %v1123_v2, %v1127_v3  ;;  %v1101_v3 = vld [vmem:[%s11793_s7 + $0x1d8] sm:$0xff] }
 0x2be   :  { %2101 = vmatprep.subr.bf16.mxu1 %v8297_v23  ;;  %2183 = vmatprep.subr.bf16.mxu0 %v8299_v26  ;;  %v8378_v23 = vcombine.low %v1124_v4, %v1128_v5  ;;  %v8369_v26 = vcombine.high %v1115_v11, %v1119_v12  ;;  %v8371_v27 = vcombine.high %v1116_v13, %v1120_v19  ;;  %v1105_v4 = vld [vmem:[%s11793_s7 + $0x1f8] sm:$0xff]  ;;  %v2505_v5 = vld [vmem:[#allocation16 + $0x1c0] sm:$0xff] }
 0x2c1   :  { %2102 = vmatpush1.bf16.msra.mxu1 %v8296_v29  ;;  %2184 = vmatpush1.bf16.msra.mxu0 %v8298_v32  ;;  %v1112_v29 = vld [vmem:[%s11793_s7 + $0x230] sm:$0xff]  ;;  %v8368_v32 = vcombine.low %v1115_v11, %v1119_v12  ;;  %v1093_v11 = vld [vmem:[%s11793_s7 + $0x198] sm:$0xff] }
 0x2c2   :  { %2103 = vmatprep.subr.bf16.mxu1 %v8417_v31  ;;  %2185 = vmatprep.subr.bf16.mxu0 %v8419_v33  ;;  %v8370_v31 = vcombine.low %v1116_v13, %v1120_v19  ;;  %v8361_v33 = vcombine.high %v1107_v22, %v1111_v24  ;;  %v8363_v25 = vcombine.high %v1108_v28, %v1112_v29  ;;  %v1097_v12 = vld [vmem:[%s11793_s7 + $0x1b8] sm:$0xff]  ;;  %v2497_v13 = vld [vmem:[#allocation16 + $0x180] sm:$0xff] }
 0x2c3   :  { %v2501_v19 = vld [vmem:[#allocation16 + $0x1a0] sm:$0xff] }
 0x2c5   :  { %2104 = vmatpush2.bf16.msra.mxu1 %v8416_v38  ;;  %2186 = vmatpush2.bf16.msra.mxu0 %v8418_v35  ;;  %v1201_v38 = vld [vmem:[%s11793_s7 + $0x4f8] sm:$0xff]  ;;  %v8360_v35 = vcombine.low %v1107_v22, %v1111_v24  ;;  %v8507_v24 = vcombine.high %v2497_v13, %v2501_v19 }
 0x2c6   :  { %2105 = vmatprep.subr.bf16.mxu1 %v8409_v39  ;;  %2187 = vmatprep.subr.bf16.mxu0 %v8411_v40  ;;  %v8362_v39 = vcombine.low %v1108_v28, %v1112_v29  ;;  %v8451_v40 = vcombine.high %v1196_v34, %v1200_v36  ;;  %v8453_v16 = vcombine.high %v1197_v37, %v1201_v38  ;;  %v1089_v22 = vld [vmem:[%s11793_s7 + $0x178] sm:$0xff]  ;;  %v2489_v28 = vld [vmem:[#allocation16 + $0x140] sm:$0xff] }
 0x2c7   :  { %v2493_v29 = vld [vmem:[#allocation16 + $0x160] sm:$0xff] }
 0x2c9   :  { %2106 = vmatpush2.bf16.msra.mxu1 %v8408_v42  ;;  %2188 = vmatpush2.bf16.msra.mxu0 %v8410_v43  ;;  %v1193_v42 = vld [vmem:[%s11793_s7 + $0x4b8] sm:$0xff]  ;;  %v8450_v43 = vcombine.low %v1196_v34, %v1200_v36  ;;  %v8506_v36 = vcombine.low %v2497_v13, %v2501_v19  ;;  %v2569_v19 = vld [vmem:[#allocation16 + $0x3c0] sm:$0xff] }
 0x2ca   :  { %2107 = vmatprep.subr.bf16.mxu1 %v8401_v44  ;;  %2189 = vmatprep.subr.bf16.mxu0 %v8403_v45  ;;  %v8452_v44 = vcombine.low %v1197_v37, %v1201_v38  ;;  %v8443_v45 = vcombine.high %v1188_v18, %v1192_v20  ;;  %v8445_v46 = vcombine.high %v1189_v41, %v1193_v42  ;;  %v1081_v37 = vld [vmem:[%s11793_s7 + $0x138] sm:$0xff] }
 0x2cb   :  { %v8499_v38 = vcombine.high %v2489_v28, %v2493_v29 }
 0x2cd   :  { %2108 = vmatpush2.bf16.msra.mxu1 %v8400_v17  ;;  %2190 = vmatpush2.bf16.msra.mxu0 %v8402_v51  ;;  %v1185_v17 = vld [vmem:[%s11793_s7 + $0x478] sm:$0xff]  ;;  %v8442_v51 = vcombine.low %v1188_v18, %v1192_v20 }
 0x2ce   :  { %2109 = vmatprep.subr.bf16.mxu1 %v8393_v52  ;;  %2191 = vmatprep.subr.bf16.mxu0 %v8395_v53  ;;  %v8444_v52 = vcombine.low %v1189_v41, %v1193_v42  ;;  %v8435_v53 = vcombine.high %v1180_v47, %v1184_v50  ;;  %v8437_v54 = vcombine.high %v1181_v15, %v1185_v17  ;;  %v1069_v18 = vld [vmem:[%s11793_s7 + $0xd8] sm:$0xff]  ;;  %v2473_v42 = vld [vmem:[#allocation16 + $0xc0] sm:$0xff] }
 0x2cf   :  { %v1073_v20 = vld [vmem:[%s11793_s7 + $0xf8] sm:$0xff] }
 0x2d1   :  { %2110 = vmatpush2.bf16.msra.mxu1 %v8392_v58  ;;  %2192 = vmatpush2.bf16.msra.mxu0 %v8394_v61  ;;  %v1177_v58 = vld [vmem:[%s11793_s7 + $0x438] sm:$0xff]  ;;  %v8434_v61 = vcombine.low %v1180_v47, %v1184_v50 }
 0x2d2   :  { %2111 = vmatprep.subr.bf16.mxu1 %v8385_v63  ;;  %2193 = vmatprep.subr.bf16.mxu0 %v8387_v1  ;;  %v8436_v63 = vcombine.low %v1181_v15, %v1185_v17  ;;  %v8427_v1 = vcombine.high %v1172_v55, %v1176_v56  ;;  %v8429_v2 = vcombine.high %v1173_v57, %v1177_v58  ;;  %v1061_v47 = vld [vmem:[%s11793_s7 + $0x98] sm:$0xff]  ;;  %v2465_v17 = vld [vmem:[#allocation16 + $0x80] sm:$0xff] }
 0x2d3   :  { %v1065_v50 = vld [vmem:[%s11793_s7 + $0xb8] sm:$0xff] }
 0x2d5   :  { %2112 = vmatpush2.bf16.msra.mxu1 %v8384_v6  ;;  %2194 = vmatpush2.bf16.msra.mxu0 %v8386_v8  ;;  %v2509_v6 = vld [vmem:[#allocation16 + $0x1e0] sm:$0xff]  ;;  %v8428_v8 = vcombine.low %v1173_v57, %v1177_v58 }
 0x2d6   :  { %2113 = vmatprep.subr.bf16.mxu1 %v8377_v9  ;;  %2195 = vmatprep.subr.bf16.mxu0 %v8379_v10  ;;  %v8357_v9 = vcombine.high %v1101_v3, %v1105_v4  ;;  %v8515_v10 = vcombine.high %v2505_v5, %v2509_v6  ;;  %v2457_v58 = vld [vmem:[#allocation16 + $0x40] sm:$0xff] }
 0x2d9   :  { %2114 = vmatpush2.bf16.msra.mxu1 %v8376_v21  ;;  %2196 = vmatpush2.bf16.msra.mxu0 %v8378_v23  ;;  %v8356_v21 = vcombine.low %v1101_v3, %v1105_v4  ;;  %v8349_v23 = vcombine.high %v1093_v11, %v1097_v12  ;;  %v1045_v3 = vld [vmem:[%s11793_s7 + $0x18] sm:$0xff] }
 0x2da   :  { %2115 = vmatprep.subr.bf16.mxu1 %v8369_v26  ;;  %2197 = vmatprep.subr.bf16.mxu0 %v8371_v27  ;;  %v8514_v26 = vcombine.low %v2505_v5, %v2509_v6  ;;  %v1085_v27 = vld [vmem:[%s11793_s7 + $0x158] sm:$0xff]  ;;  %v2449_v6 = vld [vmem:[#allocation16] sm:$0xff] }
 0x2db   :  { %v8341_v34 = vcombine.high %v1085_v27, %v1089_v22  ;;  %v1049_v4 = vld [vmem:[%s11793_s7 + $0x38] sm:$0xff] }
 0x2dd   :  { %2116 = vmatpush2.bf16.msra.mxu1 %v8368_v32  ;;  %2198 = vmatpush2.bf16.msra.mxu0 %v8370_v31  ;;  %v10776_v32 = vld [vmem:[#allocation16 + $0x9c0] sm:$0xff] }
 0x2de   :  { %2117 = vmatprep.subr.bf16.mxu1 %v8361_v33  ;;  %2199 = vmatprep.subr.bf16.mxu0 %v8363_v25  ;;  %v10778_v31 = vld [vmem:[#allocation16 + $0x9e0] sm:$0xff]  ;;  %v8348_v33 = vcombine.low %v1093_v11, %v1097_v12  ;;  %v1165_v11 = vld [vmem:[%s11793_s7 + $0x3d8] sm:$0xff] }
 0x2df   :  { %v8770_v25 = vcombine.low %v10776_v32, %v10778_v31  ;;  %v1169_v12 = vld [vmem:[%s11793_s7 + $0x3f8] sm:$0xff] }
 0x2e1   :  { %2118 = vmatpush2.bf16.msra.mxu1 %v8360_v35  ;;  %2200 = vmatpush2.bf16.msra.mxu0 %v8362_v39  ;;  %v2481_v35 = vld [vmem:[#allocation16 + $0x100] sm:$0xff]  ;;  %v8340_v39 = vcombine.low %v1085_v27, %v1089_v22  ;;  %v1157_v22 = vld [vmem:[%s11793_s7 + $0x398] sm:$0xff] }
 0x2e2   :  { %2218 = vmatprep.subr.bf16.mxu1 %v8451_v40  ;;  %2300 = vmatprep.subr.bf16.mxu0 %v8453_v16  ;;  %v8498_v16 = vcombine.low %v2489_v28, %v2493_v29  ;;  %v2561_v29 = vld [vmem:[#allocation16 + $0x380] sm:$0xff] }
 0x2e4   :  { %2120 = vmatmul.mubr.bf16.vlgmr.msra.gmra.mxu1 %v10485_v49  ;;  %2202 = vmatmul.mubr.bf16.vlgmr.msra.gmra.mxu0 %v10485_v49 }
 0x2e5   :  { %2219 = vmatpush1.bf16.msra.mxu1 %v8450_v43  ;;  %2301 = vmatpush1.bf16.msra.mxu0 %v8452_v44  ;;  %v2477_v43 = vld [vmem:[#allocation16 + $0xe0] sm:$0xff] }
 0x2e6   :  { %2220 = vmatprep.subr.bf16.mxu1 %v8443_v45  ;;  %2302 = vmatprep.subr.bf16.mxu0 %v8445_v46  ;;  %v8325_v45 = vcombine.high %v1069_v18, %v1073_v20  ;;  %v8483_v15 = vcombine.high %v2473_v42, %v2477_v43 }
 0x2e7   :  { %2242 = vmatprep.mubr.bf16.mxu1 %v10113_v0  ;;  %2324 = vmatprep.mubr.bf16.mxu0 %v10113_v0  ;;  %v8426_v0 = vcombine.low %v1172_v55, %v1176_v56  ;;  %v1053_v55 = vld [vmem:[%s11793_s7 + $0x58] sm:$0xff] }
 0x2e8   :  { %v1057_v56 = vld [vmem:[%s11793_s7 + $0x78] sm:$0xff] }
 0x2e9   :  { %2221 = vmatpush1.bf16.msra.mxu1 %v8442_v51  ;;  %2303 = vmatpush1.bf16.msra.mxu0 %v8444_v52  ;;  %v2469_v51 = vld [vmem:[#allocation16 + $0xa0] sm:$0xff]  ;;  %v8324_v52 = vcombine.low %v1069_v18, %v1073_v20  ;;  %v1141_v20 = vld [vmem:[%s11793_s7 + $0x318] sm:$0xff] }
 0x2ea   :  { %2222 = vmatprep.subr.bf16.mxu1 %v8435_v53  ;;  %2304 = vmatprep.subr.bf16.mxu0 %v8437_v54  ;;  %v8317_v53 = vcombine.high %v1061_v47, %v1065_v50  ;;  %v8482_v54 = vcombine.low %v2473_v42, %v2477_v43  ;;  %v8475_v57 = vcombine.high %v2465_v17, %v2469_v51  ;;  %v2545_v43 = vld [vmem:[#allocation16 + $0x300] sm:$0xff] }
 0x2ed   :  { %2223 = vmatpush1.bf16.msra.mxu1 %v8434_v61  ;;  %2305 = vmatpush1.bf16.msra.mxu0 %v8436_v63  ;;  %v2461_v61 = vld [vmem:[#allocation16 + $0x60] sm:$0xff]  ;;  %v8316_v63 = vcombine.low %v1061_v47, %v1065_v50  ;;  %v1133_v50 = vld [vmem:[%s11793_s7 + $0x2d8] sm:$0xff] }
 0x2ee   :  { %2224 = vmatprep.subr.bf16.mxu1 %v8427_v1  ;;  %2306 = vmatprep.subr.bf16.mxu0 %v8429_v2  ;;  %v8309_v1 = vcombine.high %v1053_v55, %v1057_v56  ;;  %v8474_v2 = vcombine.low %v2465_v17, %v2469_v51  ;;  %v8467_v5 = vcombine.high %v2457_v58, %v2461_v61  ;;  %v2537_v51 = vld [vmem:[#allocation16 + $0x2c0] sm:$0xff] }
 0x2f1   :  { %2225 = vmatpush1.bf16.msra.mxu1 %v8426_v0  ;;  %2307 = vmatpush1.bf16.msra.mxu0 %v8428_v8  ;;  %v2453_v0 = vld [vmem:[#allocation16 + $0x20] sm:$0xff]  ;;  %v8308_v8 = vcombine.low %v1053_v55, %v1057_v56  ;;  %v1125_v56 = vld [vmem:[%s11793_s7 + $0x298] sm:$0xff] }
 0x2f2   :  { %2251 = vmatprep.subr.bf16.mxu1 %v8357_v9  ;;  %5521 = vmatprep.subr.bf16.mxu0 %v8515_v10  ;;  %v8301_v9 = vcombine.high %v1045_v3, %v1049_v4  ;;  %v8466_v10 = vcombine.low %v2457_v58, %v2461_v61  ;;  %v8459_v13 = vcombine.high %v2449_v6, %v2453_v0  ;;  %v2529_v61 = vld [vmem:[#allocation16 + $0x280] sm:$0xff] }
 0x2f3   :  { %v8458_v27 = vcombine.low %v2449_v6, %v2453_v0  ;;  %v2521_v0 = vld [vmem:[#allocation16 + $0x240] sm:$0xff] }
 0x2f4   :  { %8456 = vmatmul.mubr.msk.bf16.vlgmr.msra.gmra.mxu1 %vm827_vm3, %v10523_v30  ;;  %8457 = vmatmul.mubr.msk.bf16.vlgmr.msra.gmra.mxu0 %vm827_vm3, %v10523_v30  ;;  %v1077_v30 = vld [vmem:[%s11793_s7 + $0x118] sm:$0xff] }
 0x2f5   :  { %2252 = vmatpush1.bf16.msra.mxu1 %v8356_v21  ;;  %2283 = vmatprep.mubr.bf16.mxu1 %v10483_v48  ;;  %v2485_v48 = vld [vmem:[#allocation16 + $0x120] sm:$0xff]  ;;  %v8333_v40 = vcombine.high %v1077_v30, %v1081_v37  ;;  %v8332_v44 = vcombine.low %v1077_v30, %v1081_v37  ;;  %v1149_v37 = vld [vmem:[%s11793_s7 + $0x358] sm:$0xff] }
 0x2f6   :  { %2253 = vmatprep.subr.bf16.mxu1 %v8349_v23  ;;  %5522 = vmatpush1.bf16.msra.mxu0 %v8514_v26  ;;  %v8491_v41 = vcombine.high %v2481_v35, %v2485_v48  ;;  %v8490_v46 = vcombine.low %v2481_v35, %v2485_v48  ;;  %v2573_v21 = vld [vmem:[#allocation16 + $0x3e0] sm:$0xff]  ;;  %v8300_v23 = vcombine.low %v1045_v3, %v1049_v4  ;;  %v1117_v4 = vld [vmem:[%s11793_s7 + $0x258] sm:$0xff] }
 0x2f7   :  { %5523 = vmatprep.subr.bf16.mxu0 %v8507_v24  ;;  %v8421_v26 = vcombine.high %v1165_v11, %v1169_v12  ;;  %v1161_v24 = vld [vmem:[%s11793_s7 + $0x3b8] sm:$0xff]  ;;  %v8579_v28 = vcombine.high %v2569_v19, %v2573_v21  ;;  %v8578_v30 = vcombine.low %v2569_v19, %v2573_v21  ;;  %v2553_v48 = vld [vmem:[#allocation16 + $0x340] sm:$0xff] }
 0x2f8   :  { %v2513_v21 = vld [vmem:[#allocation16 + $0x200] sm:$0xff] }
 0x2f9   :  { %2254 = vmatpush1.bf16.msra.mxu1 %v8348_v33  ;;  %v2565_v33 = vld [vmem:[#allocation16 + $0x3a0] sm:$0xff] }
 0x2fa   :  { %2255 = vmatprep.subr.bf16.mxu1 %v8341_v34  ;;  %5524 = vmatpush1.bf16.msra.mxu0 %v8506_v36  ;;  %v8420_v34 = vcombine.low %v1165_v11, %v1169_v12  ;;  %v8413_v36 = vcombine.high %v1157_v22, %v1161_v24  ;;  %v8571_v35 = vcombine.high %v2561_v29, %v2565_v33  ;;  %v1109_v12 = vld [vmem:[%s11793_s7 + $0x218] sm:$0xff] }
 0x2fb   :  { %5525 = vmatprep.subr.bf16.mxu0 %v8499_v38  ;;  %v1153_v38 = vld [vmem:[%s11793_s7 + $0x378] sm:$0xff]  ;;  %v8570_v18 = vcombine.low %v2561_v29, %v2565_v33  ;;  %v2637_v29 = vld [vmem:[#allocation16 + $0x5e0] sm:$0xff] }
 0x2fd   :  { %2256 = vmatpush1.bf16.msra.mxu1 %v8340_v39  ;;  %v2557_v39 = vld [vmem:[#allocation16 + $0x360] sm:$0xff] }
 0x2fe   :  { %2257 = vmatprep.subr.bf16.mxu1 %v8333_v40  ;;  %5526 = vmatpush1.bf16.msra.mxu0 %v8498_v16  ;;  %v8412_v40 = vcombine.low %v1157_v22, %v1161_v24  ;;  %v8405_v16 = vcombine.high %v1149_v37, %v1153_v38  ;;  %v8563_v42 = vcombine.high %v2553_v48, %v2557_v39 }
 0x2ff   :  { %5527 = vmatprep.subr.bf16.mxu0 %v8491_v41  ;;  %v1145_v41 = vld [vmem:[%s11793_s7 + $0x338] sm:$0xff]  ;;  %v8562_v47 = vcombine.low %v2553_v48, %v2557_v39  ;;  %v2617_v39 = vld [vmem:[#allocation16 + $0x540] sm:$0xff] }
 0x301   :  { %2258 = vmatpush1.bf16.msra.mxu1 %v8332_v44  ;;  %v2549_v44 = vld [vmem:[#allocation16 + $0x320] sm:$0xff] }
 0x302   :  { %2259 = vmatprep.subr.bf16.mxu1 %v8325_v45  ;;  %5528 = vmatpush1.bf16.msra.mxu0 %v8490_v46  ;;  %v8404_v45 = vcombine.low %v1149_v37, %v1153_v38  ;;  %v8397_v46 = vcombine.high %v1141_v20, %v1145_v41  ;;  %v8555_v17 = vcombine.high %v2545_v43, %v2549_v44  ;;  %v2629_v37 = vld [vmem:[#allocation16 + $0x5a0] sm:$0xff] }
 0x303   :  { %5529 = vmatprep.subr.bf16.mxu0 %v8483_v15  ;;  %v1137_v15 = vld [vmem:[%s11793_s7 + $0x2f8] sm:$0xff]  ;;  %v8554_v55 = vcombine.low %v2545_v43, %v2549_v44  ;;  %v8771_v38 = vcombine.high %v10776_v32, %v10778_v31 }
 0x305   :  { %2260 = vmatpush1.bf16.msra.mxu1 %v8324_v52  ;;  %v2541_v52 = vld [vmem:[#allocation16 + $0x2e0] sm:$0xff] }
 0x306   :  { %2261 = vmatprep.subr.bf16.mxu1 %v8317_v53  ;;  %5530 = vmatpush1.bf16.msra.mxu0 %v8482_v54  ;;  %v8396_v53 = vcombine.low %v1141_v20, %v1145_v41  ;;  %v8389_v54 = vcombine.high %v1133_v50, %v1137_v15  ;;  %v8547_v58 = vcombine.high %v2537_v51, %v2541_v52  ;;  %v2609_v41 = vld [vmem:[#allocation16 + $0x500] sm:$0xff] }
 0x307   :  { %5531 = vmatprep.subr.bf16.mxu0 %v8475_v57  ;;  %v1129_v57 = vld [vmem:[%s11793_s7 + $0x2b8] sm:$0xff]  ;;  %v8546_v3 = vcombine.low %v2537_v51, %v2541_v52  ;;  %v10868_v51 = vld [vmem:[#allocation16 + $0xdc0] sm:$0xff] }
 0x308   :  { %v10870_v52 = vld [vmem:[#allocation16 + $0xde0] sm:$0xff] }
 0x309   :  { %2262 = vmatpush1.bf16.msra.mxu1 %v8316_v63  ;;  %v2533_v63 = vld [vmem:[#allocation16 + $0x2a0] sm:$0xff] }
 0x30a   :  { %2263 = vmatprep.subr.bf16.mxu1 %v8309_v1  ;;  %5532 = vmatpush1.bf16.msra.mxu0 %v8474_v2  ;;  %v8388_v1 = vcombine.low %v1133_v50, %v1137_v15  ;;  %v8381_v2 = vcombine.high %v1125_v56, %v1129_v57  ;;  %v8539_v6 = vcombine.high %v2529_v61, %v2533_v63  ;;  %v2605_v50 = vld [vmem:[#allocation16 + $0x4e0] sm:$0xff] }
 0x30b   :  { %5533 = vmatprep.subr.bf16.mxu0 %v8467_v5  ;;  %v1121_v5 = vld [vmem:[%s11793_s7 + $0x278] sm:$0xff]  ;;  %v8538_v11 = vcombine.low %v2529_v61, %v2533_v63  ;;  %v2589_v61 = vld [vmem:[#allocation16 + $0x460] sm:$0xff] }
 0x30d   :  { %2264 = vmatpush1.bf16.msra.mxu1 %v8308_v8  ;;  %v2525_v8 = vld [vmem:[#allocation16 + $0x260] sm:$0xff] }
 0x30e   :  { %2265 = vmatprep.subr.bf16.mxu1 %v8301_v9  ;;  %5534 = vmatpush1.bf16.msra.mxu0 %v8466_v10  ;;  %v8380_v9 = vcombine.low %v1125_v56, %v1129_v57  ;;  %v8373_v10 = vcombine.high %v1117_v4, %v1121_v5  ;;  %v8531_v19 = vcombine.high %v2521_v0, %v2525_v8 }
 0x30f   :  { %5535 = vmatprep.subr.bf16.mxu0 %v8459_v13  ;;  %v1113_v13 = vld [vmem:[%s11793_s7 + $0x238] sm:$0xff]  ;;  %v8530_v22 = vcombine.low %v2521_v0, %v2525_v8  ;;  %v2701_v0 = vld [vmem:[#allocation16 + $0x7e0] sm:$0xff] }
 0x310   :  { %v8364_v33 = vcombine.low %v1109_v12, %v1113_v13 }
 0x311   :  { %2266 = vmatpush1.bf16.msra.mxu1 %v8300_v23  ;;  %v2517_v23 = vld [vmem:[#allocation16 + $0x220] sm:$0xff] }
 0x312   :  { %2267 = vmatprep.subr.bf16.mxu1 %v8421_v26  ;;  %5536 = vmatpush1.bf16.msra.mxu0 %v8458_v27  ;;  %v8372_v26 = vcombine.low %v1117_v4, %v1121_v5  ;;  %v8365_v27 = vcombine.high %v1109_v12, %v1113_v13  ;;  %v8523_v24 = vcombine.high %v2513_v21, %v2517_v23 }
 0x313   :  { %5537 = vmatprep.subr.bf16.mxu0 %v8579_v28  ;;  %v2633_v28 = vld [vmem:[#allocation16 + $0x5c0] sm:$0xff] }
 0x315   :  { %2268 = vmatpush2.bf16.msra.mxu1 %v8420_v34  ;;  %v8522_v34 = vcombine.low %v2513_v21, %v2517_v23  ;;  %v2685_v21 = vld [vmem:[#allocation16 + $0x760] sm:$0xff] }
 0x316   :  { %2269 = vmatprep.subr.bf16.mxu1 %v8413_v36  ;;  %5538 = vmatpush2.bf16.msra.mxu0 %v8578_v30  ;;  %v8643_v36 = vcombine.high %v2633_v28, %v2637_v29  ;;  %v2625_v30 = vld [vmem:[#allocation16 + $0x580] sm:$0xff] }
 0x317   :  { %5539 = vmatprep.subr.bf16.mxu0 %v8571_v35  ;;  %v8642_v35 = vcombine.low %v2633_v28, %v2637_v29  ;;  %v8635_v48 = vcombine.high %v2625_v30, %v2629_v37  ;;  %v2665_v29 = vld [vmem:[#allocation16 + $0x6c0] sm:$0xff] }
 0x319   :  { %2270 = vmatpush2.bf16.msra.mxu1 %v8412_v40  ;;  %v2621_v40 = vld [vmem:[#allocation16 + $0x560] sm:$0xff] }
 0x31a   :  { %2271 = vmatprep.subr.bf16.mxu1 %v8405_v16  ;;  %5540 = vmatpush2.bf16.msra.mxu0 %v8570_v18  ;;  %v8634_v16 = vcombine.low %v2625_v30, %v2629_v37  ;;  %v8627_v18 = vcombine.high %v2617_v39, %v2621_v40  ;;  %v8626_v44 = vcombine.low %v2617_v39, %v2621_v40  ;;  %v2657_v30 = vld [vmem:[#allocation16 + $0x680] sm:$0xff] }
 0x31b   :  { %5541 = vmatprep.subr.bf16.mxu0 %v8563_v42  ;;  %v2613_v42 = vld [vmem:[#allocation16 + $0x520] sm:$0xff] }
 0x31c   :  { %v2661_v37 = vld [vmem:[#allocation16 + $0x6a0] sm:$0xff] }
 0x31d   :  { %2272 = vmatpush2.bf16.msra.mxu1 %v8404_v45  ;;  %v8619_v45 = vcombine.high %v2609_v41, %v2613_v42  ;;  %v8667_v39 = vcombine.high %v2657_v30, %v2661_v37 }
 0x31e   :  { %2273 = vmatprep.subr.bf16.mxu1 %v8397_v46  ;;  %5542 = vmatpush2.bf16.msra.mxu0 %v8562_v47  ;;  %v2601_v47 = vld [vmem:[#allocation16 + $0x4c0] sm:$0xff] }
 0x31f   :  { %5543 = vmatprep.subr.bf16.mxu0 %v8555_v17  ;;  %v8611_v17 = vcombine.high %v2601_v47, %v2605_v50  ;;  %v8610_v56 = vcombine.low %v2601_v47, %v2605_v50  ;;  %v8666_v47 = vcombine.low %v2657_v30, %v2661_v37  ;;  %v2721_v30 = vld [vmem:[#allocation16 + $0x880] sm:$0xff] }
 0x320   :  { %v2725_v37 = vld [vmem:[#allocation16 + $0x8a0] sm:$0xff] }
 0x321   :  { %2274 = vmatpush2.bf16.msra.mxu1 %v8396_v53  ;;  %v2593_v53 = vld [vmem:[#allocation16 + $0x480] sm:$0xff]  ;;  %v8731_v31 = vcombine.high %v2721_v30, %v2725_v37 }
 0x322   :  { %2275 = vmatprep.subr.bf16.mxu1 %v8389_v54  ;;  %5544 = vmatpush2.bf16.msra.mxu0 %v8554_v55  ;;  %v2597_v54 = vld [vmem:[#allocation16 + $0x4a0] sm:$0xff]  ;;  %v8898_v55 = vcombine.low %v10868_v51, %v10870_v52 }
 0x323   :  { %5545 = vmatprep.subr.bf16.mxu0 %v8547_v58  ;;  %v8603_v57 = vcombine.high %v2593_v53, %v2597_v54  ;;  %v2585_v58 = vld [vmem:[#allocation16 + $0x440] sm:$0xff]  ;;  %v8602_v63 = vcombine.low %v2593_v53, %v2597_v54 }
 0x324   :  { %v8594_v4 = vcombine.low %v2585_v58, %v2589_v61 }
 0x325   :  { %2276 = vmatpush2.bf16.msra.mxu1 %v8388_v1  ;;  %v8595_v1 = vcombine.high %v2585_v58, %v2589_v61 }
 0x326   :  { %2277 = vmatprep.subr.bf16.mxu1 %v8381_v2  ;;  %5546 = vmatpush2.bf16.msra.mxu0 %v8546_v3  ;;  %v2577_v2 = vld [vmem:[#allocation16 + $0x400] sm:$0xff] }
 0x327   :  { %5547 = vmatprep.subr.bf16.mxu0 %v8539_v6  ;;  %v2581_v3 = vld [vmem:[#allocation16 + $0x420] sm:$0xff] }
 0x328   :  { %v8587_v5 = vcombine.high %v2577_v2, %v2581_v3  ;;  %v2697_v6 = vld [vmem:[#allocation16 + $0x7c0] sm:$0xff]  ;;  %v8586_v8 = vcombine.low %v2577_v2, %v2581_v3 }
 0x329   :  { %2278 = vmatpush2.bf16.msra.mxu1 %v8380_v9  ;;  %v8707_v9 = vcombine.high %v2697_v6, %v2701_v0  ;;  %v8706_v12 = vcombine.low %v2697_v6, %v2701_v0 }
 0x32a   :  { %2279 = vmatprep.subr.bf16.mxu1 %v8373_v10  ;;  %5548 = vmatpush2.bf16.msra.mxu0 %v8538_v11  ;;  %v2689_v10 = vld [vmem:[#allocation16 + $0x780] sm:$0xff] }
 0x32b   :  { %5549 = vmatprep.subr.bf16.mxu0 %v8531_v19  ;;  %v2693_v11 = vld [vmem:[#allocation16 + $0x7a0] sm:$0xff] }
 0x32c   :  { %v8699_v13 = vcombine.high %v2689_v10, %v2693_v11  ;;  %v2681_v19 = vld [vmem:[#allocation16 + $0x740] sm:$0xff]  ;;  %v8698_v23 = vcombine.low %v2689_v10, %v2693_v11  ;;  %v8899_v10 = vcombine.high %v10868_v51, %v10870_v52 }
 0x32d   :  { %2280 = vmatpush2.bf16.msra.mxu1 %v8372_v26  ;;  %v8691_v26 = vcombine.high %v2681_v19, %v2685_v21 }
 0x32e   :  { %2281 = vmatprep.subr.bf16.mxu1 %v8365_v27  ;;  %5550 = vmatpush2.bf16.msra.mxu0 %v8530_v22  ;;  %v2673_v27 = vld [vmem:[#allocation16 + $0x700] sm:$0xff] }
 0x32f   :  { %5551 = vmatprep.subr.bf16.mxu0 %v8523_v24  ;;  %v2677_v22 = vld [vmem:[#allocation16 + $0x720] sm:$0xff]  ;;  %v8690_v24 = vcombine.low %v2681_v19, %v2685_v21 }
 0x330   :  { %v8683_v28 = vcombine.high %v2673_v27, %v2677_v22  ;;  %v2745_v19 = vld [vmem:[#allocation16 + $0x940] sm:$0xff] }
 0x331   :  { %2282 = vmatpush2.bf16.msra.mxu1 %v8364_v33  ;;  %v2669_v33 = vld [vmem:[#allocation16 + $0x6e0] sm:$0xff] }
 0x332   :  { %5552 = vmatpush2.bf16.msra.mxu0 %v8522_v34  ;;  %5562 = vmatprep.subr.bf16.mxu1 %v8643_v36  ;;  %v8682_v34 = vcombine.low %v2673_v27, %v2677_v22  ;;  %v8675_v36 = vcombine.high %v2665_v29, %v2669_v33  ;;  %v2749_v21 = vld [vmem:[#allocation16 + $0x960] sm:$0xff] }
 0x333   :  { %5603 = vmatprep.subr.bf16.mxu0 %v8771_v38  ;;  %v10874_v38 = vld [vmem:[#allocation13] sm:$0xff]  ;;  %v2737_v27 = vld [vmem:[#allocation16 + $0x900] sm:$0xff] }
 0x334   :  { %2284 = vmatmul.mubr.bf16.vlgmr.msra.gmra.mxu1 %v10485_v49  ;;  %v8618_v49 = vcombine.low %v2609_v41, %v2613_v42  ;;  %v2338_v40 = vrot.slane %v10874_v38, %v10290_v60  ;;  %v2741_v22 = vld [vmem:[#allocation16 + $0x920] sm:$0xff] }
 0x335   :  { %5563 = vmatpush1.bf16.msra.mxu1 %v8642_v35  ;;  %v8674_v35 = vcombine.low %v2665_v29, %v2669_v33  ;;  %v2729_v29 = vld [vmem:[#allocation16 + $0x8c0] sm:$0xff] }
 0x336   :  { %5564 = vmatprep.subr.bf16.mxu1 %v8635_v48  ;;  %v10876_v48 = vld [vmem:[#allocation15] sm:$0xff]  ;;  %v2733_v33 = vld [vmem:[#allocation16 + $0x8e0] sm:$0xff] }
 0x337   :  { %v10864_v20 = vpop.f32.mrf.mxu0  ;;  %v2392_v54 = vrot.slane %v10876_v48, %v10293_v62  ;;  %v8738_v32 = vcombine.low %v2729_v29, %v2733_v33 }
 0x339   :  { %v10866_v43 = vpop.f32.mrf.mxu0  ;;  %5565 = vmatpush1.bf16.msra.mxu1 %v8634_v16  ;;  %v2649_v16 = vld [vmem:[#allocation16 + $0x640] sm:$0xff] }
 0x33a   :  { %5566 = vmatprep.subr.bf16.mxu1 %v8627_v18  ;;  %v2653_v18 = vld [vmem:[#allocation16 + $0x660] sm:$0xff] }
 0x33b   :  { %v2043_v46 = vpop.f32.mrf.mxu0 }
 0x33c   :  { %v2342_v46 = vrot.slane %v10874_v38, %v10293_v62 }
 0x33d   :  { %v2044_v15 = vpop.f32.mrf.mxu0  ;;  %5567 = vmatpush1.bf16.msra.mxu1 %v8626_v44 }
 0x33e   :  { %5568 = vmatprep.subr.bf16.mxu1 %v8619_v45  ;;  %v2388_v45 = vrot.slane %v10876_v48, %v10290_v60 }
 0x341   :  { %5569 = vmatpush1.bf16.msra.mxu1 %v8618_v49  ;;  %v8659_v49 = vcombine.high %v2649_v16, %v2653_v18 }
 0x342   :  { %5570 = vmatprep.subr.bf16.mxu1 %v8611_v17 }
 0x345   :  { %5571 = vmatpush1.bf16.msra.mxu1 %v8610_v56  ;;  %v2645_v56 = vld [vmem:[#allocation16 + $0x620] sm:$0xff] }
 0x346   :  { %5572 = vmatprep.subr.bf16.mxu1 %v8603_v57 }
 0x349   :  { %5573 = vmatpush1.bf16.msra.mxu1 %v8602_v63 }
 0x34a   :  { %5574 = vmatprep.subr.bf16.mxu1 %v8595_v1  ;;  %v8658_v1 = vcombine.low %v2649_v16, %v2653_v18  ;;  %v2705_v16 = vld [vmem:[#allocation16 + $0x800] sm:$0xff] }
 0x34b   :  { %v2709_v18 = vld [vmem:[#allocation16 + $0x820] sm:$0xff] }
 0x34d   :  { %5575 = vmatpush1.bf16.msra.mxu1 %v8594_v4 }
 0x34e   :  { %5576 = vmatprep.subr.bf16.mxu1 %v8587_v5 }
 0x351   :  { %5577 = vmatpush1.bf16.msra.mxu1 %v8586_v8  ;;  %v2753_v8 = vld [vmem:[#allocation16 + $0x980] sm:$0xff] }
 0x352   :  { %5578 = vmatprep.subr.bf16.mxu1 %v8707_v9 }
 0x355   :  { %5579 = vmatpush2.bf16.msra.mxu1 %v8706_v12 }
 0x356   :  { %5580 = vmatprep.subr.bf16.mxu1 %v8699_v13 }
 0x359   :  { %5581 = vmatpush2.bf16.msra.mxu1 %v8698_v23 }
 0x35a   :  { %5582 = vmatprep.subr.bf16.mxu1 %v8691_v26  ;;  %v8755_v26 = vcombine.high %v2745_v19, %v2749_v21 }
 0x35d   :  { %5583 = vmatpush2.bf16.msra.mxu1 %v8690_v24  ;;  %v8754_v24 = vcombine.low %v2745_v19, %v2749_v21  ;;  %v2781_v19 = vld [vmem:[#allocation16 + $0xa60] sm:$0xff]  ;;  %v2346_v21 = vrot.slane %v10874_v38, %v10300_v7 }
 0x35e   :  { %5584 = vmatprep.subr.bf16.mxu1 %v8683_v28  ;;  %v8747_v28 = vcombine.high %v2737_v27, %v2741_v22 }
 0x361   :  { %5585 = vmatpush2.bf16.msra.mxu1 %v8682_v34  ;;  %v8746_v34 = vcombine.low %v2737_v27, %v2741_v22 }
 0x362   :  { %5586 = vmatprep.subr.bf16.mxu1 %v8675_v36  ;;  %v8739_v36 = vcombine.high %v2729_v29, %v2733_v33  ;;  %v2769_v33 = vld [vmem:[#allocation16 + $0xa00] sm:$0xff] }
 0x364   :  { %v2080_v41 = vpop.f32.mrf.mxu1  ;;  %v10880_v42 = vpop.f32.mrf.mxu0 }
 0x365   :  { %v2081_v44 = vadd.f32 %v2080_v41, %v10864_v20  ;;  %5587 = vmatpush2.bf16.msra.mxu1 %v8674_v35  ;;  %v2641_v20 = vld [vmem:[#allocation16 + $0x600] sm:$0xff] }
 0x366   :  { %v2082_v50 = vpop.f32.mrf.mxu1  ;;  %v10887_v15 = vpop.f32.mrf.mxu0  ;;  %5588 = vmatprep.subr.bf16.mxu1 %v8667_v39  ;;  %v8651_v4 = vcombine.high %v2641_v20, %v2645_v56  ;;  %v8650_v9 = vcombine.low %v2641_v20, %v2645_v56  ;;  %v2717_v35 = vld [vmem:[#allocation16 + $0x860] sm:$0xff]  ;;  %v8730_v39 = vcombine.low %v2721_v30, %v2725_v37 }
 0x367   :  { %v2375_v17 = vmul.f32 %v2338_v40, %v2081_v44  ;;  %v2083_v53 = vadd.f32 %v2082_v50, %v10866_v43  ;;  %v2757_v43 = vld [vmem:[#allocation16 + $0x9a0] sm:$0xff]  ;;  %v8715_v44 = vcombine.high %v2705_v16, %v2709_v18 }
 0x368   :  { %v2084_v57 = vpop.f32.mrf.mxu1  ;;  %v2166_v58 = vpop.f32.mrf.mxu0  ;;  %v8763_v13 = vcombine.high %v2753_v8, %v2757_v43  ;;  %v8762_v23 = vcombine.low %v2753_v8, %v2757_v43  ;;  %v2809_v20 = vld [vmem:[#allocation16 + $0xb40] sm:$0xff] }
 0x369   :  { %v2425_v61 = vadd.f32 %v2388_v45, %v2375_v17  ;;  %v2376_v63 = vmul.f32 %v2342_v46, %v2083_v53  ;;  %5589 = vmatpush2.bf16.msra.mxu1 %v8666_v47  ;;  %v2825_v45 = vld [vmem:[#allocation16 + $0xbc0] sm:$0xff]  ;;  %v8714_v47 = vcombine.low %v2705_v16, %v2709_v18  ;;  %v10916_v18 = vld [vmem:[#allocation16 + $0x1c8] sm:$0xff] }
 0x36a   :  { %v2085_v2 = vpop.f32.mrf.mxu1  ;;  %v2167_v3 = vpop.f32.mrf.mxu0  ;;  %5590 = vmatprep.subr.bf16.mxu1 %v8659_v49  ;;  %v2829_v46 = vld [vmem:[#allocation16 + $0xbe0] sm:$0xff] }
 0x36b   :  { %v2426_v5 = vadd.f32 %v2392_v54, %v2376_v63  ;;  %v2433_v6 = vmax.f32 %v2425_v61, 0.0  ;;  %v8835_v50 = vcombine.high %v2825_v45, %v2829_v46  ;;  %v2817_v49 = vld [vmem:[#allocation16 + $0xb80] sm:$0xff]  ;;  %v8834_v53 = vcombine.low %v2825_v45, %v2829_v46 }
 0x36c   :  { %v2821_v17 = vld [vmem:[#allocation16 + $0xba0] sm:$0xff] }
 0x36d   :  { %v2434_v0 = vmax.f32 %v2426_v5, 0.0  ;;  %5591 = vmatpush2.bf16.msra.mxu1 %v8658_v1  ;;  %v10896_v12 = vpack.c.bf16 %v2433_v6, %v2433_v6  ;;  %v8827_v54 = vcombine.high %v2817_v49, %v2821_v17  ;;  %v2813_v56 = vld [vmem:[#allocation16 + $0xb60] sm:$0xff]  ;;  %v8826_v57 = vcombine.low %v2817_v49, %v2821_v17 }
 0x36e   :  { %5592 = vmatprep.subr.bf16.mxu1 %v8651_v4  ;;  %v8819_v58 = vcombine.high %v2809_v20, %v2813_v56  ;;  %v2801_v61 = vld [vmem:[#allocation16 + $0xb00] sm:$0xff]  ;;  %v8818_v1 = vcombine.low %v2809_v20, %v2813_v56  ;;  %v10925_v20 = vsub.s32 4, %v10287_v59 }
 0x36f   :  { %v10894_v11 = vpack.c.bf16 %v2434_v0, %v2434_v0  ;;  %v2805_v63 = vld [vmem:[#allocation16 + $0xb20] sm:$0xff] }
 0x370   :  { %v8811_v2 = vcombine.high %v2801_v61, %v2805_v63  ;;  %v2793_v3 = vld [vmem:[#allocation16 + $0xac0] sm:$0xff]  ;;  %v8810_v5 = vcombine.low %v2801_v61, %v2805_v63 }
 0x371   :  { %5553 = vmatprep.mubr.bf16.mxu0 %v10894_v11  ;;  %5593 = vmatpush2.bf16.msra.mxu1 %v8650_v9  ;;  %v2797_v4 = vld [vmem:[#allocation16 + $0xae0] sm:$0xff] }
 0x372   :  { %5554 = vmatmul.mubr.bf16.vlgmr.msra.gmra.mxu0 %v10896_v12  ;;  %5644 = vmatprep.subr.bf16.mxu1 %v8899_v10  ;;  %v8803_v6 = vcombine.high %v2793_v3, %v2797_v4  ;;  %v2785_v0 = vld [vmem:[#allocation16 + $0xa80] sm:$0xff]  ;;  %v8802_v43 = vcombine.low %v2793_v3, %v2797_v4  ;;  %v10904_v10 = vsub.s32 3, %v10287_v59 }
 0x373   :  { %5604 = vmatpush1.bf16.msra.mxu0 %v8770_v25  ;;  %v2713_v25 = vld [vmem:[#allocation16 + $0x840] sm:$0xff] }
 0x374   :  { %5605 = vmatprep.subr.bf16.mxu0 %v8763_v13  ;;  %v8723_v40 = vcombine.high %v2713_v25, %v2717_v35  ;;  %v8722_v41 = vcombine.low %v2713_v25, %v2717_v35  ;;  %v2789_v8 = vld [vmem:[#allocation16 + $0xaa0] sm:$0xff]  ;;  %v2350_v29 = vrot.slane %v10874_v38, %v10904_v10 }
 0x375   :  { %v8795_v9 = vcombine.high %v2785_v0, %v2789_v8  ;;  %v2777_v13 = vld [vmem:[#allocation16 + $0xa40] sm:$0xff] }
 0x376   :  { %v8787_v22 = vcombine.high %v2777_v13, %v2781_v19  ;;  %v8786_v25 = vcombine.low %v2777_v13, %v2781_v19  ;;  %v2881_v17 = vld [vmem:[#allocation16 + $0xd80] sm:$0xff] }
 0x377   :  { %5606 = vmatpush1.bf16.msra.mxu0 %v8762_v23  ;;  %v8794_v23 = vcombine.low %v2785_v0, %v2789_v8  ;;  %v2873_v61 = vld [vmem:[#allocation16 + $0xd40] sm:$0xff]  ;;  %v2404_v0 = vrot.slane %v10876_v48, %v10925_v20 }
 0x378   :  { %5607 = vmatprep.subr.bf16.mxu0 %v8755_v26  ;;  %v2877_v63 = vld [vmem:[#allocation16 + $0xd60] sm:$0xff] }
 0x37b   :  { %5608 = vmatpush1.bf16.msra.mxu0 %v8754_v24 }
 0x37c   :  { %5609 = vmatprep.subr.bf16.mxu0 %v8747_v28  ;;  %v2396_v28 = vrot.slane %v10876_v48, %v10300_v7 }
 0x37f   :  { %5610 = vmatpush1.bf16.msra.mxu0 %v8746_v34  ;;  %v2773_v34 = vld [vmem:[#allocation16 + $0xa20] sm:$0xff] }
 0x380   :  { %5611 = vmatprep.subr.bf16.mxu0 %v8739_v36 }
 0x383   :  { %5612 = vmatpush1.bf16.msra.mxu0 %v8738_v32 }
 0x384   :  { %5613 = vmatprep.subr.bf16.mxu0 %v8731_v31  ;;  %v2400_v31 = vrot.slane %v10876_v48, %v10904_v10 }
 0x387   :  { %5614 = vmatpush1.bf16.msra.mxu0 %v8730_v39  ;;  %v8779_v39 = vcombine.high %v2769_v33, %v2773_v34 }
 0x388   :  { %5615 = vmatprep.subr.bf16.mxu0 %v8723_v40 }
 0x38b   :  { %5616 = vmatpush1.bf16.msra.mxu0 %v8722_v41  ;;  %v10918_v41 = vld [vmem:[#allocation16 + $0x1e8] sm:$0xff] }
 0x38c   :  { %5617 = vmatprep.subr.bf16.mxu0 %v8715_v44 }
 0x38f   :  { %5618 = vmatpush1.bf16.msra.mxu0 %v8714_v47 }
 0x390   :  { %5619 = vmatprep.subr.bf16.mxu0 %v8835_v50  ;;  %v8517_v50 = vcombine.high %v10916_v18, %v10918_v41 }
 0x393   :  { %5620 = vmatpush2.bf16.msra.mxu0 %v8834_v53  ;;  %v2885_v53 = vld [vmem:[#allocation16 + $0xda0] sm:$0xff] }
 0x394   :  { %5621 = vmatprep.subr.bf16.mxu0 %v8827_v54 }
 0x397   :  { %5622 = vmatpush2.bf16.msra.mxu0 %v8826_v57  ;;  %v8891_v57 = vcombine.high %v2881_v17, %v2885_v53 }
 0x398   :  { %5623 = vmatprep.subr.bf16.mxu0 %v8819_v58  ;;  %v10931_v58 = vsub.s32 5, %v10287_v59 }
 0x39a   :  { %v2358_v8 = vrot.slane %v10874_v38, %v10931_v58 }
 0x39b   :  { %5624 = vmatpush2.bf16.msra.mxu0 %v8818_v1  ;;  %v2354_v1 = vrot.slane %v10874_v38, %v10925_v20 }
 0x39c   :  { %5625 = vmatprep.subr.bf16.mxu0 %v8811_v2  ;;  %v8890_v2 = vcombine.low %v2881_v17, %v2885_v53  ;;  %v2845_v17 = vld [vmem:[#allocation16 + $0xc60] sm:$0xff] }
 0x39f   :  { %5626 = vmatpush2.bf16.msra.mxu0 %v8810_v5  ;;  %v8883_v5 = vcombine.high %v2873_v61, %v2877_v63 }
 0x3a0   :  { %5627 = vmatprep.subr.bf16.mxu0 %v8803_v6 }
 0x3a3   :  { %5628 = vmatpush2.bf16.msra.mxu0 %v8802_v43  ;;  %v2865_v43 = vld [vmem:[#allocation16 + $0xd00] sm:$0xff] }
 0x3a4   :  { %v2121_v26 = vpop.f32.mrf.mxu1  ;;  %v2203_v27 = vpop.f32.mrf.mxu0  ;;  %5629 = vmatprep.subr.bf16.mxu0 %v8795_v9  ;;  %v2869_v9 = vld [vmem:[#allocation16 + $0xd20] sm:$0xff] }
 0x3a5   :  { %v2163_v24 = vadd.f32 %v10880_v42, %v2121_v26 }
 0x3a6   :  { %v2123_v36 = vpop.f32.mrf.mxu1  ;;  %v2205_v30 = vpop.f32.mrf.mxu0 }
 0x3a7   :  { %v2377_v37 = vmul.f32 %v2346_v21, %v2163_v24  ;;  %v2165_v32 = vadd.f32 %v10887_v15, %v2123_v36  ;;  %5630 = vmatpush2.bf16.msra.mxu0 %v8794_v23  ;;  %v8778_v15 = vcombine.low %v2769_v33, %v2773_v34  ;;  %v8882_v21 = vcombine.low %v2873_v61, %v2877_v63  ;;  %v2486_v61 = vld [vmem:[#allocation16 + $0x128] sm:$0xff] }
 0x3a8   :  { %v2125_v35 = vpop.f32.mrf.mxu1  ;;  %v2207_v42 = vpop.f32.mrf.mxu0  ;;  %5631 = vmatprep.subr.bf16.mxu0 %v8787_v22 }
 0x3a9   :  { %v2427_v40 = vadd.f32 %v2396_v28, %v2377_v37  ;;  %v2378_v16 = vmul.f32 %v2350_v29, %v2165_v32  ;;  %v2857_v28 = vld [vmem:[#allocation16 + $0xcc0] sm:$0xff]  ;;  %v8874_v37 = vcombine.low %v2865_v43, %v2869_v9  ;;  %v2502_v35 = vld [vmem:[#allocation16 + $0x1a8] sm:$0xff] }
 0x3aa   :  { %v2126_v44 = vpop.f32.mrf.mxu1  ;;  %v2208_v45 = vpop.f32.mrf.mxu0  ;;  %v2861_v29 = vld [vmem:[#allocation16 + $0xce0] sm:$0xff] }
 0x3ab   :  { %v2428_v46 = vadd.f32 %v2400_v31, %v2378_v16  ;;  %5632 = vmatpush2.bf16.msra.mxu0 %v8786_v25  ;;  %v2435_v47 = vmax.f32 %v2427_v40, 0.0  ;;  %v2498_v25 = vld [vmem:[#allocation16 + $0x188] sm:$0xff]  ;;  %v2849_v42 = vld [vmem:[#allocation16 + $0xc80] sm:$0xff]  ;;  %v8516_v16 = vcombine.low %v10916_v18, %v10918_v41 }
 0x3ac   :  { %5633 = vmatprep.subr.bf16.mxu0 %v8779_v39  ;;  %v2853_v39 = vld [vmem:[#allocation16 + $0xca0] sm:$0xff]  ;;  %v8509_v45 = vcombine.high %v2498_v25, %v2502_v35  ;;  %v8508_v53 = vcombine.low %v2498_v25, %v2502_v35  ;;  %v2450_v35 = vld [vmem:[#allocation16 + $0x8] sm:$0xff] }
 0x3ad   :  { %v2436_v49 = vmax.f32 %v2428_v46, 0.0  ;;  %v10927_v56 = vpack.c.bf16 %v2435_v47, %v2435_v47  ;;  %v8866_v46 = vcombine.low %v2857_v28, %v2861_v29  ;;  %v2494_v47 = vld [vmem:[#allocation16 + $0x168] sm:$0xff]  ;;  %v8858_v41 = vcombine.low %v2849_v42, %v2853_v39 }
 0x3af   :  { %v10922_v54 = vpack.c.bf16 %v2436_v49, %v2436_v49  ;;  %5634 = vmatpush2.bf16.msra.mxu0 %v8778_v15  ;;  %v2490_v15 = vld [vmem:[#allocation16 + $0x148] sm:$0xff]  ;;  %v2841_v49 = vld [vmem:[#allocation16 + $0xc40] sm:$0xff] }
 0x3b0   :  { %5685 = vmatprep.subr.bf16.mxu0 %v8517_v50  ;;  %v8859_v50 = vcombine.high %v2849_v42, %v2853_v39  ;;  %v8501_v18 = vcombine.high %v2490_v15, %v2494_v47  ;;  %v8851_v63 = vcombine.high %v2841_v49, %v2845_v17  ;;  %v2454_v42 = vld [vmem:[#allocation16 + $0x28] sm:$0xff] }
 0x3b1   :  { %5594 = vmatprep.mubr.bf16.mxu1 %v10922_v54 }
 0x3b2   :  { %5595 = vmatmul.mubr.bf16.vlgmr.msra.gmra.mxu1 %v10927_v56 }
 0x3b3   :  { %5645 = vmatpush1.bf16.msra.mxu1 %v8898_v55  ;;  %v2408_v55 = vrot.slane %v10876_v48, %v10931_v58 }
 0x3b4   :  { %v2244_v3 = vpop.f32.mrf.mxu1  ;;  %v10939_v4 = vpop.f32.mrf.mxu0  ;;  %5646 = vmatprep.subr.bf16.mxu1 %v8891_v57  ;;  %v2482_v57 = vld [vmem:[#allocation16 + $0x108] sm:$0xff] }
 0x3b5   :  { %v2245_v6 = vadd.f32 %v2244_v3, %v2203_v27  ;;  %v8875_v27 = vcombine.high %v2865_v43, %v2869_v9  ;;  %v8500_v3 = vcombine.low %v2490_v15, %v2494_v47  ;;  %v2953_v9 = vld [vmem:[#allocation16 + $0xfc0] sm:$0xff]  ;;  %v8461_v15 = vcombine.high %v2450_v35, %v2454_v42 }
 0x3b6   :  { %v2246_v13 = vpop.f32.mrf.mxu1  ;;  %v10945_v19 = vpop.f32.mrf.mxu0 }
 0x3b7   :  { %v2379_v51 = vmul.f32 %v2354_v1, %v2245_v6  ;;  %v2247_v52 = vadd.f32 %v2246_v13, %v2205_v30  ;;  %5647 = vmatpush1.bf16.msra.mxu1 %v8890_v2  ;;  %v8867_v30 = vcombine.high %v2857_v28, %v2861_v29  ;;  %v2833_v1 = vld [vmem:[#allocation16 + $0xc00] sm:$0xff]  ;;  %v8850_v6 = vcombine.low %v2841_v49, %v2845_v17  ;;  %v2574_v49 = vld [vmem:[#allocation16 + $0x3e8] sm:$0xff] }
 0x3b8   :  { %v2248_v23 = vpop.f32.mrf.mxu1  ;;  %v2330_v26 = vpop.f32.mrf.mxu0  ;;  %5648 = vmatprep.subr.bf16.mxu1 %v8883_v5  ;;  %v2837_v2 = vld [vmem:[#allocation16 + $0xc20] sm:$0xff]  ;;  %v8493_v5 = vcombine.high %v2482_v57, %v2486_v61 }
 0x3b9   :  { %v2429_v22 = vadd.f32 %v2404_v0, %v2379_v51  ;;  %v2380_v24 = vmul.f32 %v2358_v8, %v2247_v52  ;;  %v2474_v0 = vld [vmem:[#allocation16 + $0xc8] sm:$0xff]  ;;  %v8843_v43 = vcombine.high %v2833_v1, %v2837_v2  ;;  %v2957_v13 = vld [vmem:[#allocation16 + $0xfe0] sm:$0xff]  ;;  %v8492_v51 = vcombine.low %v2482_v57, %v2486_v61 }
 0x3ba   :  { %v2249_v33 = vpop.f32.mrf.mxu1  ;;  %v2331_v34 = vpop.f32.mrf.mxu0  ;;  %v2478_v8 = vld [vmem:[#allocation16 + $0xe8] sm:$0xff]  ;;  %v8963_v26 = vcombine.high %v2953_v9, %v2957_v13  ;;  %v8962_v29 = vcombine.low %v2953_v9, %v2957_v13 }
 0x3bb   :  { %v2430_v36 = vadd.f32 %v2408_v55, %v2380_v24  ;;  %5649 = vmatpush1.bf16.msra.mxu1 %v8882_v21  ;;  %v2437_v32 = vmax.f32 %v2429_v22, 0.0  ;;  %v8485_v52 = vcombine.high %v2474_v0, %v2478_v8  ;;  %v8842_v55 = vcombine.low %v2833_v1, %v2837_v2  ;;  %v2466_v21 = vld [vmem:[#allocation16 + $0x88] sm:$0xff]  ;;  %v2949_v22 = vld [vmem:[#allocation16 + $0xfa0] sm:$0xff] }
 0x3bc   :  { %5650 = vmatprep.subr.bf16.mxu1 %v8875_v27  ;;  %v2470_v23 = vld [vmem:[#allocation16 + $0xa8] sm:$0xff]  ;;  %v2945_v27 = vld [vmem:[#allocation16 + $0xf80] sm:$0xff]  ;;  %v8484_v24 = vcombine.low %v2474_v0, %v2478_v8 }
 0x3bd   :  { %v2438_v31 = vmax.f32 %v2430_v36, 0.0  ;;  %v10953_v44 = vpack.c.bf16 %v2437_v32, %v2437_v32  ;;  %v8477_v28 = vcombine.high %v2466_v21, %v2470_v23  ;;  %v2458_v33 = vld [vmem:[#allocation16 + $0x48] sm:$0xff]  ;;  %v8955_v36 = vcombine.high %v2945_v27, %v2949_v22  ;;  %v2941_v32 = vld [vmem:[#allocation16 + $0xf60] sm:$0xff] }
 0x3be   :  { %v2462_v34 = vld [vmem:[#allocation16 + $0x68] sm:$0xff]  ;;  %v8954_v25 = vcombine.low %v2945_v27, %v2949_v22 }
 0x3bf   :  { %v10949_v40 = vpack.c.bf16 %v2438_v31, %v2438_v31  ;;  %5651 = vmatpush1.bf16.msra.mxu1 %v8874_v37  ;;  %v2937_v37 = vld [vmem:[#allocation16 + $0xf40] sm:$0xff]  ;;  %v8469_v31 = vcombine.high %v2458_v33, %v2462_v34  ;;  %v2566_v1 = vld [vmem:[#allocation16 + $0x3a8] sm:$0xff] }
 0x3c0   :  { %5652 = vmatprep.subr.bf16.mxu1 %v8867_v30  ;;  %v8476_v30 = vcombine.low %v2466_v21, %v2470_v23  ;;  %v8947_v39 = vcombine.high %v2937_v37, %v2941_v32  ;;  %v8946_v47 = vcombine.low %v2937_v37, %v2941_v32  ;;  %v2558_v9 = vld [vmem:[#allocation16 + $0x368] sm:$0xff] }
 0x3c1   :  { %5635 = vmatprep.mubr.bf16.mxu0 %v10949_v40  ;;  %v2550_v27 = vld [vmem:[#allocation16 + $0x328] sm:$0xff] }
 0x3c2   :  { %5636 = vmatmul.mubr.bf16.vlgmr.msra.gmra.mxu0 %v10953_v44  ;;  %v2542_v37 = vld [vmem:[#allocation16 + $0x2e8] sm:$0xff] }
 0x3c3   :  { %5686 = vmatpush1.bf16.msra.mxu0 %v8516_v16  ;;  %5717 = vmatprep.mubr.bf16.mxu0 %v10894_v11  ;;  %v2929_v16 = vld [vmem:[#allocation16 + $0xf00] sm:$0xff] }
 0x3c4   :  { %5687 = vmatprep.subr.bf16.mxu0 %v8509_v45  ;;  %5653 = vmatpush1.bf16.msra.mxu1 %v8866_v46  ;;  %v2933_v45 = vld [vmem:[#allocation16 + $0xf20] sm:$0xff]  ;;  %v8468_v46 = vcombine.low %v2458_v33, %v2462_v34 }
 0x3c5   :  { %5654 = vmatprep.subr.bf16.mxu1 %v8859_v50  ;;  %v2570_v50 = vld [vmem:[#allocation16 + $0x3c8] sm:$0xff]  ;;  %v8939_v17 = vcombine.high %v2929_v16, %v2933_v45  ;;  %v8938_v61 = vcombine.low %v2929_v16, %v2933_v45 }
 0x3c6   :  { %v8581_v57 = vcombine.high %v2570_v50, %v2574_v49  ;;  %v2534_v16 = vld [vmem:[#allocation16 + $0x2a8] sm:$0xff] }
 0x3c7   :  { %5688 = vmatpush1.bf16.msra.mxu0 %v8508_v53  ;;  %v2921_v53 = vld [vmem:[#allocation16 + $0xec0] sm:$0xff] }
 0x3c8   :  { %5689 = vmatprep.subr.bf16.mxu0 %v8501_v18  ;;  %5655 = vmatpush1.bf16.msra.mxu1 %v8858_v41  ;;  %v2925_v18 = vld [vmem:[#allocation16 + $0xee0] sm:$0xff]  ;;  %v8460_v41 = vcombine.low %v2450_v35, %v2454_v42 }
 0x3c9   :  { %5656 = vmatprep.subr.bf16.mxu1 %v8851_v63  ;;  %v2562_v63 = vld [vmem:[#allocation16 + $0x388] sm:$0xff]  ;;  %v8931_v2 = vcombine.high %v2921_v53, %v2925_v18  ;;  %v8930_v8 = vcombine.low %v2921_v53, %v2925_v18 }
 0x3ca   :  { %v8573_v0 = vcombine.high %v2562_v63, %v2566_v1 }
 0x3cb   :  { %5690 = vmatpush1.bf16.msra.mxu0 %v8500_v3  ;;  %v2913_v3 = vld [vmem:[#allocation16 + $0xe80] sm:$0xff] }
 0x3cc   :  { %5691 = vmatprep.subr.bf16.mxu0 %v8493_v5  ;;  %5657 = vmatpush1.bf16.msra.mxu1 %v8850_v6  ;;  %v2917_v5 = vld [vmem:[#allocation16 + $0xea0] sm:$0xff]  ;;  %v8580_v6 = vcombine.low %v2570_v50, %v2574_v49  ;;  %v10968_v50 = vsub.s32 7, %v10287_v59  ;;  %v2522_v49 = vld [vmem:[#allocation16 + $0x248] sm:$0xff] }
 0x3cd   :  { %5658 = vmatprep.subr.bf16.mxu1 %v8843_v43  ;;  %v2554_v43 = vld [vmem:[#allocation16 + $0x348] sm:$0xff]  ;;  %v8923_v13 = vcombine.high %v2913_v3, %v2917_v5  ;;  %v8922_v23 = vcombine.low %v2913_v3, %v2917_v5 }
 0x3ce   :  { %v8565_v21 = vcombine.high %v2554_v43, %v2558_v9 }
 0x3cf   :  { %5692 = vmatpush1.bf16.msra.mxu0 %v8492_v51  ;;  %v2905_v51 = vld [vmem:[#allocation16 + $0xe40] sm:$0xff] }
 0x3d0   :  { %5693 = vmatprep.subr.bf16.mxu0 %v8485_v52  ;;  %5659 = vmatpush1.bf16.msra.mxu1 %v8842_v55  ;;  %v2909_v52 = vld [vmem:[#allocation16 + $0xe60] sm:$0xff]  ;;  %v8572_v55 = vcombine.low %v2562_v63, %v2566_v1  ;;  %v2514_v1 = vld [vmem:[#allocation16 + $0x208] sm:$0xff] }
 0x3d1   :  { %5660 = vmatprep.subr.bf16.mxu1 %v8963_v26  ;;  %v2546_v26 = vld [vmem:[#allocation16 + $0x308] sm:$0xff]  ;;  %v8915_v22 = vcombine.high %v2905_v51, %v2909_v52  ;;  %v8914_v34 = vcombine.low %v2905_v51, %v2909_v52 }
 0x3d2   :  { %v8557_v33 = vcombine.high %v2546_v26, %v2550_v27  ;;  %v2762_v51 = vld [vmem:[#allocation16 + $0x9c8] sm:$0xff] }
 0x3d3   :  { %5694 = vmatpush1.bf16.msra.mxu0 %v8484_v24  ;;  %v2897_v24 = vld [vmem:[#allocation16 + $0xe00] sm:$0xff]  ;;  %v2766_v52 = vld [vmem:[#allocation16 + $0x9e8] sm:$0xff] }
 0x3d4   :  { %5695 = vmatprep.subr.bf16.mxu0 %v8477_v28  ;;  %5661 = vmatpush2.bf16.msra.mxu1 %v8962_v29  ;;  %v2901_v28 = vld [vmem:[#allocation16 + $0xe20] sm:$0xff]  ;;  %v8564_v29 = vcombine.low %v2554_v43, %v2558_v9 }
 0x3d5   :  { %5662 = vmatprep.subr.bf16.mxu1 %v8955_v36  ;;  %v2538_v36 = vld [vmem:[#allocation16 + $0x2c8] sm:$0xff]  ;;  %v8907_v32 = vcombine.high %v2897_v24, %v2901_v28  ;;  %v8906_v42 = vcombine.low %v2897_v24, %v2901_v28 }
 0x3d6   :  { %v8549_v35 = vcombine.high %v2538_v36, %v2542_v37  ;;  %v2758_v24 = vld [vmem:[#allocation16 + $0x9a8] sm:$0xff] }
 0x3d7   :  { %5696 = vmatpush1.bf16.msra.mxu0 %v8476_v30  ;;  %v10958_v30 = vld [vmem:[#allocation16 + $0x5c8] sm:$0xff] }
 0x3d8   :  { %5697 = vmatprep.subr.bf16.mxu0 %v8469_v31  ;;  %5663 = vmatpush2.bf16.msra.mxu1 %v8954_v25  ;;  %v10960_v31 = vld [vmem:[#allocation16 + $0x5e8] sm:$0xff]  ;;  %v8556_v25 = vcombine.low %v2546_v26, %v2550_v27  ;;  %v8773_v26 = vcombine.high %v2762_v51, %v2766_v52 }
 0x3d9   :  { %5664 = vmatprep.subr.bf16.mxu1 %v8947_v39  ;;  %v2530_v39 = vld [vmem:[#allocation16 + $0x288] sm:$0xff]  ;;  %v8645_v45 = vcombine.high %v10958_v30, %v10960_v31 }
 0x3da   :  { %v8540_v18 = vcombine.low %v2530_v39, %v2534_v16  ;;  %v2626_v27 = vld [vmem:[#allocation16 + $0x588] sm:$0xff] }
 0x3db   :  { %5698 = vmatpush1.bf16.msra.mxu0 %v8468_v46  ;;  %v8548_v46 = vcombine.low %v2538_v36, %v2542_v37  ;;  %v2618_v36 = vld [vmem:[#allocation16 + $0x548] sm:$0xff] }
 0x3dc   :  { %5699 = vmatprep.subr.bf16.mxu0 %v8461_v15  ;;  %5665 = vmatpush2.bf16.msra.mxu1 %v8946_v47  ;;  %v10965_v15 = vsub.s32 6, %v10287_v59  ;;  %v8541_v47 = vcombine.high %v2530_v39, %v2534_v16  ;;  %v2366_v59 = vrot.slane %v10874_v38, %v10968_v50 }
 0x3dd   :  { %5666 = vmatprep.subr.bf16.mxu1 %v8939_v17  ;;  %v2526_v17 = vld [vmem:[#allocation16 + $0x268] sm:$0xff] }
 0x3de   :  { %v2362_v53 = vrot.slane %v10874_v38, %v10965_v15  ;;  %v2412_v63 = vrot.slane %v10876_v48, %v10965_v15 }
 0x3df   :  { %5700 = vmatpush1.bf16.msra.mxu0 %v8460_v41 }
 0x3e0   :  { %5701 = vmatprep.subr.bf16.mxu0 %v8581_v57  ;;  %5667 = vmatpush2.bf16.msra.mxu1 %v8938_v61  ;;  %v8533_v57 = vcombine.high %v2522_v49, %v2526_v17 }
 0x3e1   :  { %5668 = vmatprep.subr.bf16.mxu1 %v8931_v2  ;;  %v2518_v2 = vld [vmem:[#allocation16 + $0x228] sm:$0xff] }
 0x3e3   :  { %5702 = vmatpush2.bf16.msra.mxu0 %v8580_v6 }
 0x3e4   :  { %5703 = vmatprep.subr.bf16.mxu0 %v8573_v0  ;;  %5669 = vmatpush2.bf16.msra.mxu1 %v8930_v8  ;;  %v2416_v0 = vrot.slane %v10876_v48, %v10968_v50  ;;  %v8532_v8 = vcombine.low %v2522_v49, %v2526_v17  ;;  %v2754_v48 = vld [vmem:[#allocation16 + $0x988] sm:$0xff] }
 0x3e5   :  { %5670 = vmatprep.subr.bf16.mxu1 %v8923_v13  ;;  %v2742_v49 = vld [vmem:[#allocation16 + $0x928] sm:$0xff] }
 0x3e7   :  { %5704 = vmatpush2.bf16.msra.mxu0 %v8572_v55 }
 0x3e8   :  { %5705 = vmatprep.subr.bf16.mxu0 %v8565_v21  ;;  %5671 = vmatpush2.bf16.msra.mxu1 %v8922_v23  ;;  %v8524_v21 = vcombine.low %v2514_v1, %v2518_v2 }
 0x3e9   :  { %5672 = vmatprep.subr.bf16.mxu1 %v8915_v22  ;;  %v2630_v22 = vld [vmem:[#allocation16 + $0x5a8] sm:$0xff] }
 0x3ea   :  { %v8637_v37 = vcombine.high %v2626_v27, %v2630_v22  ;;  %v8636_v39 = vcombine.low %v2626_v27, %v2630_v22  ;;  %v2578_v22 = vld [vmem:[#allocation16 + $0x408] sm:$0xff] }
 0x3eb   :  { %5706 = vmatpush2.bf16.msra.mxu0 %v8564_v29  ;;  %v8644_v29 = vcombine.low %v10958_v30, %v10960_v31  ;;  %v8764_v30 = vcombine.low %v2754_v48, %v2758_v24 }
 0x3ec   :  { %5707 = vmatprep.subr.bf16.mxu0 %v8557_v33  ;;  %5673 = vmatpush2.bf16.msra.mxu1 %v8914_v34  ;;  %v8772_v33 = vcombine.low %v2762_v51, %v2766_v52  ;;  %v2586_v52 = vld [vmem:[#allocation16 + $0x448] sm:$0xff] }
 0x3ed   :  { %5674 = vmatprep.subr.bf16.mxu1 %v8907_v32  ;;  %v8765_v32 = vcombine.high %v2754_v48, %v2758_v24  ;;  %v2582_v48 = vld [vmem:[#allocation16 + $0x428] sm:$0xff] }
 0x3ee   :  { %v2706_v24 = vld [vmem:[#allocation16 + $0x808] sm:$0xff] }
 0x3ef   :  { %5708 = vmatpush2.bf16.msra.mxu0 %v8556_v25  ;;  %v2622_v25 = vld [vmem:[#allocation16 + $0x568] sm:$0xff] }
 0x3f0   :  { %5709 = vmatprep.subr.bf16.mxu0 %v8549_v35  ;;  %5675 = vmatpush2.bf16.msra.mxu1 %v8906_v42  ;;  %v2746_v35 = vld [vmem:[#allocation16 + $0x948] sm:$0xff]  ;;  %v8629_v31 = vcombine.high %v2618_v36, %v2622_v25  ;;  %v8628_v17 = vcombine.low %v2618_v36, %v2622_v25 }
 0x3f1   :  { %5726 = vmatprep.subr.bf16.mxu1 %v8645_v45  ;;  %v2750_v42 = vld [vmem:[#allocation16 + $0x968] sm:$0xff] }
 0x3f2   :  { %v8757_v16 = vcombine.high %v2746_v35, %v2750_v42  ;;  %v2610_v45 = vld [vmem:[#allocation16 + $0x508] sm:$0xff] }
 0x3f3   :  { %5710 = vmatpush2.bf16.msra.mxu0 %v8548_v46  ;;  %v2614_v46 = vld [vmem:[#allocation16 + $0x528] sm:$0xff] }
 0x3f4   :  { %v2285_v41 = vpop.f32.mrf.mxu1  ;;  %5711 = vmatprep.subr.bf16.mxu0 %v8541_v47  ;;  %v2738_v47 = vld [vmem:[#allocation16 + $0x908] sm:$0xff] }
 0x3f5   :  { %v2327_v61 = vadd.f32 %v10939_v4, %v2285_v41  ;;  %v8525_v4 = vcombine.high %v2514_v1, %v2518_v2  ;;  %v8749_v41 = vcombine.high %v2738_v47, %v2742_v49  ;;  %v8620_v1 = vcombine.low %v2610_v45, %v2614_v46  ;;  %v2698_v25 = vld [vmem:[#allocation16 + $0x7c8] sm:$0xff] }
 0x3f6   :  { %v2287_v3 = vpop.f32.mrf.mxu1  ;;  %v8748_v2 = vcombine.low %v2738_v47, %v2742_v49  ;;  %v2694_v47 = vld [vmem:[#allocation16 + $0x7a8] sm:$0xff] }
 0x3f7   :  { %v2381_v5 = vmul.f32 %v2362_v53, %v2327_v61  ;;  %v2329_v6 = vadd.f32 %v10945_v19, %v2287_v3  ;;  %5712 = vmatpush2.bf16.msra.mxu0 %v8540_v18  ;;  %v8756_v53 = vcombine.low %v2746_v35, %v2750_v42  ;;  %v8621_v18 = vcombine.high %v2610_v45, %v2614_v46  ;;  %v2606_v61 = vld [vmem:[#allocation16 + $0x4e8] sm:$0xff] }
 0x3f8   :  { %v2289_v43 = vpop.f32.mrf.mxu1  ;;  %5713 = vmatprep.subr.bf16.mxu0 %v8533_v57  ;;  %v2602_v57 = vld [vmem:[#allocation16 + $0x4c8] sm:$0xff] }
 0x3f9   :  { %v2431_v9 = vadd.f32 %v2412_v63, %v2381_v5  ;;  %v2382_v13 = vmul.f32 %v2366_v59, %v2329_v6  ;;  %v2730_v63 = vld [vmem:[#allocation16 + $0x8c8] sm:$0xff]  ;;  %v8613_v3 = vcombine.high %v2602_v57, %v2606_v61 }
 0x3fa   :  { %v2290_v55 = vpop.f32.mrf.mxu1  ;;  %v2734_v59 = vld [vmem:[#allocation16 + $0x8e8] sm:$0xff] }
 0x3fb   :  { %v2432_v38 = vadd.f32 %v2416_v0, %v2382_v13  ;;  %5714 = vmatpush2.bf16.msra.mxu0 %v8532_v8  ;;  %v2439_v23 = vmax.f32 %v2431_v9, 0.0  ;;  %v8741_v5 = vcombine.high %v2730_v63, %v2734_v59  ;;  %v2594_v6 = vld [vmem:[#allocation16 + $0x488] sm:$0xff]  ;;  %v8740_v9 = vcombine.low %v2730_v63, %v2734_v59 }
 0x3fc   :  { %5715 = vmatprep.subr.bf16.mxu0 %v8525_v4  ;;  %v2598_v0 = vld [vmem:[#allocation16 + $0x4a8] sm:$0xff]  ;;  %v8612_v4 = vcombine.low %v2602_v57, %v2606_v61 }
 0x3fd   :  { %v2440_v19 = vmax.f32 %v2432_v38, 0.0  ;;  %v10984_v34 = vpack.c.bf16 %v2439_v23, %v2439_v23  ;;  %v2722_v8 = vld [vmem:[#allocation16 + $0x888] sm:$0xff]  ;;  %v8605_v13 = vcombine.high %v2594_v6, %v2598_v0  ;;  %v8604_v23 = vcombine.low %v2594_v6, %v2598_v0 }
 0x3fe   :  { %v2726_v43 = vld [vmem:[#allocation16 + $0x8a8] sm:$0xff] }
 0x3ff   :  { %v10980_v28 = vpack.c.bf16 %v2440_v19, %v2440_v19  ;;  %5716 = vmatpush2.bf16.msra.mxu0 %v8524_v21  ;;  %v8733_v51 = vcombine.high %v2722_v8, %v2726_v43  ;;  %v2590_v55 = vld [vmem:[#allocation16 + $0x468] sm:$0xff] }
 0x400   :  { %5767 = vmatprep.subr.bf16.mxu0 %v8773_v26  ;;  %v2714_v38 = vld [vmem:[#allocation16 + $0x848] sm:$0xff]  ;;  %v8732_v26 = vcombine.low %v2722_v8, %v2726_v43  ;;  %v8597_v19 = vcombine.high %v2586_v52, %v2590_v55 }
 0x401   :  { %5676 = vmatprep.mubr.bf16.mxu1 %v10980_v28  ;;  %v2718_v21 = vld [vmem:[#allocation16 + $0x868] sm:$0xff] }
 0x402   :  { %5718 = vmatmul.mubr.bf16.vlgmr.msra.gmra.mxu0 %v10896_v12  ;;  %5677 = vmatmul.mubr.bf16.vlgmr.msra.gmra.mxu1 %v10984_v34  ;;  %v8725_v27 = vcombine.high %v2714_v38, %v2718_v21  ;;  %v8724_v36 = vcombine.low %v2714_v38, %v2718_v21  ;;  %v2702_v35 = vld [vmem:[#allocation16 + $0x7e8] sm:$0xff] }
 0x403   :  { %5727 = vmatpush1.bf16.msra.mxu1 %v8644_v29  ;;  %5768 = vmatpush1.bf16.msra.mxu0 %v8772_v33  ;;  %v2710_v29 = vld [vmem:[#allocation16 + $0x828] sm:$0xff]  ;;  %v8596_v33 = vcombine.low %v2586_v52, %v2590_v55 }
 0x404   :  { %5799 = vmatprep.mubr.bf16.mxu0 %v10949_v40  ;;  %5758 = vmatprep.mubr.bf16.mxu1 %v10922_v54  ;;  %v2826_v42 = vld [vmem:[#allocation16 + $0xbc8] sm:$0xff] }
 0x405   :  { %5728 = vmatprep.subr.bf16.mxu1 %v8637_v37  ;;  %5769 = vmatprep.subr.bf16.mxu0 %v8765_v32  ;;  %v8589_v37 = vcombine.high %v2578_v22, %v2582_v48  ;;  %v8717_v32 = vcombine.high %v2706_v24, %v2710_v29  ;;  %v2690_v46 = vld [vmem:[#allocation16 + $0x788] sm:$0xff] }
 0x406   :  { %v2818_v49 = vld [vmem:[#allocation16 + $0xb88] sm:$0xff] }
 0x407   :  { %5729 = vmatpush1.bf16.msra.mxu1 %v8636_v39  ;;  %5770 = vmatpush1.bf16.msra.mxu0 %v8764_v30  ;;  %v2830_v39 = vld [vmem:[#allocation16 + $0xbe8] sm:$0xff]  ;;  %v8588_v30 = vcombine.low %v2578_v22, %v2582_v48 }
 0x408   :  { %5730 = vmatprep.subr.bf16.mxu1 %v8629_v31  ;;  %5771 = vmatprep.subr.bf16.mxu0 %v8757_v16  ;;  %v8716_v31 = vcombine.low %v2706_v24, %v2710_v29  ;;  %v8709_v16 = vcombine.high %v2698_v25, %v2702_v35  ;;  %v8837_v45 = vcombine.high %v2826_v42, %v2830_v39  ;;  %v2682_v61 = vld [vmem:[#allocation16 + $0x748] sm:$0xff] }
 0x409   :  { %v2686_v63 = vld [vmem:[#allocation16 + $0x768] sm:$0xff] }
 0x40a   :  { %v2810_v59 = vld [vmem:[#allocation16 + $0xb48] sm:$0xff] }
 0x40b   :  { %5731 = vmatpush1.bf16.msra.mxu1 %v8628_v17  ;;  %5772 = vmatpush1.bf16.msra.mxu0 %v8756_v53  ;;  %v2822_v17 = vld [vmem:[#allocation16 + $0xba8] sm:$0xff]  ;;  %v8708_v53 = vcombine.low %v2698_v25, %v2702_v35 }
 0x40c   :  { %5732 = vmatprep.subr.bf16.mxu1 %v8621_v18  ;;  %5773 = vmatprep.subr.bf16.mxu0 %v8749_v41  ;;  %v8836_v18 = vcombine.low %v2826_v42, %v2830_v39  ;;  %v8701_v41 = vcombine.high %v2690_v46, %v2694_v47  ;;  %v8829_v57 = vcombine.high %v2818_v49, %v2822_v17  ;;  %v2674_v0 = vld [vmem:[#allocation16 + $0x708] sm:$0xff] }
 0x40d   :  { %v2678_v8 = vld [vmem:[#allocation16 + $0x728] sm:$0xff] }
 0x40e   :  { %v2802_v43 = vld [vmem:[#allocation16 + $0xb08] sm:$0xff] }
 0x40f   :  { %5733 = vmatpush1.bf16.msra.mxu1 %v8620_v1  ;;  %5774 = vmatpush1.bf16.msra.mxu0 %v8748_v2  ;;  %v2814_v1 = vld [vmem:[#allocation16 + $0xb68] sm:$0xff]  ;;  %v8700_v2 = vcombine.low %v2690_v46, %v2694_v47 }
 0x410   :  { %5734 = vmatprep.subr.bf16.mxu1 %v8613_v3  ;;  %5775 = vmatprep.subr.bf16.mxu0 %v8741_v5  ;;  %v8828_v3 = vcombine.low %v2818_v49, %v2822_v17  ;;  %v8693_v5 = vcombine.high %v2682_v61, %v2686_v63  ;;  %v8821_v6 = vcombine.high %v2810_v59, %v2814_v1  ;;  %v2666_v55 = vld [vmem:[#allocation16 + $0x6c8] sm:$0xff] }
 0x411   :  { %v2670_v38 = vld [vmem:[#allocation16 + $0x6e8] sm:$0xff] }
 0x412   :  { %v2794_v21 = vld [vmem:[#allocation16 + $0xac8] sm:$0xff] }
 0x413   :  { %5735 = vmatpush1.bf16.msra.mxu1 %v8612_v4  ;;  %5776 = vmatpush1.bf16.msra.mxu0 %v8740_v9  ;;  %v2806_v4 = vld [vmem:[#allocation16 + $0xb28] sm:$0xff]  ;;  %v8692_v9 = vcombine.low %v2682_v61, %v2686_v63 }
 0x414   :  { %5736 = vmatprep.subr.bf16.mxu1 %v8605_v13  ;;  %5777 = vmatprep.subr.bf16.mxu0 %v8733_v51  ;;  %v8820_v13 = vcombine.low %v2810_v59, %v2814_v1  ;;  %v8685_v51 = vcombine.high %v2674_v0, %v2678_v8  ;;  %v8813_v52 = vcombine.high %v2802_v43, %v2806_v4  ;;  %v2658_v48 = vld [vmem:[#allocation16 + $0x688] sm:$0xff] }
 0x415   :  { %v2662_v24 = vld [vmem:[#allocation16 + $0x6a8] sm:$0xff] }
 0x416   :  { %v2786_v29 = vld [vmem:[#allocation16 + $0xa88] sm:$0xff] }
 0x417   :  { %5737 = vmatpush1.bf16.msra.mxu1 %v8604_v23  ;;  %5778 = vmatpush1.bf16.msra.mxu0 %v8732_v26  ;;  %v2798_v23 = vld [vmem:[#allocation16 + $0xae8] sm:$0xff]  ;;  %v8684_v26 = vcombine.low %v2674_v0, %v2678_v8  ;;  %v2511_v0 = vld [vmem:[#allocation16 + $0x1f0] sm:$0xff] }
 0x418   :  { %5738 = vmatprep.subr.bf16.mxu1 %v8597_v19  ;;  %5779 = vmatprep.subr.bf16.mxu0 %v8725_v27  ;;  %v8812_v19 = vcombine.low %v2802_v43, %v2806_v4  ;;  %v8677_v27 = vcombine.high %v2666_v55, %v2670_v38  ;;  %v8805_v22 = vcombine.high %v2794_v21, %v2798_v23  ;;  %v2650_v35 = vld [vmem:[#allocation16 + $0x648] sm:$0xff] }
 0x419   :  { %v2654_v42 = vld [vmem:[#allocation16 + $0x668] sm:$0xff] }
 0x41a   :  { %v2778_v39 = vld [vmem:[#allocation16 + $0xa48] sm:$0xff]  ;;  %v8661_v47 = vcombine.high %v2650_v35, %v2654_v42  ;;  %v8660_v61 = vcombine.low %v2650_v35, %v2654_v42  ;;  %v2487_v35 = vld [vmem:[#allocation16 + $0x130] sm:$0xff] }
 0x41b   :  { %5739 = vmatpush1.bf16.msra.mxu1 %v8596_v33  ;;  %5780 = vmatpush1.bf16.msra.mxu0 %v8724_v36  ;;  %v2790_v33 = vld [vmem:[#allocation16 + $0xaa8] sm:$0xff]  ;;  %v8676_v36 = vcombine.low %v2666_v55, %v2670_v38  ;;  %v2503_v55 = vld [vmem:[#allocation16 + $0x1b0] sm:$0xff] }
 0x41c   :  { %5740 = vmatprep.subr.bf16.mxu1 %v8589_v37  ;;  %5781 = vmatprep.subr.bf16.mxu0 %v8717_v32  ;;  %v8804_v37 = vcombine.low %v2794_v21, %v2798_v23  ;;  %v8669_v32 = vcombine.high %v2658_v48, %v2662_v24  ;;  %v8797_v25 = vcombine.high %v2786_v29, %v2790_v33  ;;  %v2642_v17 = vld [vmem:[#allocation16 + $0x608] sm:$0xff] }
 0x41f   :  { %5741 = vmatpush1.bf16.msra.mxu1 %v8588_v30  ;;  %5782 = vmatpush1.bf16.msra.mxu0 %v8716_v31  ;;  %v2782_v30 = vld [vmem:[#allocation16 + $0xa68] sm:$0xff] }
 0x420   :  { %5742 = vmatprep.subr.bf16.mxu1 %v8709_v16  ;;  %5783 = vmatprep.subr.bf16.mxu0 %v8837_v45  ;;  %v8668_v16 = vcombine.low %v2658_v48, %v2662_v24  ;;  %v8796_v45 = vcombine.low %v2786_v29, %v2790_v33  ;;  %v8789_v49 = vcombine.high %v2778_v39, %v2782_v30  ;;  %v2495_v48 = vld [vmem:[#allocation16 + $0x170] sm:$0xff] }
 0x421   :  { %v8788_v63 = vcombine.low %v2778_v39, %v2782_v30 }
 0x423   :  { %5743 = vmatpush2.bf16.msra.mxu1 %v8708_v53  ;;  %5784 = vmatpush2.bf16.msra.mxu0 %v8836_v18  ;;  %v2646_v53 = vld [vmem:[#allocation16 + $0x628] sm:$0xff] }
 0x424   :  { %5744 = vmatprep.subr.bf16.mxu1 %v8701_v41  ;;  %5785 = vmatprep.subr.bf16.mxu0 %v8829_v57  ;;  %v2770_v18 = vld [vmem:[#allocation16 + $0xa08] sm:$0xff]  ;;  %v8653_v1 = vcombine.high %v2642_v17, %v2646_v53  ;;  %v8652_v8 = vcombine.low %v2642_v17, %v2646_v53  ;;  %v2479_v17 = vld [vmem:[#allocation16 + $0xf0] sm:$0xff] }
 0x425   :  { %v2774_v41 = vld [vmem:[#allocation16 + $0xa28] sm:$0xff] }
 0x426   :  { %v8780_v43 = vcombine.low %v2770_v18, %v2774_v41 }
 0x427   :  { %5745 = vmatpush2.bf16.msra.mxu1 %v8700_v2  ;;  %5786 = vmatpush2.bf16.msra.mxu0 %v8828_v3  ;;  %v8781_v2 = vcombine.high %v2770_v18, %v2774_v41  ;;  %v2890_v3 = vld [vmem:[#allocation16 + $0xdc8] sm:$0xff] }
 0x428   :  { %5746 = vmatprep.subr.bf16.mxu1 %v8693_v5  ;;  %5787 = vmatprep.subr.bf16.mxu0 %v8821_v6  ;;  %v2894_v5 = vld [vmem:[#allocation16 + $0xde8] sm:$0xff]  ;;  %v2507_v6 = vld [vmem:[#allocation16 + $0x1d0] sm:$0xff] }
 0x429   :  { %v8901_v4 = vcombine.high %v2890_v3, %v2894_v5  ;;  %v8900_v38 = vcombine.low %v2890_v3, %v2894_v5  ;;  %v8518_v21 = vcombine.low %v2507_v6, %v2511_v0 }
 0x42b   :  { %5747 = vmatpush2.bf16.msra.mxu1 %v8692_v9  ;;  %5788 = vmatpush2.bf16.msra.mxu0 %v8820_v13  ;;  %v8519_v9 = vcombine.high %v2507_v6, %v2511_v0  ;;  %v2882_v13 = vld [vmem:[#allocation16 + $0xd88] sm:$0xff] }
 0x42c   :  { %5748 = vmatprep.subr.bf16.mxu1 %v8685_v51  ;;  %5789 = vmatprep.subr.bf16.mxu0 %v8813_v52  ;;  %v2886_v51 = vld [vmem:[#allocation16 + $0xda8] sm:$0xff]  ;;  %v2499_v52 = vld [vmem:[#allocation16 + $0x190] sm:$0xff] }
 0x42d   :  { %v8893_v23 = vcombine.high %v2882_v13, %v2886_v51  ;;  %v8892_v24 = vcombine.low %v2882_v13, %v2886_v51  ;;  %v8510_v29 = vcombine.low %v2499_v52, %v2503_v55  ;;  %v2842_v0 = vld [vmem:[#allocation16 + $0xc48] sm:$0xff] }
 0x42f   :  { %5749 = vmatpush2.bf16.msra.mxu1 %v8684_v26  ;;  %5790 = vmatpush2.bf16.msra.mxu0 %v8812_v19  ;;  %v8511_v26 = vcombine.high %v2499_v52, %v2503_v55  ;;  %v2874_v19 = vld [vmem:[#allocation16 + $0xd48] sm:$0xff] }
 0x430   :  { %5750 = vmatprep.subr.bf16.mxu1 %v8677_v27  ;;  %5791 = vmatprep.subr.bf16.mxu0 %v8805_v22  ;;  %v2878_v27 = vld [vmem:[#allocation16 + $0xd68] sm:$0xff]  ;;  %v2491_v22 = vld [vmem:[#allocation16 + $0x150] sm:$0xff] }
 0x431   :  { %v8885_v33 = vcombine.high %v2874_v19, %v2878_v27  ;;  %v8884_v42 = vcombine.low %v2874_v19, %v2878_v27  ;;  %v8502_v39 = vcombine.low %v2491_v22, %v2495_v48  ;;  %v2834_v55 = vld [vmem:[#allocation16 + $0xc08] sm:$0xff] }
 0x432   :  { %v10991_v31 = vpop.f32.mrf.mxu0 }
 0x433   :  { %5751 = vmatpush2.bf16.msra.mxu1 %v8676_v36  ;;  %5792 = vmatpush2.bf16.msra.mxu0 %v8804_v37  ;;  %v8503_v36 = vcombine.high %v2491_v22, %v2495_v48  ;;  %v2866_v37 = vld [vmem:[#allocation16 + $0xd08] sm:$0xff] }
 0x434   :  { %v10993_v46 = vpop.f32.mrf.mxu0  ;;  %5752 = vmatprep.subr.bf16.mxu1 %v8669_v32  ;;  %5793 = vmatprep.subr.bf16.mxu0 %v8797_v25  ;;  %v2870_v32 = vld [vmem:[#allocation16 + $0xd28] sm:$0xff]  ;;  %v2483_v25 = vld [vmem:[#allocation16 + $0x110] sm:$0xff] }
 0x435   :  { %v8877_v30 = vcombine.high %v2866_v37, %v2870_v32  ;;  %v8876_v53 = vcombine.low %v2866_v37, %v2870_v32  ;;  %v8494_v18 = vcombine.low %v2483_v25, %v2487_v35  ;;  %v2954_v48 = vld [vmem:[#allocation16 + $0xfc8] sm:$0xff] }
 0x436   :  { %v5559_v57 = vpop.f32.mrf.mxu0 }
 0x437   :  { %5753 = vmatpush2.bf16.msra.mxu1 %v8668_v16  ;;  %5794 = vmatpush2.bf16.msra.mxu0 %v8796_v45  ;;  %v8495_v16 = vcombine.high %v2483_v25, %v2487_v35  ;;  %v2858_v45 = vld [vmem:[#allocation16 + $0xcc8] sm:$0xff] }
 0x438   :  { %v5560_v59 = vpop.f32.mrf.mxu0  ;;  %5754 = vmatprep.subr.bf16.mxu1 %v8661_v47  ;;  %5795 = vmatprep.subr.bf16.mxu0 %v8789_v49  ;;  %v2862_v47 = vld [vmem:[#allocation16 + $0xce8] sm:$0xff]  ;;  %v2475_v49 = vld [vmem:[#allocation16 + $0xd0] sm:$0xff] }
 0x439   :  { %v8869_v41 = vcombine.high %v2858_v45, %v2862_v47  ;;  %v8487_v57 = vcombine.high %v2475_v49, %v2479_v17  ;;  %v2467_v59 = vld [vmem:[#allocation16 + $0x90] sm:$0xff]  ;;  %v8486_v3 = vcombine.low %v2475_v49, %v2479_v17  ;;  %v2946_v35 = vld [vmem:[#allocation16 + $0xf88] sm:$0xff] }
 0x43a   :  { %v2938_v17 = vld [vmem:[#allocation16 + $0xf48] sm:$0xff] }
 0x43b   :  { %5755 = vmatpush2.bf16.msra.mxu1 %v8660_v61  ;;  %5796 = vmatpush2.bf16.msra.mxu0 %v8788_v63  ;;  %v2850_v61 = vld [vmem:[#allocation16 + $0xc88] sm:$0xff] }
 0x43c   :  { %5756 = vmatprep.subr.bf16.mxu1 %v8653_v1  ;;  %5797 = vmatprep.subr.bf16.mxu0 %v8781_v2  ;;  %v2854_v63 = vld [vmem:[#allocation16 + $0xca8] sm:$0xff]  ;;  %v2471_v1 = vld [vmem:[#allocation16 + $0xb0] sm:$0xff]  ;;  %v8868_v2 = vcombine.low %v2858_v45, %v2862_v47 }
 0x43d   :  { %v8861_v5 = vcombine.high %v2850_v61, %v2854_v63  ;;  %v8479_v6 = vcombine.high %v2467_v59, %v2471_v1  ;;  %v8478_v13 = vcombine.low %v2467_v59, %v2471_v1  ;;  %v2930_v1 = vld [vmem:[#allocation16 + $0xf08] sm:$0xff] }
 0x43f   :  { %5757 = vmatpush2.bf16.msra.mxu1 %v8652_v8  ;;  %5798 = vmatpush2.bf16.msra.mxu0 %v8780_v43  ;;  %v2846_v8 = vld [vmem:[#allocation16 + $0xc68] sm:$0xff]  ;;  %v2459_v43 = vld [vmem:[#allocation16 + $0x50] sm:$0xff] }
 0x440   :  { %5808 = vmatprep.subr.bf16.mxu1 %v8901_v4  ;;  %5849 = vmatprep.subr.bf16.mxu0 %v8519_v9  ;;  %v2463_v4 = vld [vmem:[#allocation16 + $0x70] sm:$0xff]  ;;  %v8860_v9 = vcombine.low %v2850_v61, %v2854_v63  ;;  %v8853_v51 = vcombine.high %v2842_v0, %v2846_v8 }
 0x441   :  { %v8471_v52 = vcombine.high %v2459_v43, %v2463_v4  ;;  %v8470_v19 = vcombine.low %v2459_v43, %v2463_v4  ;;  %v2922_v4 = vld [vmem:[#allocation16 + $0xec8] sm:$0xff] }
 0x442   :  { %5759 = vmatmul.mubr.bf16.vlgmr.msra.gmra.mxu1 %v10927_v56  ;;  %5800 = vmatmul.mubr.bf16.vlgmr.msra.gmra.mxu0 %v10953_v44 }
 0x443   :  { %5809 = vmatpush1.bf16.msra.mxu1 %v8900_v38  ;;  %5840 = vmatprep.mubr.bf16.mxu1 %v10980_v28  ;;  %v2838_v38 = vld [vmem:[#allocation16 + $0xc28] sm:$0xff] }
 0x444   :  { %5850 = vmatpush1.bf16.msra.mxu0 %v8518_v21  ;;  %5881 = vmatprep.mubr.bf16.mxu0 %v10894_v11  ;;  %v2451_v21 = vld [vmem:[#allocation16 + $0x10] sm:$0xff]  ;;  %v8845_v27 = vcombine.high %v2834_v55, %v2838_v38 }
 0x445   :  { %5810 = vmatprep.subr.bf16.mxu1 %v8893_v23  ;;  %5851 = vmatprep.subr.bf16.mxu0 %v8511_v26  ;;  %v2455_v23 = vld [vmem:[#allocation16 + $0x30] sm:$0xff]  ;;  %v8852_v26 = vcombine.low %v2842_v0, %v2846_v8 }
 0x446   :  { %v8463_v22 = vcombine.high %v2451_v21, %v2455_v23  ;;  %v8462_v37 = vcombine.low %v2451_v21, %v2455_v23  ;;  %v2914_v23 = vld [vmem:[#allocation16 + $0xe88] sm:$0xff] }
 0x447   :  { %5811 = vmatpush1.bf16.msra.mxu1 %v8892_v24  ;;  %v2958_v24 = vld [vmem:[#allocation16 + $0xfe8] sm:$0xff] }
 0x448   :  { %5852 = vmatpush1.bf16.msra.mxu0 %v8510_v29  ;;  %5812 = vmatprep.subr.bf16.mxu1 %v8885_v33  ;;  %v2571_v29 = vld [vmem:[#allocation16 + $0x3d0] sm:$0xff]  ;;  %v8965_v32 = vcombine.high %v2954_v48, %v2958_v24 }
 0x449   :  { %5853 = vmatprep.subr.bf16.mxu0 %v8503_v36  ;;  %v2575_v33 = vld [vmem:[#allocation16 + $0x3f0] sm:$0xff]  ;;  %v8844_v36 = vcombine.low %v2834_v55, %v2838_v38 }
 0x44a   :  { %v8583_v25 = vcombine.high %v2571_v29, %v2575_v33  ;;  %v8582_v45 = vcombine.low %v2571_v29, %v2575_v33  ;;  %v2906_v33 = vld [vmem:[#allocation16 + $0xe48] sm:$0xff] }
 0x44b   :  { %5813 = vmatpush1.bf16.msra.mxu1 %v8884_v42  ;;  %v2950_v42 = vld [vmem:[#allocation16 + $0xfa8] sm:$0xff] }
 0x44c   :  { %5854 = vmatpush1.bf16.msra.mxu0 %v8502_v39  ;;  %5814 = vmatprep.subr.bf16.mxu1 %v8877_v30  ;;  %v2563_v39 = vld [vmem:[#allocation16 + $0x390] sm:$0xff]  ;;  %v8957_v47 = vcombine.high %v2946_v35, %v2950_v42 }
 0x44d   :  { %5855 = vmatprep.subr.bf16.mxu0 %v8495_v16  ;;  %v2567_v30 = vld [vmem:[#allocation16 + $0x3b0] sm:$0xff]  ;;  %v8964_v16 = vcombine.low %v2954_v48, %v2958_v24 }
 0x44e   :  { %v8575_v49 = vcombine.high %v2563_v39, %v2567_v30  ;;  %v8574_v61 = vcombine.low %v2563_v39, %v2567_v30 }
 0x44f   :  { %5815 = vmatpush1.bf16.msra.mxu1 %v8876_v53  ;;  %v2942_v53 = vld [vmem:[#allocation16 + $0xf68] sm:$0xff] }
 0x450   :  { %5856 = vmatpush1.bf16.msra.mxu0 %v8494_v18  ;;  %5816 = vmatprep.subr.bf16.mxu1 %v8869_v41  ;;  %v2555_v18 = vld [vmem:[#allocation16 + $0x350] sm:$0xff]  ;;  %v8949_v63 = vcombine.high %v2938_v17, %v2942_v53 }
 0x451   :  { %5857 = vmatprep.subr.bf16.mxu0 %v8487_v57  ;;  %v2559_v41 = vld [vmem:[#allocation16 + $0x370] sm:$0xff]  ;;  %v8956_v57 = vcombine.low %v2946_v35, %v2950_v42 }
 0x452   :  { %v8567_v59 = vcombine.high %v2555_v18, %v2559_v41  ;;  %v8566_v0 = vcombine.low %v2555_v18, %v2559_v41  ;;  %v2515_v18 = vld [vmem:[#allocation16 + $0x210] sm:$0xff] }
 0x453   :  { %5817 = vmatpush1.bf16.msra.mxu1 %v8868_v2  ;;  %v2934_v2 = vld [vmem:[#allocation16 + $0xf28] sm:$0xff]  ;;  %v2519_v41 = vld [vmem:[#allocation16 + $0x230] sm:$0xff] }
 0x454   :  { %5858 = vmatpush1.bf16.msra.mxu0 %v8486_v3  ;;  %5818 = vmatprep.subr.bf16.mxu1 %v8861_v5  ;;  %v2547_v3 = vld [vmem:[#allocation16 + $0x310] sm:$0xff]  ;;  %v8941_v8 = vcombine.high %v2930_v1, %v2934_v2 }
 0x455   :  { %5859 = vmatprep.subr.bf16.mxu0 %v8479_v6  ;;  %v2551_v5 = vld [vmem:[#allocation16 + $0x330] sm:$0xff]  ;;  %v8948_v6 = vcombine.low %v2938_v17, %v2942_v53  ;;  %v2902_v17 = vld [vmem:[#allocation16 + $0xe28] sm:$0xff] }
 0x456   :  { %v8559_v43 = vcombine.high %v2547_v3, %v2551_v5  ;;  %v8558_v55 = vcombine.low %v2547_v3, %v2551_v5  ;;  %v2763_v3 = vld [vmem:[#allocation16 + $0x9d0] sm:$0xff] }
 0x457   :  { %5819 = vmatpush1.bf16.msra.mxu1 %v8860_v9  ;;  %v2926_v9 = vld [vmem:[#allocation16 + $0xee8] sm:$0xff] }
 0x458   :  { %5860 = vmatpush1.bf16.msra.mxu0 %v8478_v13  ;;  %5820 = vmatprep.subr.bf16.mxu1 %v8853_v51  ;;  %v2539_v13 = vld [vmem:[#allocation16 + $0x2d0] sm:$0xff]  ;;  %v8933_v38 = vcombine.high %v2922_v4, %v2926_v9 }
 0x459   :  { %5861 = vmatprep.subr.bf16.mxu0 %v8471_v52  ;;  %v2543_v51 = vld [vmem:[#allocation16 + $0x2f0] sm:$0xff]  ;;  %v8940_v52 = vcombine.low %v2930_v1, %v2934_v2 }
 0x45a   :  { %v8551_v21 = vcombine.high %v2539_v13, %v2543_v51  ;;  %v8550_v48 = vcombine.low %v2539_v13, %v2543_v51  ;;  %v2635_v1 = vld [vmem:[#allocation16 + $0x5d0] sm:$0xff] }
 0x45b   :  { %5821 = vmatpush1.bf16.msra.mxu1 %v8852_v26  ;;  %v2918_v26 = vld [vmem:[#allocation16 + $0xea8] sm:$0xff]  ;;  %v2639_v2 = vld [vmem:[#allocation16 + $0x5f0] sm:$0xff] }
 0x45c   :  { %5862 = vmatpush1.bf16.msra.mxu0 %v8470_v19  ;;  %5822 = vmatprep.subr.bf16.mxu1 %v8845_v27  ;;  %v2531_v19 = vld [vmem:[#allocation16 + $0x290] sm:$0xff]  ;;  %v8925_v24 = vcombine.high %v2914_v23, %v2918_v26  ;;  %v8924_v42 = vcombine.low %v2914_v23, %v2918_v26 }
 0x45d   :  { %5863 = vmatprep.subr.bf16.mxu0 %v8463_v22  ;;  %v2535_v27 = vld [vmem:[#allocation16 + $0x2b0] sm:$0xff]  ;;  %v8932_v22 = vcombine.low %v2922_v4, %v2926_v9  ;;  %v8646_v9 = vcombine.low %v2635_v1, %v2639_v2 }
 0x45e   :  { %v8543_v29 = vcombine.high %v2531_v19, %v2535_v27  ;;  %v8542_v30 = vcombine.low %v2531_v19, %v2535_v27  ;;  %v2631_v4 = vld [vmem:[#allocation16 + $0x5b0] sm:$0xff] }
 0x45f   :  { %5823 = vmatpush1.bf16.msra.mxu1 %v8844_v36  ;;  %v2910_v36 = vld [vmem:[#allocation16 + $0xe68] sm:$0xff]  ;;  %v2755_v13 = vld [vmem:[#allocation16 + $0x990] sm:$0xff] }
 0x460   :  { %5864 = vmatpush1.bf16.msra.mxu0 %v8462_v37  ;;  %5824 = vmatprep.subr.bf16.mxu1 %v8965_v32  ;;  %v2523_v32 = vld [vmem:[#allocation16 + $0x250] sm:$0xff] }
 0x461   :  { %5865 = vmatprep.subr.bf16.mxu0 %v8583_v25  ;;  %v2527_v25 = vld [vmem:[#allocation16 + $0x270] sm:$0xff] }
 0x462   :  { %v2759_v51 = vld [vmem:[#allocation16 + $0x9b0] sm:$0xff] }
 0x463   :  { %5825 = vmatpush2.bf16.msra.mxu1 %v8964_v16  ;;  %v8917_v16 = vcombine.high %v2906_v33, %v2910_v36  ;;  %v8767_v26 = vcombine.high %v2755_v13, %v2759_v51  ;;  %v2747_v19 = vld [vmem:[#allocation16 + $0x950] sm:$0xff] }
 0x464   :  { %5866 = vmatpush2.bf16.msra.mxu0 %v8582_v45  ;;  %5826 = vmatprep.subr.bf16.mxu1 %v8957_v47  ;;  %v8535_v47 = vcombine.high %v2523_v32, %v2527_v25  ;;  %v2751_v27 = vld [vmem:[#allocation16 + $0x970] sm:$0xff] }
 0x465   :  { %5867 = vmatprep.subr.bf16.mxu0 %v8575_v49  ;;  %v2898_v49 = vld [vmem:[#allocation16 + $0xe08] sm:$0xff] }
 0x466   :  { %v8908_v5 = vcombine.low %v2898_v49, %v2902_v17 }
 0x467   :  { %5827 = vmatpush2.bf16.msra.mxu1 %v8956_v57  ;;  %v8916_v57 = vcombine.low %v2906_v33, %v2910_v36 }
 0x468   :  { %5868 = vmatpush2.bf16.msra.mxu0 %v8574_v61  ;;  %5828 = vmatprep.subr.bf16.mxu1 %v8949_v63  ;;  %v8534_v61 = vcombine.low %v2523_v32, %v2527_v25  ;;  %v8909_v63 = vcombine.high %v2898_v49, %v2902_v17  ;;  %v2611_v32 = vld [vmem:[#allocation16 + $0x510] sm:$0xff] }
 0x469   :  { %5869 = vmatprep.subr.bf16.mxu0 %v8567_v59  ;;  %v8527_v59 = vcombine.high %v2515_v18, %v2519_v41  ;;  %v2615_v25 = vld [vmem:[#allocation16 + $0x530] sm:$0xff] }
 0x46a   :  { %v8623_v49 = vcombine.high %v2611_v32, %v2615_v25 }
 0x46b   :  { %5829 = vmatpush2.bf16.msra.mxu1 %v8948_v6  ;;  %v8526_v6 = vcombine.low %v2515_v18, %v2519_v41  ;;  %v2731_v18 = vld [vmem:[#allocation16 + $0x8d0] sm:$0xff] }
 0x46c   :  { %5870 = vmatpush2.bf16.msra.mxu0 %v8566_v0  ;;  %5830 = vmatprep.subr.bf16.mxu1 %v8941_v8  ;;  %v8647_v0 = vcombine.high %v2635_v1, %v2639_v2  ;;  %v2735_v41 = vld [vmem:[#allocation16 + $0x8f0] sm:$0xff] }
 0x46d   :  { %5871 = vmatprep.subr.bf16.mxu0 %v8559_v43  ;;  %v2627_v43 = vld [vmem:[#allocation16 + $0x590] sm:$0xff] }
 0x46e   :  { %v2599_v1 = vld [vmem:[#allocation16 + $0x4b0] sm:$0xff] }
 0x46f   :  { %5831 = vmatpush2.bf16.msra.mxu1 %v8940_v52  ;;  %v2723_v2 = vld [vmem:[#allocation16 + $0x890] sm:$0xff] }
 0x470   :  { %5872 = vmatpush2.bf16.msra.mxu0 %v8558_v55  ;;  %5832 = vmatprep.subr.bf16.mxu1 %v8933_v38  ;;  %v8639_v55 = vcombine.high %v2627_v43, %v2631_v4  ;;  %v2619_v38 = vld [vmem:[#allocation16 + $0x550] sm:$0xff] }
 0x471   :  { %5873 = vmatprep.subr.bf16.mxu0 %v8551_v21  ;;  %v2623_v21 = vld [vmem:[#allocation16 + $0x570] sm:$0xff] }
 0x472   :  { %v5596_v37 = vpop.f32.mrf.mxu1  ;;  %v8631_v33 = vcombine.high %v2619_v38, %v2623_v21 }
 0x473   :  { %v5597_v35 = vadd.f32 %v5596_v37, %v10991_v31  ;;  %5833 = vmatpush2.bf16.msra.mxu1 %v8932_v22  ;;  %v8759_v37 = vcombine.high %v2747_v19, %v2751_v27 }
 0x474   :  { %5874 = vmatpush2.bf16.msra.mxu0 %v8550_v48  ;;  %v5598_v39 = vpop.f32.mrf.mxu1  ;;  %5834 = vmatprep.subr.bf16.mxu1 %v8925_v24  ;;  %v8638_v48 = vcombine.low %v2627_v43, %v2631_v4  ;;  %v2591_v43 = vld [vmem:[#allocation16 + $0x470] sm:$0xff] }
 0x475   :  { %v5599_v45 = vadd.f32 %v5598_v39, %v10993_v46  ;;  %5875 = vmatprep.subr.bf16.mxu0 %v8543_v29  ;;  %v2767_v46 = vld [vmem:[#allocation16 + $0x9f0] sm:$0xff]  ;;  %v8766_v29 = vcombine.low %v2755_v13, %v2759_v51 }
 0x476   :  { %v5600_v53 = vpop.f32.mrf.mxu1  ;;  %v8775_v8 = vcombine.high %v2763_v3, %v2767_v46  ;;  %v8774_v52 = vcombine.low %v2763_v3, %v2767_v46  ;;  %v2743_v39 = vld [vmem:[#allocation16 + $0x930] sm:$0xff] }
 0x477   :  { %5835 = vmatpush2.bf16.msra.mxu1 %v8924_v42  ;;  %v2603_v53 = vld [vmem:[#allocation16 + $0x4d0] sm:$0xff] }
 0x478   :  { %5876 = vmatpush2.bf16.msra.mxu0 %v8542_v30  ;;  %v5601_v31 = vpop.f32.mrf.mxu1  ;;  %5836 = vmatprep.subr.bf16.mxu1 %v8917_v16  ;;  %v8630_v30 = vcombine.low %v2619_v38, %v2623_v21  ;;  %v2727_v3 = vld [vmem:[#allocation16 + $0x8b0] sm:$0xff] }
 0x479   :  { %5877 = vmatprep.subr.bf16.mxu0 %v8535_v47  ;;  %v8758_v47 = vcombine.low %v2747_v19, %v2751_v27  ;;  %v2715_v4 = vld [vmem:[#allocation16 + $0x850] sm:$0xff]  ;;  %v8734_v51 = vcombine.low %v2723_v2, %v2727_v3 }
 0x47a   :  { %v2579_v38 = vld [vmem:[#allocation16 + $0x410] sm:$0xff] }
 0x47b   :  { %5837 = vmatpush2.bf16.msra.mxu1 %v8916_v57  ;;  %v8622_v57 = vcombine.low %v2611_v32, %v2615_v25  ;;  %v2583_v21 = vld [vmem:[#allocation16 + $0x430] sm:$0xff] }
 0x47c   :  { %5878 = vmatpush2.bf16.msra.mxu0 %v8534_v61  ;;  %5838 = vmatprep.subr.bf16.mxu1 %v8909_v63  ;;  %v8743_v63 = vcombine.high %v2731_v18, %v2735_v41  ;;  %v2831_v32 = vld [vmem:[#allocation16 + $0xbf0] sm:$0xff]  ;;  %v8590_v25 = vcombine.low %v2579_v38, %v2583_v21 }
 0x47d   :  { %5879 = vmatprep.subr.bf16.mxu0 %v8527_v59  ;;  %v2595_v59 = vld [vmem:[#allocation16 + $0x490] sm:$0xff] }
 0x47e   :  { %v8606_v13 = vcombine.low %v2595_v59, %v2599_v1 }
 0x47f   :  { %5839 = vmatpush2.bf16.msra.mxu1 %v8908_v5  ;;  %v8742_v5 = vcombine.low %v2731_v18, %v2735_v41  ;;  %v2683_v41 = vld [vmem:[#allocation16 + $0x750] sm:$0xff] }
 0x480   :  { %5880 = vmatpush2.bf16.msra.mxu0 %v8526_v6  ;;  %5890 = vmatprep.subr.bf16.mxu1 %v8647_v0  ;;  %v8607_v6 = vcombine.high %v2595_v59, %v2599_v1  ;;  %v8735_v0 = vcombine.high %v2723_v2, %v2727_v3  ;;  %v2675_v3 = vld [vmem:[#allocation16 + $0x710] sm:$0xff] }
 0x481   :  { %5931 = vmatprep.subr.bf16.mxu0 %v8775_v8  ;;  %v2587_v8 = vld [vmem:[#allocation16 + $0x450] sm:$0xff] }
 0x482   :  { %5841 = vmatmul.mubr.bf16.vlgmr.msra.gmra.mxu1 %v10984_v34  ;;  %v5637_v23 = vpop.f32.mrf.mxu0  ;;  %v8598_v19 = vcombine.low %v2587_v8, %v2591_v43 }
 0x483   :  { %5882 = vmatmul.mubr.bf16.vlgmr.msra.gmra.mxu0 %v10896_v12  ;;  %v11003_v22 = vadd.f32 %v5637_v23, %v5597_v35  ;;  %5891 = vmatpush1.bf16.msra.mxu1 %v8646_v9  ;;  %v2739_v35 = vld [vmem:[#allocation16 + $0x910] sm:$0xff] }
 0x484   :  { %5922 = vmatprep.mubr.bf16.mxu1 %v10922_v54  ;;  %5932 = vmatpush1.bf16.msra.mxu0 %v8774_v52  ;;  %v5639_v24 = vpop.f32.mrf.mxu0  ;;  %v8751_v17 = vcombine.high %v2739_v35, %v2743_v39  ;;  %v8750_v31 = vcombine.low %v2739_v35, %v2743_v39  ;;  %v2719_v9 = vld [vmem:[#allocation16 + $0x870] sm:$0xff]  ;;  %v8599_v52 = vcombine.high %v2587_v8, %v2591_v43 }
 0x485   :  { %5963 = vmatprep.mubr.bf16.mxu0 %v10949_v40  ;;  %v11007_v36 = vadd.f32 %v5639_v24, %v5599_v45  ;;  %5892 = vmatprep.subr.bf16.mxu1 %v8639_v55  ;;  %v2607_v45 = vld [vmem:[#allocation16 + $0x4f0] sm:$0xff]  ;;  %v8727_v55 = vcombine.high %v2715_v4, %v2719_v9  ;;  %v8726_v27 = vcombine.low %v2715_v4, %v2719_v9 }
 0x486   :  { %5933 = vmatprep.subr.bf16.mxu0 %v8767_v26  ;;  %v5641_v42 = vpop.f32.mrf.mxu0  ;;  %v8615_v61 = vcombine.high %v2603_v53, %v2607_v45  ;;  %v8614_v46 = vcombine.low %v2603_v53, %v2607_v45  ;;  %v2707_v23 = vld [vmem:[#allocation16 + $0x810] sm:$0xff] }
 0x487   :  { %5893 = vmatpush1.bf16.msra.mxu1 %v8638_v48  ;;  %v2711_v26 = vld [vmem:[#allocation16 + $0x830] sm:$0xff]  ;;  %v8591_v48 = vcombine.high %v2579_v38, %v2583_v21 }
 0x488   :  { %5934 = vmatpush1.bf16.msra.mxu0 %v8766_v29  ;;  %v5642_v16 = vpop.f32.mrf.mxu0  ;;  %5894 = vmatprep.subr.bf16.mxu1 %v8631_v33  ;;  %v8719_v24 = vcombine.high %v2707_v23, %v2711_v26  ;;  %v2699_v29 = vld [vmem:[#allocation16 + $0x7d0] sm:$0xff]  ;;  %v8718_v42 = vcombine.low %v2707_v23, %v2711_v26 }
 0x489   :  { %5935 = vmatprep.subr.bf16.mxu0 %v8759_v37  ;;  %v2703_v33 = vld [vmem:[#allocation16 + $0x7f0] sm:$0xff] }
 0x48a   :  { %v2827_v37 = vld [vmem:[#allocation16 + $0xbd0] sm:$0xff]  ;;  %v8711_v35 = vcombine.high %v2699_v29, %v2703_v33 }
 0x48b   :  { %5895 = vmatpush1.bf16.msra.mxu1 %v8630_v30  ;;  %v8839_v39 = vcombine.high %v2827_v37, %v2831_v32  ;;  %v2691_v30 = vld [vmem:[#allocation16 + $0x790] sm:$0xff]  ;;  %v8838_v53 = vcombine.low %v2827_v37, %v2831_v32 }
 0x48c   :  { %5936 = vmatpush1.bf16.msra.mxu0 %v8758_v47  ;;  %5896 = vmatprep.subr.bf16.mxu1 %v8623_v49  ;;  %v2695_v16 = vld [vmem:[#allocation16 + $0x7b0] sm:$0xff] }
 0x48d   :  { %5937 = vmatprep.subr.bf16.mxu0 %v8751_v17  ;;  %v2819_v47 = vld [vmem:[#allocation16 + $0xb90] sm:$0xff]  ;;  %v8710_v17 = vcombine.low %v2699_v29, %v2703_v33  ;;  %v8703_v45 = vcombine.high %v2691_v30, %v2695_v16 }
 0x48e   :  { %v2823_v49 = vld [vmem:[#allocation16 + $0xbb0] sm:$0xff] }
 0x48f   :  { %5897 = vmatpush1.bf16.msra.mxu1 %v8622_v57  ;;  %v8831_v18 = vcombine.high %v2819_v47, %v2823_v49  ;;  %v2687_v57 = vld [vmem:[#allocation16 + $0x770] sm:$0xff]  ;;  %v8830_v59 = vcombine.low %v2819_v47, %v2823_v49 }
 0x490   :  { %5938 = vmatpush1.bf16.msra.mxu0 %v8750_v31  ;;  %5898 = vmatprep.subr.bf16.mxu1 %v8615_v61  ;;  %v2811_v31 = vld [vmem:[#allocation16 + $0xb50] sm:$0xff]  ;;  %v8695_v1 = vcombine.high %v2683_v41, %v2687_v57 }
 0x491   :  { %5939 = vmatprep.subr.bf16.mxu0 %v8743_v63  ;;  %v2815_v61 = vld [vmem:[#allocation16 + $0xb70] sm:$0xff]  ;;  %v8702_v63 = vcombine.low %v2691_v30, %v2695_v16 }
 0x492   :  { %v8823_v2 = vcombine.high %v2811_v31, %v2815_v61  ;;  %v8822_v8 = vcombine.low %v2811_v31, %v2815_v61  ;;  %v2667_v9 = vld [vmem:[#allocation16 + $0x6d0] sm:$0xff] }
 0x493   :  { %5899 = vmatpush1.bf16.msra.mxu1 %v8614_v46  ;;  %v2679_v46 = vld [vmem:[#allocation16 + $0x730] sm:$0xff] }
 0x494   :  { %5940 = vmatpush1.bf16.msra.mxu0 %v8742_v5  ;;  %5900 = vmatprep.subr.bf16.mxu1 %v8607_v6  ;;  %v2803_v5 = vld [vmem:[#allocation16 + $0xb10] sm:$0xff]  ;;  %v8687_v43 = vcombine.high %v2675_v3, %v2679_v46 }
 0x495   :  { %5941 = vmatprep.subr.bf16.mxu0 %v8735_v0  ;;  %v2807_v6 = vld [vmem:[#allocation16 + $0xb30] sm:$0xff]  ;;  %v8694_v0 = vcombine.low %v2683_v41, %v2687_v57 }
 0x496   :  { %v8815_v4 = vcombine.high %v2803_v5, %v2807_v6  ;;  %v8814_v38 = vcombine.low %v2803_v5, %v2807_v6  ;;  %v2659_v26 = vld [vmem:[#allocation16 + $0x690] sm:$0xff] }
 0x497   :  { %5901 = vmatpush1.bf16.msra.mxu1 %v8606_v13  ;;  %v2671_v13 = vld [vmem:[#allocation16 + $0x6f0] sm:$0xff] }
 0x498   :  { %5942 = vmatpush1.bf16.msra.mxu0 %v8734_v51  ;;  %5902 = vmatprep.subr.bf16.mxu1 %v8599_v52  ;;  %v2795_v51 = vld [vmem:[#allocation16 + $0xad0] sm:$0xff]  ;;  %v8679_v21 = vcombine.high %v2667_v9, %v2671_v13 }
 0x499   :  { %5943 = vmatprep.subr.bf16.mxu0 %v8727_v55  ;;  %v2799_v52 = vld [vmem:[#allocation16 + $0xaf0] sm:$0xff]  ;;  %v8686_v55 = vcombine.low %v2675_v3, %v2679_v46 }
 0x49a   :  { %v8807_v23 = vcombine.high %v2795_v51, %v2799_v52  ;;  %v8806_v29 = vcombine.low %v2795_v51, %v2799_v52  ;;  %v2651_v32 = vld [vmem:[#allocation16 + $0x650] sm:$0xff] }
 0x49b   :  { %5903 = vmatpush1.bf16.msra.mxu1 %v8598_v19  ;;  %v2663_v19 = vld [vmem:[#allocation16 + $0x6b0] sm:$0xff] }
 0x49c   :  { %5944 = vmatpush1.bf16.msra.mxu0 %v8726_v27  ;;  %5904 = vmatprep.subr.bf16.mxu1 %v8591_v48  ;;  %v2787_v27 = vld [vmem:[#allocation16 + $0xa90] sm:$0xff]  ;;  %v8671_v33 = vcombine.high %v2659_v26, %v2663_v19 }
 0x49d   :  { %5945 = vmatprep.subr.bf16.mxu0 %v8719_v24  ;;  %v2791_v48 = vld [vmem:[#allocation16 + $0xab0] sm:$0xff]  ;;  %v8678_v24 = vcombine.low %v2667_v9, %v2671_v13 }
 0x49e   :  { %v8799_v37 = vcombine.high %v2787_v27, %v2791_v48  ;;  %v8798_v30 = vcombine.low %v2787_v27, %v2791_v48  ;;  %v2643_v49 = vld [vmem:[#allocation16 + $0x610] sm:$0xff] }
 0x49f   :  { %5905 = vmatpush1.bf16.msra.mxu1 %v8590_v25  ;;  %v2655_v25 = vld [vmem:[#allocation16 + $0x670] sm:$0xff] }
 0x4a0   :  { %5946 = vmatpush1.bf16.msra.mxu0 %v8718_v42  ;;  %5906 = vmatprep.subr.bf16.mxu1 %v8711_v35  ;;  %v2779_v42 = vld [vmem:[#allocation16 + $0xa50] sm:$0xff]  ;;  %v8663_v16 = vcombine.high %v2651_v32, %v2655_v25 }
 0x4a1   :  { %5947 = vmatprep.subr.bf16.mxu0 %v8839_v39  ;;  %v2783_v35 = vld [vmem:[#allocation16 + $0xa70] sm:$0xff]  ;;  %v8670_v39 = vcombine.low %v2659_v26, %v2663_v19  ;;  %v2496_v26 = vld [vmem:[#allocation16 + $0x178] sm:$0xff] }
 0x4a2   :  { %v8791_v47 = vcombine.high %v2779_v42, %v2783_v35  ;;  %v8790_v41 = vcombine.low %v2779_v42, %v2783_v35  ;;  %v2891_v61 = vld [vmem:[#allocation16 + $0xdd0] sm:$0xff] }
 0x4a3   :  { %5907 = vmatpush2.bf16.msra.mxu1 %v8710_v17  ;;  %v2647_v17 = vld [vmem:[#allocation16 + $0x630] sm:$0xff] }
 0x4a4   :  { %5948 = vmatpush2.bf16.msra.mxu0 %v8838_v53  ;;  %5908 = vmatprep.subr.bf16.mxu1 %v8703_v45  ;;  %v2771_v53 = vld [vmem:[#allocation16 + $0xa10] sm:$0xff]  ;;  %v8655_v57 = vcombine.high %v2643_v49, %v2647_v17 }
 0x4a5   :  { %5949 = vmatprep.subr.bf16.mxu0 %v8831_v18  ;;  %v2775_v45 = vld [vmem:[#allocation16 + $0xa30] sm:$0xff]  ;;  %v8662_v18 = vcombine.low %v2651_v32, %v2655_v25 }
 0x4a6   :  { %v8783_v31 = vcombine.high %v2771_v53, %v2775_v45  ;;  %v8782_v3 = vcombine.low %v2771_v53, %v2775_v45  ;;  %v2883_v6 = vld [vmem:[#allocation16 + $0xd90] sm:$0xff] }
 0x4a7   :  { %5909 = vmatpush2.bf16.msra.mxu1 %v8702_v63  ;;  %v2895_v63 = vld [vmem:[#allocation16 + $0xdf0] sm:$0xff] }
 0x4a8   :  { %5950 = vmatpush2.bf16.msra.mxu0 %v8830_v59  ;;  %5910 = vmatprep.subr.bf16.mxu1 %v8695_v1  ;;  %v2508_v59 = vld [vmem:[#allocation16 + $0x1d8] sm:$0xff]  ;;  %v8903_v46 = vcombine.high %v2891_v61, %v2895_v63  ;;  %v2875_v51 = vld [vmem:[#allocation16 + $0xd50] sm:$0xff] }
 0x4a9   :  { %5951 = vmatprep.subr.bf16.mxu0 %v8823_v2  ;;  %v2512_v1 = vld [vmem:[#allocation16 + $0x1f8] sm:$0xff]  ;;  %v8654_v2 = vcombine.low %v2643_v49, %v2647_v17  ;;  %v2879_v52 = vld [vmem:[#allocation16 + $0xd70] sm:$0xff] }
 0x4aa   :  { %v8521_v5 = vcombine.high %v2508_v59, %v2512_v1  ;;  %v8520_v9 = vcombine.low %v2508_v59, %v2512_v1  ;;  %v2867_v25 = vld [vmem:[#allocation16 + $0xd10] sm:$0xff] }
 0x4ab   :  { %5911 = vmatpush2.bf16.msra.mxu1 %v8694_v0  ;;  %v2887_v0 = vld [vmem:[#allocation16 + $0xdb0] sm:$0xff] }
 0x4ac   :  { %5952 = vmatpush2.bf16.msra.mxu0 %v8822_v8  ;;  %5912 = vmatprep.subr.bf16.mxu1 %v8687_v43  ;;  %v8902_v8 = vcombine.low %v2891_v61, %v2895_v63  ;;  %v2500_v43 = vld [vmem:[#allocation16 + $0x198] sm:$0xff]  ;;  %v8895_v13 = vcombine.high %v2883_v6, %v2887_v0  ;;  %v8894_v27 = vcombine.low %v2883_v6, %v2887_v0  ;;  %v2859_v53 = vld [vmem:[#allocation16 + $0xcd0] sm:$0xff] }
 0x4ad   :  { %5953 = vmatprep.subr.bf16.mxu0 %v8815_v4  ;;  %v2504_v4 = vld [vmem:[#allocation16 + $0x1b8] sm:$0xff]  ;;  %v2863_v45 = vld [vmem:[#allocation16 + $0xcf0] sm:$0xff] }
 0x4ae   :  { %v8871_v61 = vcombine.high %v2859_v53, %v2863_v45  ;;  %v2851_v59 = vld [vmem:[#allocation16 + $0xc90] sm:$0xff] }
 0x4af   :  { %5913 = vmatpush2.bf16.msra.mxu1 %v8686_v55  ;;  %v2855_v1 = vld [vmem:[#allocation16 + $0xcb0] sm:$0xff] }
 0x4b0   :  { %5954 = vmatpush2.bf16.msra.mxu0 %v8814_v38  ;;  %5914 = vmatprep.subr.bf16.mxu1 %v8679_v21  ;;  %v8513_v21 = vcombine.high %v2500_v43, %v2504_v4  ;;  %v8863_v6 = vcombine.high %v2851_v59, %v2855_v1 }
 0x4b1   :  { %5955 = vmatprep.subr.bf16.mxu0 %v8807_v23  ;;  %v2492_v23 = vld [vmem:[#allocation16 + $0x158] sm:$0xff] }
 0x4b2   :  { %v8505_v32 = vcombine.high %v2492_v23, %v2496_v26  ;;  %v8504_v17 = vcombine.low %v2492_v23, %v2496_v26  ;;  %v2839_v23 = vld [vmem:[#allocation16 + $0xc30] sm:$0xff]  ;;  %v2452_v26 = vld [vmem:[#allocation16 + $0x18] sm:$0xff] }
 0x4b3   :  { %5915 = vmatpush2.bf16.msra.mxu1 %v8678_v24 }
 0x4b4   :  { %5956 = vmatpush2.bf16.msra.mxu0 %v8806_v29  ;;  %5916 = vmatprep.subr.bf16.mxu1 %v8671_v33  ;;  %v8512_v29 = vcombine.low %v2500_v43, %v2504_v4  ;;  %v8887_v33 = vcombine.high %v2875_v51, %v2879_v52  ;;  %v2847_v43 = vld [vmem:[#allocation16 + $0xc70] sm:$0xff]  ;;  %v2460_v4 = vld [vmem:[#allocation16 + $0x58] sm:$0xff] }
 0x4b5   :  { %5957 = vmatprep.subr.bf16.mxu0 %v8799_v37 }
 0x4b7   :  { %5917 = vmatpush2.bf16.msra.mxu1 %v8670_v39  ;;  %v2484_v39 = vld [vmem:[#allocation16 + $0x118] sm:$0xff] }
 0x4b8   :  { %5958 = vmatpush2.bf16.msra.mxu0 %v8798_v30  ;;  %5918 = vmatprep.subr.bf16.mxu1 %v8663_v16  ;;  %v2488_v30 = vld [vmem:[#allocation16 + $0x138] sm:$0xff]  ;;  %v8886_v16 = vcombine.low %v2875_v51, %v2879_v52 }
 0x4b9   :  { %5959 = vmatprep.subr.bf16.mxu0 %v8791_v47 }
 0x4bb   :  { %5919 = vmatpush2.bf16.msra.mxu1 %v8662_v18  ;;  %v2476_v18 = vld [vmem:[#allocation16 + $0xd8] sm:$0xff] }
 0x4bc   :  { %5960 = vmatpush2.bf16.msra.mxu0 %v8790_v41  ;;  %5920 = vmatprep.subr.bf16.mxu1 %v8655_v57  ;;  %v2480_v41 = vld [vmem:[#allocation16 + $0xf8] sm:$0xff] }
 0x4bd   :  { %5961 = vmatprep.subr.bf16.mxu0 %v8783_v31  ;;  %v8496_v31 = vcombine.low %v2484_v39, %v2488_v30  ;;  %v8489_v63 = vcombine.high %v2476_v18, %v2480_v41 }
 0x4bf   :  { %5921 = vmatpush2.bf16.msra.mxu1 %v8654_v2  ;;  %v2468_v2 = vld [vmem:[#allocation16 + $0x98] sm:$0xff] }
 0x4c0   :  { %5962 = vmatpush2.bf16.msra.mxu0 %v8782_v3  ;;  %5972 = vmatprep.subr.bf16.mxu1 %v8903_v46  ;;  %v2472_v3 = vld [vmem:[#allocation16 + $0xb8] sm:$0xff]  ;;  %v8870_v46 = vcombine.low %v2859_v53, %v2863_v45 }
 0x4c1   :  { %6013 = vmatprep.subr.bf16.mxu0 %v8521_v5  ;;  %v8488_v5 = vcombine.low %v2476_v18, %v2480_v41  ;;  %v8481_v0 = vcombine.high %v2468_v2, %v2472_v3  ;;  %v8480_v51 = vcombine.low %v2468_v2, %v2472_v3 }
 0x4c2   :  { %v11009_v55 = vpop.f32.mrf.mxu0  ;;  %5923 = vmatmul.mubr.bf16.vlgmr.msra.gmra.mxu1 %v10927_v56  ;;  %v5678_v38 = vpop.f32.mrf.mxu1 }
 0x4c3   :  { %5964 = vmatmul.mubr.bf16.vlgmr.msra.gmra.mxu0 %v10953_v44  ;;  %v11014_v19 = vadd.f32 %v5678_v38, %v11003_v22  ;;  %5973 = vmatpush1.bf16.msra.mxu1 %v8902_v8  ;;  %v2871_v22 = vld [vmem:[#allocation16 + $0xd30] sm:$0xff] }
 0x4c4   :  { %6004 = vmatprep.mubr.bf16.mxu1 %v10980_v28  ;;  %6014 = vmatpush1.bf16.msra.mxu0 %v8520_v9  ;;  %v11017_v48 = vpop.f32.mrf.mxu0  ;;  %v5680_v24 = vpop.f32.mrf.mxu1  ;;  %v8878_v57 = vcombine.low %v2867_v25, %v2871_v22  ;;  %v2843_v8 = vld [vmem:[#allocation16 + $0xc50] sm:$0xff]  ;;  %v2464_v9 = vld [vmem:[#allocation16 + $0x78] sm:$0xff] }
 0x4c5   :  { %6045 = vmatprep.mubr.bf16.mxu0 %v10894_v11  ;;  %v11021_v37 = vadd.f32 %v5680_v24, %v11007_v36  ;;  %5974 = vmatprep.subr.bf16.mxu1 %v8895_v13  ;;  %v8879_v11 = vcombine.high %v2867_v25, %v2871_v22  ;;  %v8497_v36 = vcombine.high %v2484_v39, %v2488_v30  ;;  %v2955_v25 = vld [vmem:[#allocation16 + $0xfd0] sm:$0xff] }
 0x4c6   :  { %v5723_v42 = vpop.f32.mrf.mxu0  ;;  %6015 = vmatprep.subr.bf16.mxu0 %v8513_v21  ;;  %v5682_v35 = vpop.f32.mrf.mxu1  ;;  %v8862_v13 = vcombine.low %v2851_v59, %v2855_v1  ;;  %v8855_v52 = vcombine.high %v2843_v8, %v2847_v43  ;;  %v8473_v38 = vcombine.high %v2460_v4, %v2464_v9  ;;  %v2835_v21 = vld [vmem:[#allocation16 + $0xc10] sm:$0xff]  ;;  %v8854_v24 = vcombine.low %v2843_v8, %v2847_v43 }
 0x4c7   :  { %5975 = vmatpush1.bf16.msra.mxu1 %v8894_v27  ;;  %v2456_v27 = vld [vmem:[#allocation16 + $0x38] sm:$0xff]  ;;  %v2959_v22 = vld [vmem:[#allocation16 + $0xff0] sm:$0xff]  ;;  %v8846_v39 = vcombine.low %v2835_v21, %v2839_v23 }
 0x4c8   :  { %6016 = vmatpush1.bf16.msra.mxu0 %v8512_v29  ;;  %v5724_v47 = vpop.f32.mrf.mxu0  ;;  %v5683_v49 = vpop.f32.mrf.mxu1  ;;  %5976 = vmatprep.subr.bf16.mxu1 %v8887_v33  ;;  %v8472_v29 = vcombine.low %v2460_v4, %v2464_v9  ;;  %v8847_v33 = vcombine.high %v2835_v21, %v2839_v23  ;;  %v2572_v42 = vld [vmem:[#allocation16 + $0x3d8] sm:$0xff]  ;;  %v8464_v30 = vcombine.low %v2452_v26, %v2456_v27 }
 0x4c9   :  { %6017 = vmatprep.subr.bf16.mxu0 %v8505_v32  ;;  %v8465_v32 = vcombine.high %v2452_v26, %v2456_v27  ;;  %v2576_v35 = vld [vmem:[#allocation16 + $0x3f8] sm:$0xff]  ;;  %v2947_v49 = vld [vmem:[#allocation16 + $0xf90] sm:$0xff]  ;;  %v8966_v53 = vcombine.low %v2955_v25, %v2959_v22 }
 0x4ca   :  { %v8585_v47 = vcombine.high %v2572_v42, %v2576_v35  ;;  %v8584_v45 = vcombine.low %v2572_v42, %v2576_v35 }
 0x4cb   :  { %5977 = vmatpush1.bf16.msra.mxu1 %v8886_v16  ;;  %v8967_v16 = vcombine.high %v2955_v25, %v2959_v22 }
 0x4cc   :  { %6018 = vmatpush1.bf16.msra.mxu0 %v8504_v17  ;;  %5978 = vmatprep.subr.bf16.mxu1 %v8879_v11  ;;  %v2951_v17 = vld [vmem:[#allocation16 + $0xfb0] sm:$0xff]  ;;  %v2564_v11 = vld [vmem:[#allocation16 + $0x398] sm:$0xff] }
 0x4cd   :  { %6019 = vmatprep.subr.bf16.mxu0 %v8497_v36  ;;  %v2568_v36 = vld [vmem:[#allocation16 + $0x3b8] sm:$0xff]  ;;  %v8959_v18 = vcombine.high %v2947_v49, %v2951_v17  ;;  %v8958_v59 = vcombine.low %v2947_v49, %v2951_v17 }
 0x4ce   :  { %v8577_v41 = vcombine.high %v2564_v11, %v2568_v36  ;;  %v8576_v1 = vcombine.low %v2564_v11, %v2568_v36 }
 0x4cf   :  { %5979 = vmatpush1.bf16.msra.mxu1 %v8878_v57  ;;  %v2939_v57 = vld [vmem:[#allocation16 + $0xf50] sm:$0xff] }
 0x4d0   :  { %6020 = vmatpush1.bf16.msra.mxu0 %v8496_v31  ;;  %5980 = vmatprep.subr.bf16.mxu1 %v8871_v61  ;;  %v2943_v31 = vld [vmem:[#allocation16 + $0xf70] sm:$0xff]  ;;  %v2556_v61 = vld [vmem:[#allocation16 + $0x358] sm:$0xff] }
 0x4d1   :  { %6021 = vmatprep.subr.bf16.mxu0 %v8489_v63  ;;  %v2560_v63 = vld [vmem:[#allocation16 + $0x378] sm:$0xff]  ;;  %v8951_v2 = vcombine.high %v2939_v57, %v2943_v31  ;;  %v8950_v8 = vcombine.low %v2939_v57, %v2943_v31 }
 0x4d2   :  { %v8569_v3 = vcombine.high %v2556_v61, %v2560_v63  ;;  %v8568_v43 = vcombine.low %v2556_v61, %v2560_v63 }
 0x4d3   :  { %5981 = vmatpush1.bf16.msra.mxu1 %v8870_v46  ;;  %v2931_v46 = vld [vmem:[#allocation16 + $0xf10] sm:$0xff] }
 0x4d4   :  { %6022 = vmatpush1.bf16.msra.mxu0 %v8488_v5  ;;  %5982 = vmatprep.subr.bf16.mxu1 %v8863_v6  ;;  %v2935_v5 = vld [vmem:[#allocation16 + $0xf30] sm:$0xff]  ;;  %v2548_v6 = vld [vmem:[#allocation16 + $0x318] sm:$0xff] }
 0x4d5   :  { %6023 = vmatprep.subr.bf16.mxu0 %v8481_v0  ;;  %v2552_v0 = vld [vmem:[#allocation16 + $0x338] sm:$0xff]  ;;  %v8943_v4 = vcombine.high %v2931_v46, %v2935_v5  ;;  %v8942_v21 = vcombine.low %v2931_v46, %v2935_v5 }
 0x4d6   :  { %v8561_v9 = vcombine.high %v2548_v6, %v2552_v0  ;;  %v8560_v23 = vcombine.low %v2548_v6, %v2552_v0 }
 0x4d7   :  { %5983 = vmatpush1.bf16.msra.mxu1 %v8862_v13  ;;  %v2923_v13 = vld [vmem:[#allocation16 + $0xed0] sm:$0xff] }
 0x4d8   :  { %6024 = vmatpush1.bf16.msra.mxu0 %v8480_v51  ;;  %5984 = vmatprep.subr.bf16.mxu1 %v8855_v52  ;;  %v2927_v51 = vld [vmem:[#allocation16 + $0xef0] sm:$0xff]  ;;  %v2540_v52 = vld [vmem:[#allocation16 + $0x2d8] sm:$0xff] }
 0x4d9   :  { %6025 = vmatprep.subr.bf16.mxu0 %v8473_v38  ;;  %v2544_v38 = vld [vmem:[#allocation16 + $0x2f8] sm:$0xff]  ;;  %v8935_v26 = vcombine.high %v2923_v13, %v2927_v51  ;;  %v8934_v25 = vcombine.low %v2923_v13, %v2927_v51 }
 0x4da   :  { %v8553_v27 = vcombine.high %v2540_v52, %v2544_v38  ;;  %v8552_v22 = vcombine.low %v2540_v52, %v2544_v38  ;;  %v2760_v13 = vld [vmem:[#allocation16 + $0x9b8] sm:$0xff] }
 0x4db   :  { %5985 = vmatpush1.bf16.msra.mxu1 %v8854_v24  ;;  %v2915_v24 = vld [vmem:[#allocation16 + $0xe90] sm:$0xff]  ;;  %v2620_v38 = vld [vmem:[#allocation16 + $0x558] sm:$0xff] }
 0x4dc   :  { %6026 = vmatpush1.bf16.msra.mxu0 %v8472_v29  ;;  %5986 = vmatprep.subr.bf16.mxu1 %v8847_v33  ;;  %v2919_v29 = vld [vmem:[#allocation16 + $0xeb0] sm:$0xff]  ;;  %v2532_v33 = vld [vmem:[#allocation16 + $0x298] sm:$0xff] }
 0x4dd   :  { %6027 = vmatprep.subr.bf16.mxu0 %v8465_v32  ;;  %v2536_v32 = vld [vmem:[#allocation16 + $0x2b8] sm:$0xff]  ;;  %v8927_v42 = vcombine.high %v2915_v24, %v2919_v29  ;;  %v8926_v49 = vcombine.low %v2915_v24, %v2919_v29 }
 0x4de   :  { %v8545_v35 = vcombine.high %v2532_v33, %v2536_v32  ;;  %v8544_v17 = vcombine.low %v2532_v33, %v2536_v32  ;;  %v2748_v24 = vld [vmem:[#allocation16 + $0x958] sm:$0xff] }
 0x4df   :  { %5987 = vmatpush1.bf16.msra.mxu1 %v8846_v39  ;;  %v2907_v39 = vld [vmem:[#allocation16 + $0xe50] sm:$0xff]  ;;  %v2752_v29 = vld [vmem:[#allocation16 + $0x978] sm:$0xff] }
 0x4e0   :  { %6028 = vmatpush1.bf16.msra.mxu0 %v8464_v30  ;;  %5988 = vmatprep.subr.bf16.mxu1 %v8967_v16  ;;  %v2911_v30 = vld [vmem:[#allocation16 + $0xe70] sm:$0xff]  ;;  %v2524_v16 = vld [vmem:[#allocation16 + $0x258] sm:$0xff] }
 0x4e1   :  { %6029 = vmatprep.subr.bf16.mxu0 %v8585_v47  ;;  %v2528_v47 = vld [vmem:[#allocation16 + $0x278] sm:$0xff]  ;;  %v8919_v11 = vcombine.high %v2907_v39, %v2911_v30  ;;  %v8918_v57 = vcombine.low %v2907_v39, %v2911_v30 }
 0x4e2   :  { %v8537_v36 = vcombine.high %v2524_v16, %v2528_v47  ;;  %v8536_v31 = vcombine.low %v2524_v16, %v2528_v47  ;;  %v8761_v16 = vcombine.high %v2748_v24, %v2752_v29  ;;  %v2616_v47 = vld [vmem:[#allocation16 + $0x538] sm:$0xff] }
 0x4e3   :  { %5989 = vmatpush2.bf16.msra.mxu1 %v8966_v53  ;;  %v2899_v53 = vld [vmem:[#allocation16 + $0xe10] sm:$0xff] }
 0x4e4   :  { %6030 = vmatpush2.bf16.msra.mxu0 %v8584_v45  ;;  %5990 = vmatprep.subr.bf16.mxu1 %v8959_v18  ;;  %v2903_v45 = vld [vmem:[#allocation16 + $0xe30] sm:$0xff]  ;;  %v2516_v18 = vld [vmem:[#allocation16 + $0x218] sm:$0xff] }
 0x4e5   :  { %6031 = vmatprep.subr.bf16.mxu0 %v8577_v41  ;;  %v2520_v41 = vld [vmem:[#allocation16 + $0x238] sm:$0xff]  ;;  %v8911_v61 = vcombine.high %v2899_v53, %v2903_v45  ;;  %v8910_v46 = vcombine.low %v2899_v53, %v2903_v45 }
 0x4e6   :  { %v8529_v63 = vcombine.high %v2516_v18, %v2520_v41  ;;  %v8528_v5 = vcombine.low %v2516_v18, %v2520_v41  ;;  %v2604_v41 = vld [vmem:[#allocation16 + $0x4d8] sm:$0xff] }
 0x4e7   :  { %5991 = vmatpush2.bf16.msra.mxu1 %v8958_v59  ;;  %v2636_v59 = vld [vmem:[#allocation16 + $0x5d8] sm:$0xff] }
 0x4e8   :  { %6032 = vmatpush2.bf16.msra.mxu0 %v8576_v1  ;;  %5992 = vmatprep.subr.bf16.mxu1 %v8951_v2  ;;  %v2640_v1 = vld [vmem:[#allocation16 + $0x5f8] sm:$0xff] }
 0x4e9   :  { %6033 = vmatprep.subr.bf16.mxu0 %v8569_v3  ;;  %v2764_v2 = vld [vmem:[#allocation16 + $0x9d8] sm:$0xff]  ;;  %v8649_v6 = vcombine.high %v2636_v59, %v2640_v1 }
 0x4ea   :  { %v2768_v3 = vld [vmem:[#allocation16 + $0x9f8] sm:$0xff] }
 0x4eb   :  { %5993 = vmatpush2.bf16.msra.mxu1 %v8950_v8  ;;  %v8777_v0 = vcombine.high %v2764_v2, %v2768_v3  ;;  %v2628_v8 = vld [vmem:[#allocation16 + $0x598] sm:$0xff]  ;;  %v8776_v51 = vcombine.low %v2764_v2, %v2768_v3 }
 0x4ec   :  { %6034 = vmatpush2.bf16.msra.mxu0 %v8568_v43  ;;  %5994 = vmatprep.subr.bf16.mxu1 %v8943_v4  ;;  %v2632_v43 = vld [vmem:[#allocation16 + $0x5b8] sm:$0xff]  ;;  %v8648_v4 = vcombine.low %v2636_v59, %v2640_v1 }
 0x4ed   :  { %6035 = vmatprep.subr.bf16.mxu0 %v8561_v9  ;;  %v2756_v9 = vld [vmem:[#allocation16 + $0x998] sm:$0xff]  ;;  %v8641_v52 = vcombine.high %v2628_v8, %v2632_v43  ;;  %v8640_v32 = vcombine.low %v2628_v8, %v2632_v43 }
 0x4ee   :  { %v2596_v3 = vld [vmem:[#allocation16 + $0x498] sm:$0xff] }
 0x4ef   :  { %5995 = vmatpush2.bf16.msra.mxu1 %v8942_v21  ;;  %v2624_v21 = vld [vmem:[#allocation16 + $0x578] sm:$0xff] }
 0x4f0   :  { %6036 = vmatpush2.bf16.msra.mxu0 %v8560_v23  ;;  %5996 = vmatprep.subr.bf16.mxu1 %v8935_v26 }
 0x4f1   :  { %6037 = vmatprep.subr.bf16.mxu0 %v8553_v27  ;;  %v8769_v27 = vcombine.high %v2756_v9, %v2760_v13 }
 0x4f3   :  { %5997 = vmatpush2.bf16.msra.mxu1 %v8934_v25 }
 0x4f4   :  { %6038 = vmatpush2.bf16.msra.mxu0 %v8552_v22  ;;  %5998 = vmatprep.subr.bf16.mxu1 %v8927_v42  ;;  %v8768_v42 = vcombine.low %v2756_v9, %v2760_v13  ;;  %v2588_v9 = vld [vmem:[#allocation16 + $0x458] sm:$0xff] }
 0x4f5   :  { %6039 = vmatprep.subr.bf16.mxu0 %v8545_v35  ;;  %v8633_v35 = vcombine.high %v2620_v38, %v2624_v21  ;;  %v2592_v13 = vld [vmem:[#allocation16 + $0x478] sm:$0xff] }
 0x4f7   :  { %5999 = vmatpush2.bf16.msra.mxu1 %v8926_v49 }
 0x4f8   :  { %6040 = vmatpush2.bf16.msra.mxu0 %v8544_v17  ;;  %6000 = vmatprep.subr.bf16.mxu1 %v8919_v11  ;;  %v2740_v17 = vld [vmem:[#allocation16 + $0x918] sm:$0xff] }
 0x4f9   :  { %6041 = vmatprep.subr.bf16.mxu0 %v8537_v36  ;;  %v8632_v36 = vcombine.low %v2620_v38, %v2624_v21 }
 0x4fb   :  { %6001 = vmatpush2.bf16.msra.mxu1 %v8918_v57  ;;  %v2608_v57 = vld [vmem:[#allocation16 + $0x4f8] sm:$0xff] }
 0x4fc   :  { %6042 = vmatpush2.bf16.msra.mxu0 %v8536_v31  ;;  %6002 = vmatprep.subr.bf16.mxu1 %v8911_v61  ;;  %v2732_v31 = vld [vmem:[#allocation16 + $0x8d8] sm:$0xff]  ;;  %v8617_v1 = vcombine.high %v2604_v41, %v2608_v57 }
 0x4fd   :  { %6043 = vmatprep.subr.bf16.mxu0 %v8529_v63  ;;  %v2736_v61 = vld [vmem:[#allocation16 + $0x8f8] sm:$0xff] }
 0x4fe   :  { %v8745_v2 = vcombine.high %v2732_v31, %v2736_v61  ;;  %v8744_v8 = vcombine.low %v2732_v31, %v2736_v61  ;;  %v2688_v31 = vld [vmem:[#allocation16 + $0x778] sm:$0xff] }
 0x4ff   :  { %6003 = vmatpush2.bf16.msra.mxu1 %v8910_v46  ;;  %v2600_v46 = vld [vmem:[#allocation16 + $0x4b8] sm:$0xff] }
 0x500   :  { %6044 = vmatpush2.bf16.msra.mxu0 %v8528_v5  ;;  %6054 = vmatprep.subr.bf16.mxu1 %v8649_v6  ;;  %v2724_v5 = vld [vmem:[#allocation16 + $0x898] sm:$0xff]  ;;  %v8609_v43 = vcombine.high %v2596_v3, %v2600_v46  ;;  %v8608_v38 = vcombine.low %v2596_v3, %v2600_v46 }
 0x501   :  { %6095 = vmatprep.subr.bf16.mxu0 %v8777_v0  ;;  %v2728_v6 = vld [vmem:[#allocation16 + $0x8b8] sm:$0xff]  ;;  %v8616_v0 = vcombine.low %v2604_v41, %v2608_v57 }
 0x502   :  { %v5760_v23 = vpop.f32.mrf.mxu1  ;;  %v5801_v26 = vpop.f32.mrf.mxu0  ;;  %6005 = vmatmul.mubr.bf16.vlgmr.msra.gmra.mxu1 %v10984_v34  ;;  %v8736_v21 = vcombine.low %v2724_v5, %v2728_v6  ;;  %v2684_v57 = vld [vmem:[#allocation16 + $0x758] sm:$0xff] }
 0x503   :  { %v5761_v33 = vadd.f32 %v5760_v23, %v11009_v55  ;;  %6046 = vmatmul.mubr.bf16.vlgmr.msra.gmra.mxu0 %v10896_v12  ;;  %6055 = vmatpush1.bf16.msra.mxu1 %v8648_v4  ;;  %v2612_v55 = vld [vmem:[#allocation16 + $0x518] sm:$0xff]  ;;  %v8737_v4 = vcombine.high %v2724_v5, %v2728_v6  ;;  %v8601_v23 = vcombine.high %v2588_v9, %v2592_v13 }
 0x504   :  { %6086 = vmatprep.mubr.bf16.mxu1 %v10922_v54  ;;  %6096 = vmatpush1.bf16.msra.mxu0 %v8776_v51  ;;  %v5762_v25 = vpop.f32.mrf.mxu1  ;;  %v5803_v22 = vpop.f32.mrf.mxu0  ;;  %v2744_v54 = vld [vmem:[#allocation16 + $0x938] sm:$0xff]  ;;  %v8625_v18 = vcombine.high %v2612_v55, %v2616_v47  ;;  %v8624_v63 = vcombine.low %v2612_v55, %v2616_v47 }
 0x505   :  { %v11027_v39 = vadd.f32 %v5801_v26, %v5761_v33  ;;  %6127 = vmatprep.mubr.bf16.mxu0 %v10949_v40  ;;  %v5763_v30 = vadd.f32 %v5762_v25, %v11017_v48  ;;  %6056 = vmatprep.subr.bf16.mxu1 %v8641_v52  ;;  %v8760_v40 = vcombine.low %v2748_v24, %v2752_v29  ;;  %v2716_v51 = vld [vmem:[#allocation16 + $0x858] sm:$0xff] }
 0x506   :  { %v5764_v12 = vpop.f32.mrf.mxu1  ;;  %v5805_v49 = vpop.f32.mrf.mxu0  ;;  %6097 = vmatprep.subr.bf16.mxu0 %v8769_v27  ;;  %v8753_v48 = vcombine.high %v2740_v17, %v2744_v54  ;;  %v8752_v59 = vcombine.low %v2740_v17, %v2744_v54  ;;  %v2720_v52 = vld [vmem:[#allocation16 + $0x878] sm:$0xff] }
 0x507   :  { %v11031_v11 = vadd.f32 %v5803_v22, %v5763_v30  ;;  %6057 = vmatpush1.bf16.msra.mxu1 %v8640_v32  ;;  %v8729_v26 = vcombine.high %v2716_v51, %v2720_v52  ;;  %v2580_v27 = vld [vmem:[#allocation16 + $0x418] sm:$0xff]  ;;  %v8600_v32 = vcombine.low %v2588_v9, %v2592_v13  ;;  %v8728_v25 = vcombine.low %v2716_v51, %v2720_v52 }
 0x508   :  { %6098 = vmatpush1.bf16.msra.mxu0 %v8768_v42  ;;  %v5765_v53 = vpop.f32.mrf.mxu1  ;;  %v5806_v45 = vpop.f32.mrf.mxu0  ;;  %6058 = vmatprep.subr.bf16.mxu1 %v8633_v35  ;;  %v2584_v24 = vld [vmem:[#allocation16 + $0x438] sm:$0xff] }
 0x509   :  { %6099 = vmatprep.subr.bf16.mxu0 %v8761_v16  ;;  %v2708_v29 = vld [vmem:[#allocation16 + $0x818] sm:$0xff]  ;;  %v8593_v22 = vcombine.high %v2580_v27, %v2584_v24  ;;  %v8592_v47 = vcombine.low %v2580_v27, %v2584_v24 }
 0x50a   :  { %v2712_v33 = vld [vmem:[#allocation16 + $0x838] sm:$0xff] }
 0x50b   :  { %6059 = vmatpush1.bf16.msra.mxu1 %v8632_v36  ;;  %v8721_v42 = vcombine.high %v2708_v29, %v2712_v33  ;;  %v2700_v35 = vld [vmem:[#allocation16 + $0x7d8] sm:$0xff]  ;;  %v8720_v12 = vcombine.low %v2708_v29, %v2712_v33 }
 0x50c   :  { %6100 = vmatpush1.bf16.msra.mxu0 %v8760_v40  ;;  %6060 = vmatprep.subr.bf16.mxu1 %v8625_v18  ;;  %v2704_v30 = vld [vmem:[#allocation16 + $0x7f8] sm:$0xff] }
 0x50d   :  { %6101 = vmatprep.subr.bf16.mxu0 %v8753_v48  ;;  %v2828_v16 = vld [vmem:[#allocation16 + $0xbd8] sm:$0xff]  ;;  %v8713_v49 = vcombine.high %v2700_v35, %v2704_v30  ;;  %v8712_v40 = vcombine.low %v2700_v35, %v2704_v30 }
 0x50e   :  { %v2832_v55 = vld [vmem:[#allocation16 + $0xbf8] sm:$0xff] }
 0x50f   :  { %6061 = vmatpush1.bf16.msra.mxu1 %v8624_v63  ;;  %v8841_v17 = vcombine.high %v2828_v16, %v2832_v55  ;;  %v2692_v54 = vld [vmem:[#allocation16 + $0x798] sm:$0xff]  ;;  %v8840_v18 = vcombine.low %v2828_v16, %v2832_v55  ;;  %v11033_v55 = vld [vmem:[#allocation18] sm:$0xff] }
 0x510   :  { %6102 = vmatpush1.bf16.msra.mxu0 %v8752_v59  ;;  %6062 = vmatprep.subr.bf16.mxu1 %v8617_v1  ;;  %v2696_v36 = vld [vmem:[#allocation16 + $0x7b8] sm:$0xff] }
 0x511   :  { %6103 = vmatprep.subr.bf16.mxu0 %v8745_v2  ;;  %v2820_v53 = vld [vmem:[#allocation16 + $0xb98] sm:$0xff]  ;;  %v8705_v48 = vcombine.high %v2692_v54, %v2696_v36  ;;  %v8704_v59 = vcombine.low %v2692_v54, %v2696_v36  ;;  %v8697_v2 = vcombine.high %v2684_v57, %v2688_v31 }
 0x512   :  { %v2824_v45 = vld [vmem:[#allocation16 + $0xbb8] sm:$0xff] }
 0x513   :  { %6063 = vmatpush1.bf16.msra.mxu1 %v8616_v0  ;;  %v8833_v41 = vcombine.high %v2820_v53, %v2824_v45  ;;  %v2812_v61 = vld [vmem:[#allocation16 + $0xb58] sm:$0xff]  ;;  %v8832_v1 = vcombine.low %v2820_v53, %v2824_v45 }
 0x514   :  { %6104 = vmatpush1.bf16.msra.mxu0 %v8744_v8  ;;  %6064 = vmatprep.subr.bf16.mxu1 %v8609_v43  ;;  %v2816_v63 = vld [vmem:[#allocation16 + $0xb78] sm:$0xff]  ;;  %v8696_v8 = vcombine.low %v2684_v57, %v2688_v31 }
 0x515   :  { %6105 = vmatprep.subr.bf16.mxu0 %v8737_v4  ;;  %v8825_v3 = vcombine.high %v2812_v61, %v2816_v63  ;;  %v2676_v46 = vld [vmem:[#allocation16 + $0x718] sm:$0xff]  ;;  %v8824_v43 = vcombine.low %v2812_v61, %v2816_v63 }
 0x516   :  { %v2680_v5 = vld [vmem:[#allocation16 + $0x738] sm:$0xff] }
 0x517   :  { %6065 = vmatpush1.bf16.msra.mxu1 %v8608_v38  ;;  %v2804_v6 = vld [vmem:[#allocation16 + $0xb18] sm:$0xff]  ;;  %v8689_v4 = vcombine.high %v2676_v46, %v2680_v5 }
 0x518   :  { %6106 = vmatpush1.bf16.msra.mxu0 %v8736_v21  ;;  %6066 = vmatprep.subr.bf16.mxu1 %v8601_v23  ;;  %v2808_v0 = vld [vmem:[#allocation16 + $0xb38] sm:$0xff]  ;;  %v8688_v21 = vcombine.low %v2676_v46, %v2680_v5 }
 0x519   :  { %6107 = vmatprep.subr.bf16.mxu0 %v8729_v26  ;;  %v8817_v9 = vcombine.high %v2804_v6, %v2808_v0  ;;  %v2668_v13 = vld [vmem:[#allocation16 + $0x6d8] sm:$0xff]  ;;  %v8816_v23 = vcombine.low %v2804_v6, %v2808_v0  ;;  %v9475_v0 = vld [vmem:[%s11799_s13 + $0xac] ss:$12 sps:$4 sm:$0xff]  }
 0x51a   :  { %v2672_v51 = vld [vmem:[#allocation16 + $0x6f8] sm:$0xff] }
 0x51b   :  { %6067 = vmatpush1.bf16.msra.mxu1 %v8600_v32  ;;  %v2796_v52 = vld [vmem:[#allocation16 + $0xad8] sm:$0xff]  ;;  %v8681_v26 = vcombine.high %v2668_v13, %v2672_v51 }
 0x51c   :  { %6108 = vmatpush1.bf16.msra.mxu0 %v8728_v25  ;;  %6068 = vmatprep.subr.bf16.mxu1 %v8593_v22  ;;  %v2800_v38 = vld [vmem:[#allocation16 + $0xaf8] sm:$0xff]  ;;  %v8680_v25 = vcombine.low %v2668_v13, %v2672_v51 }
 0x51d   :  { %6109 = vmatprep.subr.bf16.mxu0 %v8721_v42  ;;  %v8809_v27 = vcombine.high %v2796_v52, %v2800_v38  ;;  %v2660_v24 = vld [vmem:[#allocation16 + $0x698] sm:$0xff]  ;;  %v8808_v22 = vcombine.low %v2796_v52, %v2800_v38 }
 0x51e   :  { %v2664_v29 = vld [vmem:[#allocation16 + $0x6b8] sm:$0xff] }
 0x51f   :  { %6069 = vmatpush1.bf16.msra.mxu1 %v8592_v47  ;;  %v2788_v33 = vld [vmem:[#allocation16 + $0xa98] sm:$0xff]  ;;  %v8673_v42 = vcombine.high %v2660_v24, %v2664_v29 }
 0x520   :  { %6110 = vmatpush1.bf16.msra.mxu0 %v8720_v12  ;;  %6070 = vmatprep.subr.bf16.mxu1 %v8713_v49  ;;  %v2792_v32 = vld [vmem:[#allocation16 + $0xab8] sm:$0xff]  ;;  %v6186_v49 = vrot.slane %v11033_v55, %v10293_v62 }
 0x521   :  { %6111 = vmatprep.subr.bf16.mxu0 %v8841_v17  ;;  %v8801_v35 = vcombine.high %v2788_v33, %v2792_v32  ;;  %v2652_v30 = vld [vmem:[#allocation16 + $0x658] sm:$0xff]  ;;  %v8672_v17 = vcombine.low %v2660_v24, %v2664_v29  ;;  %v8800_v54 = vcombine.low %v2788_v33, %v2792_v32 }
 0x522   :  { %v2656_v16 = vld [vmem:[#allocation16 + $0x678] sm:$0xff]  ;;  %v6220_v57 = vmul.f32 %v6186_v49, %v11021_v37 }
 0x523   :  { %6071 = vmatpush2.bf16.msra.mxu1 %v8712_v40  ;;  %v2780_v47 = vld [vmem:[#allocation16 + $0xa58] sm:$0xff]  ;;  %v8665_v36 = vcombine.high %v2652_v30, %v2656_v16  ;;  %v8664_v61 = vcombine.low %v2652_v30, %v2656_v16 }
 0x524   :  { %6112 = vmatpush2.bf16.msra.mxu0 %v8840_v18  ;;  %6072 = vmatprep.subr.bf16.mxu1 %v8705_v48  ;;  %v2784_v12 = vld [vmem:[#allocation16 + $0xa78] sm:$0xff]  ;;  %v11037_v18 = vld [vmem:[#allocation19] sm:$0xff] }
 0x525   :  { %6113 = vmatprep.subr.bf16.mxu0 %v8833_v41  ;;  %v8793_v53 = vcombine.high %v2780_v47, %v2784_v12  ;;  %v2644_v45 = vld [vmem:[#allocation16 + $0x618] sm:$0xff]  ;;  %v6236_v31 = vrot.slane %v11037_v18, %v10293_v62  ;;  %v8792_v63 = vcombine.low %v2780_v47, %v2784_v12 }
 0x526   :  { %v2648_v40 = vld [vmem:[#allocation16 + $0x638] sm:$0xff] }
 0x527   :  { %6073 = vmatpush2.bf16.msra.mxu1 %v8704_v59  ;;  %v2772_v48 = vld [vmem:[#allocation16 + $0xa18] sm:$0xff]  ;;  %v8657_v59 = vcombine.high %v2644_v45, %v2648_v40  ;;  %v6270_v46 = vadd.f32 %v6236_v31, %v6220_v57  ;;  %v8656_v5 = vcombine.low %v2644_v45, %v2648_v40  ;;  %v9487_v40 = vld [vmem:[%s11799_s13 + $0x4c] ss:$12 sps:$4 sm:$0xff]  }
 0x528   :  { %6114 = vmatpush2.bf16.msra.mxu0 %v8832_v1  ;;  %6074 = vmatprep.subr.bf16.mxu1 %v8697_v2  ;;  %v2776_v41 = vld [vmem:[#allocation16 + $0xa38] sm:$0xff] }
 0x529   :  { %6115 = vmatprep.subr.bf16.mxu0 %v8825_v3  ;;  %v8785_v1 = vcombine.high %v2772_v48, %v2776_v41  ;;  %v2892_v2 = vld [vmem:[#allocation16 + $0xdd8] sm:$0xff]  ;;  %v8784_v6 = vcombine.low %v2772_v48, %v2776_v41 }
 0x52a   :  { %v2896_v3 = vld [vmem:[#allocation16 + $0xdf8] sm:$0xff] }
 0x52b   :  { %6075 = vmatpush2.bf16.msra.mxu1 %v8696_v8  ;;  %v8905_v37 = vcombine.high %v2892_v2, %v2896_v3  ;;  %v2884_v8 = vld [vmem:[#allocation16 + $0xd98] sm:$0xff] }
 0x52c   :  { %6116 = vmatpush2.bf16.msra.mxu0 %v8824_v43  ;;  %6076 = vmatprep.subr.bf16.mxu1 %v8689_v4  ;;  %v2888_v43 = vld [vmem:[#allocation16 + $0xdb8] sm:$0xff]  ;;  %v8904_v4 = vcombine.low %v2892_v2, %v2896_v3  ;;  %v9488_v3 = vld [vmem:[%s11799_s13 + $0x30] ss:$12 sps:$4 sm:$0xff]  }
 0x52d   :  { %6117 = vmatprep.subr.bf16.mxu0 %v8817_v9  ;;  %v6278_v9 = vmax.f32 %v6270_v46, 0.0  ;;  %v9473_v13 = vld [vmem:[%s11799_s13 + $0xa8] ss:$12 sps:$4 sm:$0xff]   ;;  %v8897_v51 = vcombine.high %v2884_v8, %v2888_v43  ;;  %v8896_v29 = vcombine.low %v2884_v8, %v2888_v43  ;;  %v9479_v16 = vld [vmem:[%s11799_s13 + $0x78] ss:$12 sps:$4 sm:$0xff]  }
 0x52e   :  { %v2876_v52 = vld [vmem:[#allocation16 + $0xd58] sm:$0xff] }
 0x52f   :  { %6077 = vmatpush2.bf16.msra.mxu1 %v8688_v21  ;;  %v2880_v38 = vld [vmem:[#allocation16 + $0xd78] sm:$0xff]  ;;  %v11058_v24 = vpack.c.bf16 %v6278_v9, %v6278_v9 }
 0x530   :  { %6118 = vmatpush2.bf16.msra.mxu0 %v8816_v23  ;;  %6078 = vmatprep.subr.bf16.mxu1 %v8681_v26  ;;  %v9478_v23 = vld [vmem:[%s11799_s13 + $0x94] ss:$12 sps:$4 sm:$0xff]   ;;  %v8889_v32 = vcombine.high %v2876_v52, %v2880_v38  ;;  %v9484_v49 = vld [vmem:[%s11799_s13 + $0x64] ss:$12 sps:$4 sm:$0xff]  }
 0x531   :  { %6119 = vmatprep.subr.bf16.mxu0 %v8809_v27  ;;  %v2852_v48 = vld [vmem:[#allocation16 + $0xc98] sm:$0xff] }
 0x532   :  { %v2856_v41 = vld [vmem:[#allocation16 + $0xcb8] sm:$0xff] }
 0x533   :  { %6079 = vmatpush2.bf16.msra.mxu1 %v8680_v25  ;;  %v2868_v25 = vld [vmem:[#allocation16 + $0xd18] sm:$0xff]  ;;  %v8864_v2 = vcombine.low %v2852_v48, %v2856_v41 }
 0x534   :  { %6120 = vmatpush2.bf16.msra.mxu0 %v8808_v22  ;;  %6080 = vmatprep.subr.bf16.mxu1 %v8673_v42  ;;  %v2872_v22 = vld [vmem:[#allocation16 + $0xd38] sm:$0xff] }
 0x535   :  { %6121 = vmatprep.subr.bf16.mxu0 %v8801_v35  ;;  %v8888_v35 = vcombine.low %v2876_v52, %v2880_v38  ;;  %v8881_v47 = vcombine.high %v2868_v25, %v2872_v22  ;;  %v9485_v31 = vld [vmem:[%s11799_s13 + $0x48] ss:$12 sps:$4 sm:$0xff]   ;;  %v9491_v8 = vld [vmem:[%s11799_s13 + $0x18] ss:$12 sps:$4 sm:$0xff]   ;;  %v9494_v52 = vld [vmem:[%s11799_s13] ss:$12 sps:$4 sm:$0xff]  }
 0x536   :  { %v2956_v9 = vld [vmem:[#allocation16 + $0xfd8] sm:$0xff] }
 0x537   :  { %6081 = vmatpush2.bf16.msra.mxu1 %v8672_v17  ;;  %v2860_v17 = vld [vmem:[#allocation16 + $0xcd8] sm:$0xff] }
 0x538   :  { %6122 = vmatpush2.bf16.msra.mxu0 %v8800_v54  ;;  %6082 = vmatprep.subr.bf16.mxu1 %v8665_v36  ;;  %v2864_v54 = vld [vmem:[#allocation16 + $0xcf8] sm:$0xff]  ;;  %v8880_v36 = vcombine.low %v2868_v25, %v2872_v22  ;;  %v9502_v25 = vld [vmem:[%s11799_s13 + $0x154] ss:$12 sps:$4 sm:$0xff]  }
 0x539   :  { %6123 = vmatprep.subr.bf16.mxu0 %v8793_v53  ;;  %v9482_v53 = vld [vmem:[%s11799_s13 + $0x60] ss:$12 sps:$4 sm:$0xff]   ;;  %v8873_v45 = vcombine.high %v2860_v17, %v2864_v54  ;;  %v8872_v57 = vcombine.low %v2860_v17, %v2864_v54  ;;  %v2940_v22 = vld [vmem:[#allocation16 + $0xf58] sm:$0xff] }
 0x53a   :  { %v9503_v17 = vld [vmem:[%s11799_s13 + $0x138] ss:$12 sps:$4 sm:$0xff]  }
 0x53b   :  { %6083 = vmatpush2.bf16.msra.mxu1 %v8664_v61  ;;  %v8865_v61 = vcombine.high %v2852_v48, %v2856_v41  ;;  %v9506_v48 = vld [vmem:[%s11799_s13 + $0x120] ss:$12 sps:$4 sm:$0xff]  }
 0x53c   :  { %6124 = vmatpush2.bf16.msra.mxu0 %v8792_v63  ;;  %6084 = vmatprep.subr.bf16.mxu1 %v8657_v59  ;;  %v9490_v63 = vld [vmem:[%s11799_s13 + $0x34] ss:$12 sps:$4 sm:$0xff]   ;;  %v2844_v59 = vld [vmem:[#allocation16 + $0xc58] sm:$0xff] }
 0x53d   :  { %6125 = vmatprep.subr.bf16.mxu0 %v8785_v1  ;;  %v2848_v1 = vld [vmem:[#allocation16 + $0xc78] sm:$0xff] }
 0x53e   :  { %v8857_v46 = vcombine.high %v2844_v59, %v2848_v1 }
 0x53f   :  { %6085 = vmatpush2.bf16.msra.mxu1 %v8656_v5  ;;  %v9493_v5 = vld [vmem:[%s11799_s13 + $0x1c] ss:$12 sps:$4 sm:$0xff]  }
 0x540   :  { %6126 = vmatpush2.bf16.msra.mxu0 %v8784_v6  ;;  %6136 = vmatprep.subr.bf16.mxu1 %v8905_v37  ;;  %v2836_v6 = vld [vmem:[#allocation16 + $0xc18] sm:$0xff] }
 0x541   :  { %7573 = vmatprep.subr.bf16.mxu0 %v9475_v0  ;;  %v2840_v37 = vld [vmem:[#allocation16 + $0xc38] sm:$0xff]  ;;  %v8856_v0 = vcombine.low %v2844_v59, %v2848_v1 }
 0x542   :  { %v5842_v21 = vpop.f32.mrf.mxu1  ;;  %6087 = vmatmul.mubr.bf16.vlgmr.msra.gmra.mxu1 %v10927_v56  ;;  %v9476_v56 = vld [vmem:[%s11799_s13 + $0x90] ss:$12 sps:$4 sm:$0xff]   ;;  %v8849_v43 = vcombine.high %v2836_v6, %v2840_v37  ;;  %v9509_v59 = vld [vmem:[%s11799_s13 + $0x108] ss:$12 sps:$4 sm:$0xff]  }
 0x543   :  { %v11053_v26 = vadd.f32 %v5842_v21, %v11027_v39  ;;  %v11055_v27 = vpop.f32.mrf.mxu0  ;;  %6128 = vmatmul.mubr.bf16.vlgmr.msra.gmra.mxu0 %v10953_v44  ;;  %6137 = vmatpush1.bf16.msra.mxu1 %v8904_v4  ;;  %v9481_v44 = vld [vmem:[%s11799_s13 + $0x7c] ss:$12 sps:$4 sm:$0xff]   ;;  %v9496_v4 = vld [vmem:[%s11799_s13 + $0x4] ss:$12 sps:$4 sm:$0xff]   ;;  %v9499_v21 = vld [vmem:[%s11799_s13 + $0x16c] ss:$12 sps:$4 sm:$0xff]  }
 0x544   :  { %6168 = vmatprep.mubr.bf16.mxu1 %v10980_v28  ;;  %7574 = vmatpush1.bf16.msra.mxu0 %v9473_v13  ;;  %v11061_v33 = vpop.f32.mrf.mxu1  ;;  %v2960_v13 = vld [vmem:[#allocation16 + $0xff8] sm:$0xff] }
 0x545   :  { %7605 = vmatprep.mubr.bf16.mxu0 %v11058_v24  ;;  %v11067_v39 = vpop.f32.mrf.mxu0  ;;  %6138 = vmatprep.subr.bf16.mxu1 %v8897_v51  ;;  %v8848_v51 = vcombine.low %v2836_v6, %v2840_v37  ;;  %v8969_v38 = vcombine.high %v2956_v9, %v2960_v13  ;;  %v5845_v6 = vadd.f32 %v11061_v33, %v11031_v11  ;;  %v9517_v11 = vld [vmem:[%s11799_s13 + $0xdc] ss:$12 sps:$4 sm:$0xff]  }
 0x546   :  { %v5846_v28 = vpop.f32.mrf.mxu1  ;;  %7575 = vmatprep.subr.bf16.mxu0 %v9478_v23  ;;  %v2948_v23 = vld [vmem:[#allocation16 + $0xf98] sm:$0xff]  ;;  %v6194_v37 = vrot.slane %v11033_v55, %v10904_v10 }
 0x547   :  { %v5887_v42 = vpop.f32.mrf.mxu0  ;;  %6139 = vmatpush1.bf16.msra.mxu1 %v8896_v29  ;;  %v2952_v29 = vld [vmem:[#allocation16 + $0xfb8] sm:$0xff] }
 0x548   :  { %7576 = vmatpush1.bf16.msra.mxu0 %v9476_v56  ;;  %v5847_v30 = vpop.f32.mrf.mxu1  ;;  %6140 = vmatprep.subr.bf16.mxu1 %v8889_v32  ;;  %v8968_v56 = vcombine.low %v2956_v9, %v2960_v13  ;;  %v9497_v32 = vld [vmem:[%s11799_s13 + $0x168] ss:$12 sps:$4 sm:$0xff]   ;;  %v8960_v42 = vcombine.low %v2948_v23, %v2952_v29  ;;  %v6232_v9 = vrot.slane %v11037_v18, %v10290_v60 }
 0x549   :  { %v5888_v12 = vpop.f32.mrf.mxu0  ;;  %7577 = vmatprep.subr.bf16.mxu0 %v9481_v44  ;;  %v8961_v44 = vcombine.high %v2948_v23, %v2952_v29  ;;  %v2944_v28 = vld [vmem:[#allocation16 + $0xf78] sm:$0xff] }
 0x54a   :  { %v8953_v30 = vcombine.high %v2940_v22, %v2944_v28  ;;  %v2936_v12 = vld [vmem:[#allocation16 + $0xf38] sm:$0xff] }
 0x54b   :  { %6141 = vmatpush1.bf16.msra.mxu1 %v8888_v35  ;;  %v9500_v35 = vld [vmem:[%s11799_s13 + $0x150] ss:$12 sps:$4 sm:$0xff]   ;;  %v2900_v33 = vld [vmem:[#allocation16 + $0xe18] sm:$0xff] }
 0x54c   :  { %7578 = vmatpush1.bf16.msra.mxu0 %v9479_v16  ;;  %6142 = vmatprep.subr.bf16.mxu1 %v8881_v47  ;;  %v9505_v16 = vld [vmem:[%s11799_s13 + $0x13c] ss:$12 sps:$4 sm:$0xff]   ;;  %v9520_v29 = vld [vmem:[%s11799_s13 + $0xc4] ss:$12 sps:$4 sm:$0xff]  }
 0x54d   :  { %7579 = vmatprep.subr.bf16.mxu0 %v9484_v49  ;;  %v2932_v47 = vld [vmem:[#allocation16 + $0xf18] sm:$0xff]  ;;  %v8952_v49 = vcombine.low %v2940_v22, %v2944_v28  ;;  %v9535_v22 = vld [vmem:[%s11799_s13 + $0x3ac] ss:$12 sps:$4 sm:$0xff]  }
 0x54e   :  { %v8945_v54 = vcombine.high %v2932_v47, %v2936_v12  ;;  %v2904_v13 = vld [vmem:[#allocation16 + $0xe38] sm:$0xff] }
 0x54f   :  { %6143 = vmatpush1.bf16.msra.mxu1 %v8880_v36  ;;  %v9508_v36 = vld [vmem:[%s11799_s13 + $0x124] ss:$12 sps:$4 sm:$0xff]  }
 0x550   :  { %7580 = vmatpush1.bf16.msra.mxu0 %v9482_v53  ;;  %6144 = vmatprep.subr.bf16.mxu1 %v8873_v45  ;;  %v2924_v53 = vld [vmem:[#allocation16 + $0xed8] sm:$0xff] }
 0x551   :  { %7581 = vmatprep.subr.bf16.mxu0 %v9487_v40  ;;  %v2928_v45 = vld [vmem:[#allocation16 + $0xef8] sm:$0xff]  ;;  %v8944_v40 = vcombine.low %v2932_v47, %v2936_v12 }
 0x552   :  { %v8937_v41 = vcombine.high %v2924_v53, %v2928_v45 }
 0x553   :  { %6145 = vmatpush1.bf16.msra.mxu1 %v8872_v57  ;;  %v9511_v57 = vld [vmem:[%s11799_s13 + $0x10c] ss:$12 sps:$4 sm:$0xff]  }
 0x554   :  { %7582 = vmatpush1.bf16.msra.mxu0 %v9485_v31  ;;  %6146 = vmatprep.subr.bf16.mxu1 %v8865_v61  ;;  %v2916_v31 = vld [vmem:[#allocation16 + $0xe98] sm:$0xff] }
 0x555   :  { %7583 = vmatprep.subr.bf16.mxu0 %v9490_v63  ;;  %v2920_v61 = vld [vmem:[#allocation16 + $0xeb8] sm:$0xff]  ;;  %v8936_v63 = vcombine.low %v2924_v53, %v2928_v45 }
 0x556   :  { %v8929_v1 = vcombine.high %v2916_v31, %v2920_v61 }
 0x557   :  { %6147 = vmatpush1.bf16.msra.mxu1 %v8864_v2  ;;  %v6182_v2 = vrot.slane %v11033_v55, %v10290_v60 }
 0x558   :  { %7584 = vmatpush1.bf16.msra.mxu0 %v9488_v3  ;;  %6148 = vmatprep.subr.bf16.mxu1 %v8857_v46  ;;  %v9514_v3 = vld [vmem:[%s11799_s13 + $0xf4] ss:$12 sps:$4 sm:$0xff]   ;;  %v2908_v46 = vld [vmem:[#allocation16 + $0xe58] sm:$0xff] }
 0x559   :  { %7585 = vmatprep.subr.bf16.mxu0 %v9493_v5  ;;  %v2912_v5 = vld [vmem:[#allocation16 + $0xe78] sm:$0xff] }
 0x55b   :  { %6149 = vmatpush1.bf16.msra.mxu1 %v8856_v0  ;;  %v8928_v0 = vcombine.low %v2916_v31, %v2920_v61  ;;  %v9527_v31 = vld [vmem:[%s11799_s13 + $0x1f8] ss:$12 sps:$4 sm:$0xff]  }
 0x55c   :  { %7586 = vmatpush1.bf16.msra.mxu0 %v9491_v8  ;;  %6150 = vmatprep.subr.bf16.mxu1 %v8849_v43  ;;  %v9512_v8 = vld [vmem:[%s11799_s13 + $0xf0] ss:$12 sps:$4 sm:$0xff]   ;;  %v8921_v43 = vcombine.high %v2908_v46, %v2912_v5 }
 0x55d   :  { %7587 = vmatprep.subr.bf16.mxu0 %v9496_v4  ;;  %v6219_v4 = vmul.f32 %v6182_v2, %v11014_v19  ;;  %v9515_v19 = vld [vmem:[%s11799_s13 + $0xd8] ss:$12 sps:$4 sm:$0xff]  }
 0x55e   :  { %v9553_v2 = vld [vmem:[%s11799_s13 + $0x364] ss:$12 sps:$4 sm:$0xff]  }
 0x55f   :  { %6151 = vmatpush1.bf16.msra.mxu1 %v8848_v51  ;;  %v6222_v51 = vmul.f32 %v6194_v37, %v5845_v6  ;;  %v6269_v23 = vadd.f32 %v6232_v9, %v6219_v4  ;;  %v9559_v6 = vld [vmem:[%s11799_s13 + $0x34c] ss:$12 sps:$4 sm:$0xff]   ;;  %v9536_v37 = vld [vmem:[%s11799_s13 + $0x1c8] ss:$12 sps:$4 sm:$0xff]   ;;  %v9542_v4 = vld [vmem:[%s11799_s13 + $0x1b0] ss:$12 sps:$4 sm:$0xff]  }
 0x560   :  { %7588 = vmatpush1.bf16.msra.mxu0 %v9494_v52  ;;  %6152 = vmatprep.subr.bf16.mxu1 %v8969_v38  ;;  %v6244_v52 = vrot.slane %v11037_v18, %v10904_v10  ;;  %v8920_v38 = vcombine.low %v2908_v46, %v2912_v5  ;;  %v9518_v10 = vld [vmem:[%s11799_s13 + $0xc0] ss:$12 sps:$4 sm:$0xff]   ;;  %v9550_v9 = vld [vmem:[%s11799_s13 + $0x19c] ss:$12 sps:$4 sm:$0xff]  }
 0x561   :  { %7589 = vmatprep.subr.bf16.mxu0 %v9499_v21  ;;  %v8913_v21 = vcombine.high %v2900_v33, %v2904_v13  ;;  %v9538_v46 = vld [vmem:[%s11799_s13 + $0x1cc] ss:$12 sps:$4 sm:$0xff]  }
 0x562   :  { %v9551_v5 = vld [vmem:[%s11799_s13 + $0x360] ss:$12 sps:$4 sm:$0xff]  }
 0x563   :  { %6153 = vmatpush2.bf16.msra.mxu1 %v8968_v56  ;;  %v6272_v56 = vadd.f32 %v6244_v52, %v6222_v51  ;;  %v9556_v51 = vld [vmem:[%s11799_s13 + $0x184] ss:$12 sps:$4 sm:$0xff]  }
 0x564   :  { %7590 = vmatpush2.bf16.msra.mxu0 %v9497_v32  ;;  %6154 = vmatprep.subr.bf16.mxu1 %v8961_v44  ;;  %v8912_v32 = vcombine.low %v2900_v33, %v2904_v13  ;;  %v9523_v44 = vld [vmem:[%s11799_s13 + $0x22c] ss:$12 sps:$4 sm:$0xff]   ;;  %v9571_v33 = vld [vmem:[%s11799_s13 + $0x31c] ss:$12 sps:$4 sm:$0xff]  }
 0x565   :  { %7591 = vmatprep.subr.bf16.mxu0 %v9502_v25  ;;  %v6277_v25 = vmax.f32 %v6269_v23, 0.0  ;;  %v6280_v28 = vmax.f32 %v6272_v56, 0.0  ;;  %v9548_v13 = vld [vmem:[%s11799_s13 + $0x198] ss:$12 sps:$4 sm:$0xff]   ;;  %v9575_v23 = vld [vmem:[%s11799_s13 + $0x300] ss:$12 sps:$4 sm:$0xff]  }
 0x566   :  { %v9569_v52 = vld [vmem:[%s11799_s13 + $0x318] ss:$12 sps:$4 sm:$0xff]   ;;  %v9560_v56 = vld [vmem:[%s11799_s13 + $0x2e8] ss:$12 sps:$4 sm:$0xff]  }
 0x567   :  { %6155 = vmatpush2.bf16.msra.mxu1 %v8960_v42  ;;  %v9521_v42 = vld [vmem:[%s11799_s13 + $0x228] ss:$12 sps:$4 sm:$0xff]   ;;  %v11182_v12 = vpack.c.bf16 %v6280_v28, %v6280_v28  ;;  %v9587_v28 = vld [vmem:[%s11799_s13 + $0x450] ss:$12 sps:$4 sm:$0xff]  }
 0x568   :  { %7592 = vmatpush2.bf16.msra.mxu0 %v9500_v35  ;;  %6156 = vmatprep.subr.bf16.mxu1 %v8953_v30  ;;  %v9526_v35 = vld [vmem:[%s11799_s13 + $0x214] ss:$12 sps:$4 sm:$0xff]   ;;  %v11176_v30 = vpack.c.bf16 %v6277_v25, %v6277_v25  ;;  %v9566_v25 = vld [vmem:[%s11799_s13 + $0x2d0] ss:$12 sps:$4 sm:$0xff]  }
 0x569   :  { %7593 = vmatprep.subr.bf16.mxu0 %v9505_v16  ;;  %v9533_v16 = vld [vmem:[%s11799_s13 + $0x3a8] ss:$12 sps:$4 sm:$0xff]  }
 0x56b   :  { %6157 = vmatpush2.bf16.msra.mxu1 %v8952_v49  ;;  %v9541_v49 = vld [vmem:[%s11799_s13 + $0x394] ss:$12 sps:$4 sm:$0xff]  }
 0x56c   :  { %7594 = vmatpush2.bf16.msra.mxu0 %v9503_v17  ;;  %6158 = vmatprep.subr.bf16.mxu1 %v8945_v54 }
 0x56d   :  { %7595 = vmatprep.subr.bf16.mxu0 %v9508_v36  ;;  %v9524_v36 = vld [vmem:[%s11799_s13 + $0x210] ss:$12 sps:$4 sm:$0xff]  }
 0x56f   :  { %6159 = vmatpush2.bf16.msra.mxu1 %v8944_v40  ;;  %v9539_v40 = vld [vmem:[%s11799_s13 + $0x390] ss:$12 sps:$4 sm:$0xff]  }
 0x570   :  { %7596 = vmatpush2.bf16.msra.mxu0 %v9506_v48  ;;  %6160 = vmatprep.subr.bf16.mxu1 %v8937_v41  ;;  %v9547_v41 = vld [vmem:[%s11799_s13 + $0x37c] ss:$12 sps:$4 sm:$0xff]  }
 0x571   :  { %7597 = vmatprep.subr.bf16.mxu0 %v9511_v57 }
 0x573   :  { %6161 = vmatpush2.bf16.msra.mxu1 %v8936_v63  ;;  %v9532_v63 = vld [vmem:[%s11799_s13 + $0x1e4] ss:$12 sps:$4 sm:$0xff]  }
 0x574   :  { %7598 = vmatpush2.bf16.msra.mxu0 %v9509_v59  ;;  %6162 = vmatprep.subr.bf16.mxu1 %v8929_v1  ;;  %v9545_v1 = vld [vmem:[%s11799_s13 + $0x378] ss:$12 sps:$4 sm:$0xff]  }
 0x575   :  { %7599 = vmatprep.subr.bf16.mxu0 %v9514_v3  ;;  %v9530_v3 = vld [vmem:[%s11799_s13 + $0x1e0] ss:$12 sps:$4 sm:$0xff]  }
 0x577   :  { %6163 = vmatpush2.bf16.msra.mxu1 %v8928_v0  ;;  %v9544_v0 = vld [vmem:[%s11799_s13 + $0x1b4] ss:$12 sps:$4 sm:$0xff]  }
 0x578   :  { %7600 = vmatpush2.bf16.msra.mxu0 %v9512_v8  ;;  %6164 = vmatprep.subr.bf16.mxu1 %v8921_v43  ;;  %v9557_v8 = vld [vmem:[%s11799_s13 + $0x348] ss:$12 sps:$4 sm:$0xff]  }
 0x579   :  { %7601 = vmatprep.subr.bf16.mxu0 %v9517_v11  ;;  %v9565_v43 = vld [vmem:[%s11799_s13 + $0x334] ss:$12 sps:$4 sm:$0xff]   ;;  %v9563_v11 = vld [vmem:[%s11799_s13 + $0x330] ss:$12 sps:$4 sm:$0xff]  }
 0x57b   :  { %6165 = vmatpush2.bf16.msra.mxu1 %v8920_v38  ;;  %v9577_v38 = vld [vmem:[%s11799_s13 + $0x304] ss:$12 sps:$4 sm:$0xff]  }
 0x57c   :  { %7602 = vmatpush2.bf16.msra.mxu0 %v9515_v19  ;;  %6166 = vmatprep.subr.bf16.mxu1 %v8913_v21  ;;  %v9554_v19 = vld [vmem:[%s11799_s13 + $0x180] ss:$12 sps:$4 sm:$0xff]  }
 0x57d   :  { %7603 = vmatprep.subr.bf16.mxu0 %v9520_v29  ;;  %v9562_v21 = vld [vmem:[%s11799_s13 + $0x2ec] ss:$12 sps:$4 sm:$0xff]  }
 0x57e   :  { %v9583_v29 = vld [vmem:[%s11799_s13 + $0x46c] ss:$12 sps:$4 sm:$0xff]  }
 0x57f   :  { %6167 = vmatpush2.bf16.msra.mxu1 %v8912_v32  ;;  %v9568_v32 = vld [vmem:[%s11799_s13 + $0x2d4] ss:$12 sps:$4 sm:$0xff]  }
 0x580   :  { %7604 = vmatpush2.bf16.msra.mxu0 %v9518_v10  ;;  %7614 = vmatprep.subr.bf16.mxu1 %v9523_v44  ;;  %v9581_v10 = vld [vmem:[%s11799_s13 + $0x468] ss:$12 sps:$4 sm:$0xff]  }
 0x581   :  { %7655 = vmatprep.subr.bf16.mxu0 %v9535_v22  ;;  %v9589_v44 = vld [vmem:[%s11799_s13 + $0x454] ss:$12 sps:$4 sm:$0xff]   ;;  %v9574_v22 = vld [vmem:[%s11799_s13 + $0x2bc] ss:$12 sps:$4 sm:$0xff]  }
 0x582   :  { %v5924_v47 = vpop.f32.mrf.mxu1  ;;  %6169 = vmatmul.mubr.bf16.vlgmr.msra.gmra.mxu1 %v10984_v34  ;;  %v9529_v34 = vld [vmem:[%s11799_s13 + $0x1fc] ss:$12 sps:$4 sm:$0xff]  }
 0x583   :  { %v5925_v17 = vadd.f32 %v5924_v47, %v11055_v27  ;;  %v5965_v54 = vpop.f32.mrf.mxu0  ;;  %7606 = vmatmul.mubr.bf16.vlgmr.msra.gmra.mxu0 %v11176_v30  ;;  %7615 = vmatpush1.bf16.msra.mxu1 %v9521_v42  ;;  %v9595_v42 = vld [vmem:[%s11799_s13 + $0x43c] ss:$12 sps:$4 sm:$0xff]   ;;  %v9593_v47 = vld [vmem:[%s11799_s13 + $0x438] ss:$12 sps:$4 sm:$0xff]  }
 0x584   :  { %7646 = vmatprep.mubr.bf16.mxu1 %v11182_v12  ;;  %v11193_v53 = vpop.f32.mrf.mxu1  ;;  %7616 = vmatprep.subr.bf16.mxu1 %v9526_v35  ;;  %v9572_v35 = vld [vmem:[%s11799_s13 + $0x2b8] ss:$12 sps:$4 sm:$0xff]  }
 0x585   :  { %v11198_v45 = vadd.f32 %v5965_v54, %v5925_v17  ;;  %v11200_v27 = vpop.f32.mrf.mxu0  ;;  %7656 = vmatpush1.bf16.msra.mxu0 %v9533_v16  ;;  %v9580_v16 = vld [vmem:[%s11799_s13 + $0x2a4] ss:$12 sps:$4 sm:$0xff]   ;;  %v9578_v17 = vld [vmem:[%s11799_s13 + $0x2a0] ss:$12 sps:$4 sm:$0xff]  }
 0x586   :  { %v5928_v48 = vpop.f32.mrf.mxu1  ;;  %7657 = vmatprep.subr.bf16.mxu0 %v9541_v49  ;;  %v9601_v49 = vld [vmem:[%s11799_s13 + $0x424] ss:$12 sps:$4 sm:$0xff]   ;;  %v9586_v54 = vld [vmem:[%s11799_s13 + $0x28c] ss:$12 sps:$4 sm:$0xff]  }
 0x587   :  { %v5969_v57 = vpop.f32.mrf.mxu0  ;;  %7617 = vmatpush1.bf16.msra.mxu1 %v9524_v36  ;;  %v9599_v36 = vld [vmem:[%s11799_s13 + $0x420] ss:$12 sps:$4 sm:$0xff]   ;;  %v6190_v48 = vrot.slane %v11033_v55, %v10300_v7 }
 0x588   :  { %v5929_v61 = vpop.f32.mrf.mxu1  ;;  %7618 = vmatprep.subr.bf16.mxu1 %v9529_v34  ;;  %v9607_v34 = vld [vmem:[%s11799_s13 + $0x40c] ss:$12 sps:$4 sm:$0xff]   ;;  %v9605_v57 = vld [vmem:[%s11799_s13 + $0x408] ss:$12 sps:$4 sm:$0xff]  }
 0x589   :  { %v5970_v59 = vpop.f32.mrf.mxu0  ;;  %7658 = vmatpush1.bf16.msra.mxu0 %v9539_v40  ;;  %v9584_v40 = vld [vmem:[%s11799_s13 + $0x288] ss:$12 sps:$4 sm:$0xff]   ;;  %v9590_v61 = vld [vmem:[%s11799_s13 + $0x270] ss:$12 sps:$4 sm:$0xff]  }
 0x58a   :  { %7659 = vmatprep.subr.bf16.mxu0 %v9547_v41  ;;  %v9592_v41 = vld [vmem:[%s11799_s13 + $0x274] ss:$12 sps:$4 sm:$0xff]   ;;  %v6240_v59 = vrot.slane %v11037_v18, %v10300_v7 }
 0x58b   :  { %7619 = vmatpush1.bf16.msra.mxu1 %v9527_v31  ;;  %v9610_v31 = vld [vmem:[%s11799_s13 + $0x3f4] ss:$12 sps:$4 sm:$0xff]  }
 0x58c   :  { %7620 = vmatprep.subr.bf16.mxu1 %v9532_v63  ;;  %v6221_v63 = vmul.f32 %v6190_v48, %v11053_v26  ;;  %v9596_v26 = vld [vmem:[%s11799_s13 + $0x258] ss:$12 sps:$4 sm:$0xff]   ;;  %v9661_v48 = vld [vmem:[%s11799_s13 + $0x4c8] ss:$12 sps:$4 sm:$0xff]  }
 0x58d   :  { %7660 = vmatpush1.bf16.msra.mxu0 %v9545_v1  ;;  %v9598_v1 = vld [vmem:[%s11799_s13 + $0x25c] ss:$12 sps:$4 sm:$0xff]  }
 0x58e   :  { %7661 = vmatprep.subr.bf16.mxu0 %v9553_v2  ;;  %v9608_v2 = vld [vmem:[%s11799_s13 + $0x3f0] ss:$12 sps:$4 sm:$0xff]  }
 0x58f   :  { %7621 = vmatpush1.bf16.msra.mxu1 %v9530_v3  ;;  %v9613_v3 = vld [vmem:[%s11799_s13 + $0x3dc] ss:$12 sps:$4 sm:$0xff]  }
 0x590   :  { %7622 = vmatprep.subr.bf16.mxu1 %v9538_v46  ;;  %v6271_v46 = vadd.f32 %v6240_v59, %v6221_v63  ;;  %v9669_v63 = vld [vmem:[%s11799_s13 + $0x49c] ss:$12 sps:$4 sm:$0xff]  }
 0x591   :  { %7662 = vmatpush1.bf16.msra.mxu0 %v9551_v5  ;;  %v9604_v5 = vld [vmem:[%s11799_s13 + $0x244] ss:$12 sps:$4 sm:$0xff]   ;;  %v9623_v59 = vld [vmem:[%s11799_s13 + $0x128] ss:$12 sps:$4 sm:$0xff]  }
 0x592   :  { %7663 = vmatprep.subr.bf16.mxu0 %v9559_v6  ;;  %v9611_v6 = vld [vmem:[%s11799_s13 + $0x3d8] ss:$12 sps:$4 sm:$0xff]  }
 0x593   :  { %7623 = vmatpush1.bf16.msra.mxu1 %v9536_v37  ;;  %v9616_v37 = vld [vmem:[%s11799_s13 + $0x3c4] ss:$12 sps:$4 sm:$0xff]  }
 0x594   :  { %7624 = vmatprep.subr.bf16.mxu1 %v9544_v0  ;;  %v9602_v0 = vld [vmem:[%s11799_s13 + $0x240] ss:$12 sps:$4 sm:$0xff]  }
 0x595   :  { %7664 = vmatpush1.bf16.msra.mxu0 %v9557_v8  ;;  %v6279_v8 = vmax.f32 %v6271_v46, 0.0  ;;  %v9670_v46 = vld [vmem:[%s11799_s13 + $0x480] ss:$12 sps:$4 sm:$0xff]  }
 0x596   :  { %7665 = vmatprep.subr.bf16.mxu0 %v9565_v43  ;;  %v9651_v43 = vld [vmem:[%s11799_s13 + $0x52c] ss:$12 sps:$4 sm:$0xff]  }
 0x597   :  { %7625 = vmatpush1.bf16.msra.mxu1 %v9542_v4  ;;  %v9614_v4 = vld [vmem:[%s11799_s13 + $0x3c0] ss:$12 sps:$4 sm:$0xff]  }
 0x598   :  { %7626 = vmatprep.subr.bf16.mxu1 %v9550_v9  ;;  %v9617_v9 = vld [vmem:[%s11799_s13 + $0x170] ss:$12 sps:$4 sm:$0xff]  }
 0x599   :  { %7666 = vmatpush1.bf16.msra.mxu0 %v9563_v11  ;;  %v5927_v11 = vadd.f32 %v11193_v53, %v11067_v39 }
 0x59a   :  { %7667 = vmatprep.subr.bf16.mxu0 %v9571_v33  ;;  %v9649_v33 = vld [vmem:[%s11799_s13 + $0x528] ss:$12 sps:$4 sm:$0xff]  }
 0x59b   :  { %7627 = vmatpush1.bf16.msra.mxu1 %v9548_v13  ;;  %v11386_v13 = vpack.c.bf16 %v6279_v8, %v6279_v8  ;;  %v5968_v39 = vadd.f32 %v11200_v27, %v5927_v11  ;;  %v9657_v27 = vld [vmem:[%s11799_s13 + $0x4fc] ss:$12 sps:$4 sm:$0xff]   ;;  %v9678_v8 = vld [vmem:[%s11799_s13 + $0x5d4] ss:$12 sps:$4 sm:$0xff]  }
 0x59c   :  { %7628 = vmatprep.subr.bf16.mxu1 %v9556_v51  ;;  %v9654_v51 = vld [vmem:[%s11799_s13 + $0x514] ss:$12 sps:$4 sm:$0xff]   ;;  %v9681_v11 = vld [vmem:[%s11799_s13 + $0x5bc] ss:$12 sps:$4 sm:$0xff]  }
 0x59d   :  { %7668 = vmatpush1.bf16.msra.mxu0 %v9569_v52  ;;  %v6198_v52 = vrot.slane %v11033_v55, %v10925_v20 }
 0x59e   :  { %7669 = vmatprep.subr.bf16.mxu0 %v9577_v38 }
 0x59f   :  { %7629 = vmatpush1.bf16.msra.mxu1 %v9554_v19  ;;  %v6248_v19 = vrot.slane %v11037_v18, %v10925_v20  ;;  %v6252_v20 = vrot.slane %v11037_v18, %v10931_v58 }
 0x5a0   :  { %7630 = vmatprep.subr.bf16.mxu1 %v9562_v21 }
 0x5a1   :  { %7670 = vmatpush1.bf16.msra.mxu0 %v9575_v23  ;;  %v6202_v23 = vrot.slane %v11033_v55, %v10931_v58 }
 0x5a2   :  { %7671 = vmatprep.subr.bf16.mxu0 %v9583_v29  ;;  %v9652_v29 = vld [vmem:[%s11799_s13 + $0x510] ss:$12 sps:$4 sm:$0xff]  }
 0x5a3   :  { %7631 = vmatpush2.bf16.msra.mxu1 %v9560_v56 }
 0x5a4   :  { %7632 = vmatprep.subr.bf16.mxu1 %v9568_v32 }
 0x5a5   :  { %7672 = vmatpush2.bf16.msra.mxu0 %v9581_v10 }
 0x5a6   :  { %7673 = vmatprep.subr.bf16.mxu0 %v9589_v44 }
 0x5a7   :  { %7633 = vmatpush2.bf16.msra.mxu1 %v9566_v25 }
 0x5a8   :  { %7634 = vmatprep.subr.bf16.mxu1 %v9574_v22 }
 0x5a9   :  { %7674 = vmatpush2.bf16.msra.mxu0 %v9587_v28  ;;  %v9655_v28 = vld [vmem:[%s11799_s13 + $0x4f8] ss:$12 sps:$4 sm:$0xff]  }
 0x5aa   :  { %7675 = vmatprep.subr.bf16.mxu0 %v9595_v42 }
 0x5ab   :  { %7635 = vmatpush2.bf16.msra.mxu1 %v9572_v35  ;;  %v9660_v35 = vld [vmem:[%s11799_s13 + $0x4e4] ss:$12 sps:$4 sm:$0xff]  }
 0x5ac   :  { %7636 = vmatprep.subr.bf16.mxu1 %v9580_v16 }
 0x5ad   :  { %7676 = vmatpush2.bf16.msra.mxu0 %v9593_v47 }
 0x5ae   :  { %7677 = vmatprep.subr.bf16.mxu0 %v9601_v49  ;;  %v9658_v49 = vld [vmem:[%s11799_s13 + $0x4e0] ss:$12 sps:$4 sm:$0xff]  }
 0x5af   :  { %7637 = vmatpush2.bf16.msra.mxu1 %v9578_v17  ;;  %v9663_v17 = vld [vmem:[%s11799_s13 + $0x4cc] ss:$12 sps:$4 sm:$0xff]  }
 0x5b0   :  { %7638 = vmatprep.subr.bf16.mxu1 %v9586_v54 }
 0x5b1   :  { %7678 = vmatpush2.bf16.msra.mxu0 %v9599_v36  ;;  %v9618_v36 = vld [vmem:[%s11799_s13 + $0xb0] ss:$12 sps:$4 sm:$0xff]  }
 0x5b2   :  { %7679 = vmatprep.subr.bf16.mxu0 %v9607_v34 }
 0x5b3   :  { %7639 = vmatpush2.bf16.msra.mxu1 %v9584_v40  ;;  %v9619_v40 = vld [vmem:[%s11799_s13 + $0x158] ss:$12 sps:$4 sm:$0xff]  }
 0x5b4   :  { %7640 = vmatprep.subr.bf16.mxu1 %v9592_v41  ;;  %v9666_v41 = vld [vmem:[%s11799_s13 + $0x4b4] ss:$12 sps:$4 sm:$0xff]  }
 0x5b5   :  { %7680 = vmatpush2.bf16.msra.mxu0 %v9605_v57  ;;  %v9620_v57 = vld [vmem:[%s11799_s13 + $0x98] ss:$12 sps:$4 sm:$0xff]  }
 0x5b6   :  { %7681 = vmatprep.subr.bf16.mxu0 %v9610_v31  ;;  %v9621_v31 = vld [vmem:[%s11799_s13 + $0x140] ss:$12 sps:$4 sm:$0xff]  }
 0x5b7   :  { %7641 = vmatpush2.bf16.msra.mxu1 %v9590_v61  ;;  %v9664_v61 = vld [vmem:[%s11799_s13 + $0x4b0] ss:$12 sps:$4 sm:$0xff]  }
 0x5b8   :  { %7642 = vmatprep.subr.bf16.mxu1 %v9598_v1  ;;  %v9667_v1 = vld [vmem:[%s11799_s13 + $0x498] ss:$12 sps:$4 sm:$0xff]  }
 0x5b9   :  { %7682 = vmatpush2.bf16.msra.mxu0 %v9608_v2  ;;  %v9672_v2 = vld [vmem:[%s11799_s13 + $0x484] ss:$12 sps:$4 sm:$0xff]  }
 0x5ba   :  { %7683 = vmatprep.subr.bf16.mxu0 %v9613_v3  ;;  %v9624_v3 = vld [vmem:[%s11799_s13 + $0x68] ss:$12 sps:$4 sm:$0xff]  }
 0x5bb   :  { %7643 = vmatpush2.bf16.msra.mxu1 %v9596_v26  ;;  %v9625_v26 = vld [vmem:[%s11799_s13 + $0x110] ss:$12 sps:$4 sm:$0xff]  }
 0x5bc   :  { %7644 = vmatprep.subr.bf16.mxu1 %v9604_v5  ;;  %v9675_v5 = vld [vmem:[%s11799_s13 + $0x5ec] ss:$12 sps:$4 sm:$0xff]  }
 0x5bd   :  { %7684 = vmatpush2.bf16.msra.mxu0 %v9611_v6  ;;  %v9626_v6 = vld [vmem:[%s11799_s13 + $0x50] ss:$12 sps:$4 sm:$0xff]  }
 0x5be   :  { %7685 = vmatprep.subr.bf16.mxu0 %v9616_v37  ;;  %v9627_v37 = vld [vmem:[%s11799_s13 + $0xf8] ss:$12 sps:$4 sm:$0xff]  }
 0x5bf   :  { %7645 = vmatpush2.bf16.msra.mxu1 %v9602_v0  ;;  %v9673_v0 = vld [vmem:[%s11799_s13 + $0x5e8] ss:$12 sps:$4 sm:$0xff]  }
 0x5c0   :  { %7696 = vmatprep.subr.bf16.mxu1 %v9651_v43  ;;  %v9628_v43 = vld [vmem:[%s11799_s13 + $0x38] ss:$12 sps:$4 sm:$0xff]  }
 0x5c1   :  { %7686 = vmatpush2.bf16.msra.mxu0 %v9614_v4  ;;  %v9629_v4 = vld [vmem:[%s11799_s13 + $0xe0] ss:$12 sps:$4 sm:$0xff]  }
 0x5c2   :  { %v6006_v38 = vpop.f32.mrf.mxu1  ;;  %7647 = vmatmul.mubr.bf16.vlgmr.msra.gmra.mxu1 %v11386_v13  ;;  %9216 = vmatprep.subr.bf16.mxu0 %v9617_v9  ;;  %v9676_v9 = vld [vmem:[%s11799_s13 + $0x5d0] ss:$12 sps:$4 sm:$0xff]  }
 0x5c3   :  { %v6007_v53 = vadd.f32 %v6006_v38, %v11198_v45  ;;  %v11398_v21 = vpop.f32.mrf.mxu0  ;;  %7697 = vmatpush1.bf16.msra.mxu1 %v9649_v33  ;;  %v9630_v33 = vld [vmem:[%s11799_s13 + $0x20] ss:$12 sps:$4 sm:$0xff]   ;;  %v9684_v38 = vld [vmem:[%s11799_s13 + $0x5a4] ss:$12 sps:$4 sm:$0xff]  }
 0x5c4   :  { %v6008_v56 = vpop.f32.mrf.mxu1  ;;  %7698 = vmatprep.subr.bf16.mxu1 %v9654_v51  ;;  %v9631_v51 = vld [vmem:[%s11799_s13 + $0xc8] ss:$12 sps:$4 sm:$0xff]  }
 0x5c5   :  { %v6223_v45 = vmul.f32 %v6198_v52, %v6007_v53  ;;  %v6009_v32 = vadd.f32 %v6008_v56, %v5968_v39  ;;  %v11410_v10 = vpop.f32.mrf.mxu0  ;;  %v9679_v52 = vld [vmem:[%s11799_s13 + $0x5b8] ss:$12 sps:$4 sm:$0xff]   ;;  %v9632_v39 = vld [vmem:[%s11799_s13 + $0x8] ss:$12 sps:$4 sm:$0xff]   ;;  %v9633_v53 = vld [vmem:[%s11799_s13 + $0x470] ss:$12 sps:$4 sm:$0xff]  }
 0x5c6   :  { %v6010_v44 = vpop.f32.mrf.mxu1  ;;  %v9635_v56 = vld [vmem:[%s11799_s13 + $0x458] ss:$12 sps:$4 sm:$0xff]  }
 0x5c7   :  { %v6273_v55 = vadd.f32 %v6248_v19, %v6223_v45  ;;  %v6224_v25 = vmul.f32 %v6202_v23, %v6009_v32  ;;  %v6051_v22 = vpop.f32.mrf.mxu0  ;;  %7699 = vmatpush1.bf16.msra.mxu1 %v9652_v29  ;;  %v9682_v19 = vld [vmem:[%s11799_s13 + $0x5a0] ss:$12 sps:$4 sm:$0xff]   ;;  %v9634_v29 = vld [vmem:[%s11799_s13 + $0x3b0] ss:$12 sps:$4 sm:$0xff]   ;;  %v9636_v32 = vld [vmem:[%s11799_s13 + $0x398] ss:$12 sps:$4 sm:$0xff]  }
 0x5c8   :  { %v6011_v42 = vpop.f32.mrf.mxu1  ;;  %7700 = vmatprep.subr.bf16.mxu1 %v9657_v27  ;;  %v9687_v23 = vld [vmem:[%s11799_s13 + $0x58c] ss:$12 sps:$4 sm:$0xff]   ;;  %v9685_v27 = vld [vmem:[%s11799_s13 + $0x588] ss:$12 sps:$4 sm:$0xff]  }
 0x5c9   :  { %v6274_v16 = vadd.f32 %v6252_v20, %v6224_v25  ;;  %v6052_v47 = vpop.f32.mrf.mxu0  ;;  %v6281_v58 = vmax.f32 %v6273_v55, 0.0  ;;  %v9690_v45 = vld [vmem:[%s11799_s13 + $0x574] ss:$12 sps:$4 sm:$0xff]   ;;  %v9693_v44 = vld [vmem:[%s11799_s13 + $0x55c] ss:$12 sps:$4 sm:$0xff]  }
 0x5ca   :  { %v9637_v20 = vld [vmem:[%s11799_s13 + $0x440] ss:$12 sps:$4 sm:$0xff]   ;;  %v9639_v25 = vld [vmem:[%s11799_s13 + $0x428] ss:$12 sps:$4 sm:$0xff]   ;;  %v9691_v22 = vld [vmem:[%s11799_s13 + $0x558] ss:$12 sps:$4 sm:$0xff]  }
 0x5cb   :  { %v6282_v18 = vmax.f32 %v6274_v16, 0.0  ;;  %7701 = vmatpush1.bf16.msra.mxu1 %v9655_v28  ;;  %v11429_v34 = vpack.c.bf16 %v6281_v58, %v6281_v58  ;;  %v9638_v55 = vld [vmem:[%s11799_s13 + $0x380] ss:$12 sps:$4 sm:$0xff]   ;;  %v9696_v28 = vld [vmem:[%s11799_s13 + $0x544] ss:$12 sps:$4 sm:$0xff]  }
 0x5cc   :  { %7702 = vmatprep.subr.bf16.mxu1 %v9660_v35  ;;  %v9640_v42 = vld [vmem:[%s11799_s13 + $0x368] ss:$12 sps:$4 sm:$0xff]   ;;  %v9641_v35 = vld [vmem:[%s11799_s13 + $0x410] ss:$12 sps:$4 sm:$0xff]   ;;  %v9694_v16 = vld [vmem:[%s11799_s13 + $0x540] ss:$12 sps:$4 sm:$0xff]  }
 0x5cd   :  { %v11424_v54 = vpack.c.bf16 %v6282_v18, %v6282_v18  ;;  %v9697_v47 = vld [vmem:[%s11799_s13 + $0x2f0] ss:$12 sps:$4 sm:$0xff]   ;;  %v9643_v18 = vld [vmem:[%s11799_s13 + $0x3f8] ss:$12 sps:$4 sm:$0xff]  }
 0x5ce   :  { %v9642_v58 = vld [vmem:[%s11799_s13 + $0x350] ss:$12 sps:$4 sm:$0xff]  }
 0x5cf   :  { %7687 = vmatprep.mubr.bf16.mxu0 %v11424_v54  ;;  %7703 = vmatpush1.bf16.msra.mxu1 %v9658_v49  ;;  %v9644_v49 = vld [vmem:[%s11799_s13 + $0x338] ss:$12 sps:$4 sm:$0xff]  }
 0x5d0   :  { %7688 = vmatmul.mubr.bf16.vlgmr.msra.gmra.mxu0 %v11429_v34  ;;  %7704 = vmatprep.subr.bf16.mxu1 %v9663_v17 }
 0x5d1   :  { %9217 = vmatpush3.bf16.msra.mxu0 %v9618_v36  ;;  %7769 = vmatprep.mubr.bf16.mxu0 %v11058_v24  ;;  %v9622_v24 = vld [vmem:[%s11799_s13 + $0x80] ss:$12 sps:$4 sm:$0xff]  }
 0x5d2   :  { %9218 = vmatprep.subr.bf16.mxu0 %v9619_v40 }
 0x5d3   :  { %7705 = vmatpush1.bf16.msra.mxu1 %v9661_v48 }
 0x5d4   :  { %7706 = vmatprep.subr.bf16.mxu1 %v9666_v41 }
 0x5d5   :  { %9219 = vmatpush3.bf16.msra.mxu0 %v9620_v57 }
 0x5d6   :  { %9220 = vmatprep.subr.bf16.mxu0 %v9621_v31  ;;  %v9646_v31 = vld [vmem:[%s11799_s13 + $0x320] ss:$12 sps:$4 sm:$0xff]  }
 0x5d7   :  { %7707 = vmatpush1.bf16.msra.mxu1 %v9664_v61 }
 0x5d8   :  { %7708 = vmatprep.subr.bf16.mxu1 %v9669_v63  ;;  %v9647_v63 = vld [vmem:[%s11799_s13 + $0x3c8] ss:$12 sps:$4 sm:$0xff]  }
 0x5d9   :  { %9221 = vmatpush3.bf16.msra.mxu0 %v9622_v24 }
 0x5da   :  { %9222 = vmatprep.subr.bf16.mxu0 %v9623_v59 }
 0x5db   :  { %7709 = vmatpush1.bf16.msra.mxu1 %v9667_v1 }
 0x5dc   :  { %7710 = vmatprep.subr.bf16.mxu1 %v9672_v2 }
 0x5dd   :  { %9223 = vmatpush3.bf16.msra.mxu0 %v9624_v3  ;;  %v9753_v3 = vld [vmem:[#allocation18] sm:$0xff] }
 0x5de   :  { %9224 = vmatprep.subr.bf16.mxu0 %v9625_v26  ;;  %v6206_v26 = vrot.slane %v9753_v3, %v10965_v15 }
 0x5df   :  { %7711 = vmatpush1.bf16.msra.mxu1 %v9670_v46 }
 0x5e0   :  { %7712 = vmatprep.subr.bf16.mxu1 %v9675_v5 }
 0x5e1   :  { %9225 = vmatpush3.bf16.msra.mxu0 %v9626_v6 }
 0x5e2   :  { %9226 = vmatprep.subr.bf16.mxu0 %v9627_v37  ;;  %v9754_v37 = vld [vmem:[#allocation19] sm:$0xff] }
 0x5e3   :  { %7713 = vmatpush2.bf16.msra.mxu1 %v9673_v0  ;;  %v6256_v0 = vrot.slane %v9754_v37, %v10965_v15 }
 0x5e4   :  { %7714 = vmatprep.subr.bf16.mxu1 %v9678_v8 }
 0x5e5   :  { %9227 = vmatpush3.bf16.msra.mxu0 %v9628_v43  ;;  %v6210_v43 = vrot.slane %v9753_v3, %v10968_v50  ;;  %v9723_v3 = vld [vmem:[%s11799_s13 + $0x578] ss:$12 sps:$4 sm:$0xff]  }
 0x5e6   :  { %9228 = vmatprep.subr.bf16.mxu0 %v9629_v4 }
 0x5e7   :  { %7715 = vmatpush2.bf16.msra.mxu1 %v9676_v9 }
 0x5e8   :  { %7716 = vmatprep.subr.bf16.mxu1 %v9681_v11 }
 0x5e9   :  { %9229 = vmatpush3.bf16.msra.mxu0 %v9630_v33 }
 0x5ea   :  { %9230 = vmatprep.subr.bf16.mxu0 %v9631_v51 }
 0x5eb   :  { %7717 = vmatpush2.bf16.msra.mxu1 %v9679_v52 }
 0x5ec   :  { %7718 = vmatprep.subr.bf16.mxu1 %v9684_v38 }
 0x5ed   :  { %9231 = vmatpush3.bf16.msra.mxu0 %v9632_v39 }
 0x5ee   :  { %9260 = vmatprep.subr.bf16.mxu0 %v9633_v53 }
 0x5ef   :  { %7719 = vmatpush2.bf16.msra.mxu1 %v9682_v19 }
 0x5f0   :  { %7770 = vmatmul.mubr.bf16.vlgmr.msra.gmra.mxu0 %v11176_v30  ;;  %7720 = vmatprep.subr.bf16.mxu1 %v9687_v23  ;;  %v9688_v30 = vld [vmem:[%s11799_s13 + $0x570] ss:$12 sps:$4 sm:$0xff]  }
 0x5f1   :  { %9261 = vmatpush3.bf16.msra.mxu0 %v9634_v29  ;;  %7849 = vmatprep.mubr.bf16.mxu0 %v11424_v54  ;;  %v9645_v54 = vld [vmem:[%s11799_s13 + $0x3e0] ss:$12 sps:$4 sm:$0xff]  }
 0x5f2   :  { %9262 = vmatprep.subr.bf16.mxu0 %v9635_v56  ;;  %v9698_v56 = vld [vmem:[%s11799_s13 + $0x230] ss:$12 sps:$4 sm:$0xff]  }
 0x5f3   :  { %7721 = vmatpush2.bf16.msra.mxu1 %v9685_v27 }
 0x5f4   :  { %7722 = vmatprep.subr.bf16.mxu1 %v9690_v45  ;;  %v9700_v45 = vld [vmem:[%s11799_s13 + $0x218] ss:$12 sps:$4 sm:$0xff]  }
 0x5f5   :  { %9263 = vmatpush3.bf16.msra.mxu0 %v9636_v32  ;;  %v9701_v32 = vld [vmem:[%s11799_s13 + $0x2c0] ss:$12 sps:$4 sm:$0xff]  }
 0x5f6   :  { %9264 = vmatprep.subr.bf16.mxu0 %v9637_v20  ;;  %v9702_v20 = vld [vmem:[%s11799_s13 + $0x200] ss:$12 sps:$4 sm:$0xff]  }
 0x5f7   :  { %7723 = vmatpush2.bf16.msra.mxu1 %v9688_v30  ;;  %v9703_v30 = vld [vmem:[%s11799_s13 + $0x2a8] ss:$12 sps:$4 sm:$0xff]  }
 0x5f8   :  { %7724 = vmatprep.subr.bf16.mxu1 %v9693_v44  ;;  %v9730_v44 = vld [vmem:[%s11802_s16 + $0x38] sm:$0xff]  }
 0x5f9   :  { %9265 = vmatpush3.bf16.msra.mxu0 %v9638_v55  ;;  %v9731_v55 = vld [vmem:[%s11802_s16 + $0x70] sm:$0xff]  }
 0x5fa   :  { %9266 = vmatprep.subr.bf16.mxu0 %v9639_v25  ;;  %v9704_v25 = vld [vmem:[%s11799_s13 + $0x1e8] ss:$12 sps:$4 sm:$0xff]  }
 0x5fb   :  { %7725 = vmatpush2.bf16.msra.mxu1 %v9691_v22  ;;  %v9732_v22 = vld [vmem:[%s11802_s16 + $0x30] sm:$0xff]  }
 0x5fc   :  { %7726 = vmatprep.subr.bf16.mxu1 %v9696_v28  ;;  %v9705_v28 = vld [vmem:[%s11799_s13 + $0x290] ss:$12 sps:$4 sm:$0xff]  }
 0x5fd   :  { %9267 = vmatpush3.bf16.msra.mxu0 %v9640_v42  ;;  %v9733_v42 = vld [vmem:[%s11802_s16 + $0x68] sm:$0xff]  }
 0x5fe   :  { %9268 = vmatprep.subr.bf16.mxu0 %v9641_v35  ;;  %v9706_v35 = vld [vmem:[%s11799_s13 + $0x1d0] ss:$12 sps:$4 sm:$0xff]  }
 0x5ff   :  { %7727 = vmatpush2.bf16.msra.mxu1 %v9694_v16  ;;  %v9734_v16 = vld [vmem:[%s11802_s16 + $0x28] sm:$0xff]  }
 0x600   :  { %9238 = vmatprep.subr.bf16.mxu1 %v9697_v47  ;;  %v9707_v47 = vld [vmem:[%s11799_s13 + $0x278] ss:$12 sps:$4 sm:$0xff]  }
 0x601   :  { %9269 = vmatpush3.bf16.msra.mxu0 %v9642_v58  ;;  %v9735_v58 = vld [vmem:[%s11802_s16 + $0x60] sm:$0xff]  }
 0x602   :  { %v6088_v17 = vpop.f32.mrf.mxu1  ;;  %9270 = vmatprep.subr.bf16.mxu0 %v9643_v18  ;;  %v9708_v18 = vld [vmem:[%s11799_s13 + $0x1b8] ss:$12 sps:$4 sm:$0xff]  }
 0x603   :  { %v6089_v36 = vadd.f32 %v6088_v17, %v11398_v21  ;;  %v6129_v40 = vpop.f32.mrf.mxu0  ;;  %v9648_v21 = vld [vmem:[%s11799_s13 + $0x308] ss:$12 sps:$4 sm:$0xff]   ;;  %v9709_v17 = vld [vmem:[%s11799_s13 + $0x260] ss:$12 sps:$4 sm:$0xff]  }
 0x604   :  { %v6090_v48 = vpop.f32.mrf.mxu1 }
 0x605   :  { %v6130_v41 = vadd.f32 %v6129_v40, %v6089_v36  ;;  %v6131_v57 = vpop.f32.mrf.mxu0  ;;  %9271 = vmatpush3.bf16.msra.mxu0 %v9644_v49  ;;  %v6091_v2 = vadd.f32 %v6090_v48, %v11410_v10  ;;  %v9736_v49 = vld [vmem:[%s11802_s16 + $0x20] sm:$0xff]   ;;  %v9738_v40 = vld [vmem:[%s11802_s16 + $0x18] sm:$0xff]   ;;  %v9711_v48 = vld [vmem:[%s11799_s13 + $0x248] ss:$12 sps:$4 sm:$0xff]  }
 0x606   :  { %v6092_v61 = vpop.f32.mrf.mxu1  ;;  %9272 = vmatprep.subr.bf16.mxu0 %v9645_v54  ;;  %v9737_v54 = vld [vmem:[%s11802_s16 + $0x58] sm:$0xff]   ;;  %v9710_v36 = vld [vmem:[%s11799_s13 + $0x1a0] ss:$12 sps:$4 sm:$0xff]  }
 0x607   :  { %v6133_v24 = vpop.f32.mrf.mxu0  ;;  %v6132_v5 = vadd.f32 %v6131_v57, %v6091_v2  ;;  %v9713_v57 = vld [vmem:[%s11799_s13 + $0x5f0] ss:$12 sps:$4 sm:$0xff]   ;;  %v9715_v61 = vld [vmem:[%s11799_s13 + $0x5d8] ss:$12 sps:$4 sm:$0xff]  }
 0x608   :  { %v6093_v59 = vpop.f32.mrf.mxu1  ;;  %v9717_v24 = vld [vmem:[%s11799_s13 + $0x5c0] ss:$12 sps:$4 sm:$0xff]   ;;  %v9722_v2 = vld [vmem:[%s11799_s13 + $0x4d0] ss:$12 sps:$4 sm:$0xff]  }
 0x609   :  { %v6134_v1 = vpop.f32.mrf.mxu0  ;;  %9273 = vmatpush3.bf16.msra.mxu0 %v9646_v31  ;;  %v9714_v31 = vld [vmem:[%s11799_s13 + $0x530] ss:$12 sps:$4 sm:$0xff]   ;;  %v9718_v59 = vld [vmem:[%s11799_s13 + $0x500] ss:$12 sps:$4 sm:$0xff]  }
 0x60a   :  { %9274 = vmatprep.subr.bf16.mxu0 %v9647_v63  ;;  %v9716_v63 = vld [vmem:[%s11799_s13 + $0x518] ss:$12 sps:$4 sm:$0xff]   ;;  %v9720_v1 = vld [vmem:[%s11799_s13 + $0x4e8] ss:$12 sps:$4 sm:$0xff]  }
 0x60d   :  { %9275 = vmatpush3.bf16.msra.mxu0 %v9648_v21  ;;  %v9721_v21 = vld [vmem:[%s11799_s13 + $0x590] ss:$12 sps:$4 sm:$0xff]  }
 0x610   :  { %7850 = vmatmul.mubr.bf16.vlgmr.msra.gmra.mxu0 %v11429_v34  ;;  %v6260_v34 = vrot.slane %v9754_v37, %v10968_v50  ;;  %v9699_v50 = vld [vmem:[%s11799_s13 + $0x2d8] ss:$12 sps:$4 sm:$0xff]  }
 0x642   :  { %v6170_v46 = vpop.f32.mrf.mxu1 }
 0x643   :  { %v6171_v6 = vadd.f32 %v6170_v46, %v6130_v41  ;;  %v11603_v8 = vpop.f32.mrf.mxu0  ;;  %v9712_v41 = vld [vmem:[%s11799_s13 + $0x188] ss:$12 sps:$4 sm:$0xff]  }
 0x644   :  { %v6172_v4 = vpop.f32.mrf.mxu1 }
 0x645   :  { %v6225_v9 = vmul.f32 %v6206_v26, %v6171_v6  ;;  %v6173_v11 = vadd.f32 %v6172_v4, %v6132_v5  ;;  %v11607_v33 = vpop.f32.mrf.mxu0  ;;  %v9724_v26 = vld [vmem:[%s11799_s13 + $0x4b8] ss:$12 sps:$4 sm:$0xff]   ;;  %v9725_v5 = vld [vmem:[%s11799_s13 + $0x560] ss:$12 sps:$4 sm:$0xff]  }
 0x646   :  { %v6174_v10 = vpop.f32.mrf.mxu1 }
 0x647   :  { %v6275_v51 = vadd.f32 %v6256_v0, %v6225_v9  ;;  %v6226_v52 = vmul.f32 %v6210_v43, %v6173_v11  ;;  %v7611_v38 = vpop.f32.mrf.mxu0  ;;  %v9726_v43 = vld [vmem:[%s11799_s13 + $0x4a0] ss:$12 sps:$4 sm:$0xff]   ;;  %v9727_v9 = vld [vmem:[%s11799_s13 + $0x548] ss:$12 sps:$4 sm:$0xff]  }
 0x648   :  { %v6175_v39 = vpop.f32.mrf.mxu1  ;;  %v9740_v38 = vld [vmem:[%s11802_s16 + $0x10] sm:$0xff]  }
 0x649   :  { %v6276_v53 = vadd.f32 %v6260_v34, %v6226_v52  ;;  %v7612_v19 = vpop.f32.mrf.mxu0  ;;  %v6283_v23 = vmax.f32 %v6275_v51, 0.0  ;;  %v9739_v51 = vld [vmem:[%s11802_s16 + $0x50] sm:$0xff]  }
 0x64a   :  { %v9741_v19 = vld [vmem:[%s11802_s16 + $0x48] sm:$0xff]  }
 0x64b   :  { %v6284_v15 = vmax.f32 %v6276_v53, 0.0  ;;  %v11612_v27 = vpack.c.bf16 %v6283_v23, %v6283_v23  ;;  %v9742_v23 = vld [vmem:[%s11802_s16 + $0x8] sm:$0xff]  }
 0x64d   :  { %v6292_v29 = vpack.c.bf16 %v6284_v15, %v6284_v15  ;;  %v9743_v15 = vld [vmem:[%s11802_s16 + $0x40] sm:$0xff]  }
 0x64f   :  { %7728 = vmatprep.mubr.bf16.mxu1 %v6292_v29 }
 0x650   :  { %7729 = vmatmul.mubr.bf16.vlgmr.msra.gmra.mxu1 %v11612_v27 }
 0x651   :  { %9239 = vmatpush3.bf16.msra.mxu1 %v9698_v56  ;;  %7809 = vmatprep.mubr.bf16.mxu1 %v11182_v12  ;;  %v9729_v12 = vld [vmem:[%s11802_s16 + $0x78] sm:$0xff]  }
 0x652   :  { %9240 = vmatprep.subr.bf16.mxu1 %v9699_v50  ;;  %9304 = vmatprep.subr.bf16.mxu0 %v9729_v12 }
 0x653   :  { %9305 = vmatpush3.bf16.msra.mxu0 %v9730_v44 }
 0x654   :  { %9306 = vmatprep.subr.bf16.mxu0 %v9731_v55  ;;  %v9746_v55 = vld [vmem:[%s11802_s16 + $0x90] sm:$0xff]  }
 0x655   :  { %9241 = vmatpush3.bf16.msra.mxu1 %v9700_v45 }
 0x656   :  { %9242 = vmatprep.subr.bf16.mxu1 %v9701_v32 }
 0x657   :  { %9307 = vmatpush3.bf16.msra.mxu0 %v9732_v22 }
 0x658   :  { %9308 = vmatprep.subr.bf16.mxu0 %v9733_v42  ;;  %v9748_v42 = vld [vmem:[%s11802_s16 + $0x80] sm:$0xff]  }
 0x659   :  { %9243 = vmatpush3.bf16.msra.mxu1 %v9702_v20  ;;  %v9745_v20 = vld [vmem:[%s11802_s16 + $0x98] sm:$0xff]  }
 0x65a   :  { %9244 = vmatprep.subr.bf16.mxu1 %v9703_v30 }
 0x65b   :  { %9309 = vmatpush3.bf16.msra.mxu0 %v9734_v16  ;;  %v7917_v16 = vld [vmem:[#allocation22] sm:$0x7] }
 0x65c   :  { %9310 = vmatprep.subr.bf16.mxu0 %v9735_v58 }
 0x65d   :  { %9245 = vmatpush3.bf16.msra.mxu1 %v9704_v25 }
 0x65e   :  { %9246 = vmatprep.subr.bf16.mxu1 %v9705_v28  ;;  %v9747_v28 = vld [vmem:[%s11802_s16 + $0x88] sm:$0xff]  }
 0x65f   :  { %9311 = vmatpush3.bf16.msra.mxu0 %v9736_v49  ;;  %v7922_v49 = vrot.slane %v7917_v16, %v10290_v60 }
 0x660   :  { %9312 = vmatprep.subr.bf16.mxu0 %v9737_v54 }
 0x661   :  { %9247 = vmatpush3.bf16.msra.mxu1 %v9706_v35  ;;  %v7897_v35 = vld [vmem:[#allocation21] sm:$0x7] }
 0x662   :  { %9248 = vmatprep.subr.bf16.mxu1 %v9707_v47  ;;  %v7902_v47 = vrot.slane %v7897_v35, %v10290_v60 }
 0x663   :  { %9313 = vmatpush3.bf16.msra.mxu0 %v9738_v40 }
 0x664   :  { %9314 = vmatprep.subr.bf16.mxu0 %v9739_v51 }
 0x665   :  { %9249 = vmatpush3.bf16.msra.mxu1 %v9708_v18 }
 0x666   :  { %9250 = vmatprep.subr.bf16.mxu1 %v9709_v17  ;;  %v7906_v17 = vrot.slane %v7897_v35, %v10293_v62 }
 0x667   :  { %9315 = vmatpush3.bf16.msra.mxu0 %v9740_v38 }
 0x668   :  { %9316 = vmatprep.subr.bf16.mxu0 %v9741_v19  ;;  %v9183_v19 = vld [vmem:[#allocation24] ss:$0 sm:$0xff] }
 0x669   :  { %9251 = vmatpush3.bf16.msra.mxu1 %v9710_v36 }
 0x66a   :  { %9252 = vmatprep.subr.bf16.mxu1 %v9711_v48 }
 0x66b   :  { %9317 = vmatpush3.bf16.msra.mxu0 %v9742_v23 }
 0x66c   :  { %9318 = vmatprep.subr.bf16.mxu0 %v9743_v15  ;;  %v9184_v15 = vld [vmem:[#allocation25] ss:$0 sm:$0xff] }
 0x66d   :  { %9253 = vmatpush3.bf16.msra.mxu1 %v9712_v41 }
 0x66e   :  { %9282 = vmatprep.subr.bf16.mxu1 %v9713_v57 }
 0x670   :  { %7810 = vmatmul.mubr.bf16.vlgmr.msra.gmra.mxu1 %v11386_v13  ;;  %v9719_v13 = vld [vmem:[%s11799_s13 + $0x5a8] ss:$12 sps:$4 sm:$0xff]  }
 0x671   :  { %9283 = vmatpush3.bf16.msra.mxu1 %v9714_v31  ;;  %7889 = vmatprep.mubr.bf16.mxu1 %v6292_v29  ;;  %v9744_v29 = vld [vmem:[%s11802_s16] sm:$0xff]  }
 0x672   :  { %9284 = vmatprep.subr.bf16.mxu1 %v9715_v61  ;;  %9319 = vmatpush3.bf16.msra.mxu0 %v9744_v29 }
 0x675   :  { %9285 = vmatpush3.bf16.msra.mxu1 %v9716_v63 }
 0x676   :  { %9286 = vmatprep.subr.bf16.mxu1 %v9717_v24 }
 0x679   :  { %9287 = vmatpush3.bf16.msra.mxu1 %v9718_v59 }
 0x67a   :  { %9288 = vmatprep.subr.bf16.mxu1 %v9719_v13 }
 0x67d   :  { %9289 = vmatpush3.bf16.msra.mxu1 %v9720_v1 }
 0x67e   :  { %9290 = vmatprep.subr.bf16.mxu1 %v9721_v21 }
 0x681   :  { %9291 = vmatpush3.bf16.msra.mxu1 %v9722_v2 }
 0x682   :  { %v7648_v46 = vpop.f32.mrf.mxu1  ;;  %9292 = vmatprep.subr.bf16.mxu1 %v9723_v3 }
 0x683   :  { %v7649_v6 = vadd.f32 %v7648_v46, %v11603_v8  ;;  %v9728_v8 = vld [vmem:[%s11799_s13 + $0x488] ss:$12 sps:$4 sm:$0xff]  }
 0x684   :  { %v7650_v37 = vpop.f32.mrf.mxu1 }
 0x685   :  { %v7651_v0 = vadd.f32 %v7650_v37, %v11607_v33  ;;  %9293 = vmatpush3.bf16.msra.mxu1 %v9724_v26  ;;  %v7910_v37 = vrot.slane %v7897_v35, %v10300_v7 }
 0x686   :  { %v7652_v4 = vpop.f32.mrf.mxu1  ;;  %9294 = vmatprep.subr.bf16.mxu1 %v9725_v5 }
 0x687   :  { %v7930_v4 = vrot.slane %v7917_v16, %v10300_v7 }
 0x688   :  { %v7653_v11 = vpop.f32.mrf.mxu1 }
 0x689   :  { %9295 = vmatpush3.bf16.msra.mxu1 %v9726_v43 }
 0x68a   :  { %9296 = vmatprep.subr.bf16.mxu1 %v9727_v9 }
 0x68d   :  { %9297 = vmatpush3.bf16.msra.mxu1 %v9728_v8 }
 0x68e   :  { %9351 = vmatprep.subr.bf16.mxu1 %v10114_v14 }
 0x690   :  { %7890 = vmatmul.mubr.bf16.vlgmr.msra.gmra.mxu1 %v11612_v27  ;;  %v7689_v34 = vpop.f32.mrf.mxu0 }
 0x691   :  { %v7690_v33 = vadd.f32 %v7689_v34, %v7649_v6  ;;  %9359 = vmatprep.mubr.msk.bf16.mxu1 %vm10115_vm2, %v10114_v14  ;;  %9352 = vmatpush3.bf16.msra.mxu1 %v9745_v20 }
 0x692   :  { %v7691_v10 = vpop.f32.mrf.mxu0  ;;  %9353 = vmatprep.subr.bf16.mxu1 %v10114_v14 }
 0x693   :  { %v7692_v52 = vadd.f32 %v7691_v10, %v7651_v0 }
 0x694   :  { %v7693_v39 = vpop.f32.mrf.mxu0 }
 0x695   :  { %9354 = vmatpush3.bf16.msra.mxu1 %v9746_v55 }
 0x696   :  { %v7694_v53 = vpop.f32.mrf.mxu0  ;;  %9355 = vmatprep.subr.bf16.mxu1 %v10114_v14 }
 0x699   :  { %9356 = vmatpush3.bf16.msra.mxu1 %v9747_v28 }
 0x69a   :  { %9357 = vmatprep.subr.bf16.mxu1 %v10114_v14  ;;  %v7926_v14 = vrot.slane %v7917_v16, %v10293_v62 }
 0x69d   :  { %9358 = vmatpush3.bf16.msra.mxu1 %v9748_v42 }
 0x6b0   :  { %v9232_v56 = vpop.f32.mrf.mxu0 }
 0x6b2   :  { %v9233_v27 = vpop.f32.mrf.mxu0 }
 0x6b3   :  { %v9234_v50 = vadd.f32 %v9233_v27, %v9232_v56 }
 0x6b4   :  { %v9235_v45 = vpop.f32.mrf.mxu0 }
 0x6b6   :  { %v9236_v32 = vpop.f32.mrf.mxu0 }
 0x6d0   :  { %v9276_v30 = vpop.f32.mrf.mxu0 }
 0x6d2   :  { %v9277_v12 = vpop.f32.mrf.mxu0 }
 0x6d3   :  { %v9278_v44 = vadd.f32 %v9277_v12, %v9276_v30 }
 0x6d4   :  { %v9279_v25 = vpop.f32.mrf.mxu0 }
 0x6d6   :  { %v9280_v22 = vpop.f32.mrf.mxu0 }
 0x710   :  { %v7730_v58 = vpop.f32.mrf.mxu1 }
 0x711   :  { %v7731_v18 = vadd.f32 %v7730_v58, %v7690_v33 }
 0x712   :  { %v7732_v54 = vpop.f32.mrf.mxu1 }
 0x713   :  { %v7914_v36 = vmul.f32 %v7902_v47, %v7731_v18  ;;  %v7733_v40 = vadd.f32 %v7732_v54, %v7692_v52 }
 0x714   :  { %v7734_v48 = vpop.f32.mrf.mxu1 }
 0x715   :  { %v7934_v41 = vadd.f32 %v7922_v49, %v7914_v36  ;;  %v7915_v57 = vmul.f32 %v7906_v17, %v7733_v40 }
 0x716   :  { %v7735_v31 = vpop.f32.mrf.mxu1 }
 0x717   :  { %v7935_v61 = vadd.f32 %v7926_v14, %v7915_v57  ;;  %v7937_v63 = vmax.f32 %v7934_v41, 0.0 }
 0x719   :  { %v7938_v24 = vmax.f32 %v7935_v61, 0.0  ;;  %v7940_v13 = vpack.c.bf16 %v7937_v63, %v7937_v63 }
 0x71b   :  { %v7941_v59 = vpack.c.bf16 %v7938_v24, %v7938_v24 }
 0x71d   :  { %8138 = vmatprep.mubr.bf16.mxu0 %v7941_v59 }
 0x71e   :  { %8139 = vmatmul.mubr.bf16.vlgmr.msra.gmra.mxu0 %v7940_v13 }
 0x730   :  { %v9254_v1 = vpop.f32.mrf.mxu1 }
 0x732   :  { %v9255_v60 = vpop.f32.mrf.mxu1 }
 0x733   :  { %v9256_v21 = vadd.f32 %v9255_v60, %v9254_v1 }
 0x734   :  { %v9257_v2 = vpop.f32.mrf.mxu1 }
 0x735   :  { %v7812_v3 = vadd.f32 %v9256_v21, %v9234_v50 }
 0x736   :  { %v9258_v26 = vpop.f32.mrf.mxu1 }
 0x737   :  { %v7852_v46 = vadd.f32 %v9278_v44, %v7812_v3 }
 0x750   :  { %v9298_v5 = vpop.f32.mrf.mxu1 }
 0x752   :  { %v9299_v62 = vpop.f32.mrf.mxu1 }
 0x753   :  { %v9300_v6 = vadd.f32 %v9299_v62, %v9298_v5 }
 0x754   :  { %v9301_v0 = vpop.f32.mrf.mxu1 }
 0x755   :  { %v7892_v43 = vadd.f32 %v9300_v6, %v7852_v46 }
 0x756   :  { %v9302_v9 = vpop.f32.mrf.mxu1 }
 0x757   :  { %v7916_v11 = vmul.f32 %v7910_v37, %v7892_v43 }
 0x759   :  { %v7936_v8 = vadd.f32 %v7930_v4, %v7916_v11 }
 0x75b   :  { %v7939_v34 = vmax.f32 %v7936_v8, 0.0 }
 0x75d   :  { %v7942_v33 = vpack.c.bf16 %v7939_v34, %v7939_v34 }
 0x75f   :  { %9360 = vmatmul.mubr.msk.bf16.vlgmr.msra.gmra.mxu1 %vm827_vm3, %v7942_v33 }
 0x7de   :  { %v9320_v10 = vpop.f32.mrf.mxu0 }
 0x7e0   :  { %v9321_v51 = vpop.f32.mrf.mxu0 }
 0x7e1   :  { %v9322_v39 = vadd.f32 %v9321_v51, %v9320_v10 }
 0x7e2   :  { %v9323_v52 = vpop.f32.mrf.mxu0 }
 0x7e4   :  { %v9324_v38 = vpop.f32.mrf.mxu0 }
 0x81f   :  { %v8180_v53 = vpop.f32.mrf.mxu1 }
 0x820   :  { %v8181_v23 = vadd.f32 %v9322_v39, %v8180_v53 }
 0x821   :  { %v9361_v29 = vpop.f32.mrf.mxu1 }
 0x822   :  { %v8193_v56 = vmul.f32 %v9183_v19, %v8181_v23 }
 0x823   :  { %v8183_v27 = vpop.f32.mrf.mxu1 }
 0x824   :  { %v8201_v7 = vadd.f32 %v9184_v15, %v8193_v56 }
 0x825   :  { %v9362_v50 = vpop.f32.mrf.mxu1 }
 0x826   :  { %v9185_v45 = vmul.f32 -1.442695, %v8201_v7 }
 0x828   :  { %9749 = vpow2.f32 %v9185_v45 }
 0x835   :  { %v9750_v32 = vpop.eup %9749 }
 0x836   :  { %v8205_v20 = vadd.f32 1.0, %v9750_v32 }
 0x838   :  { %9751 = vrcp.f32 %v8205_v20 }
 0x845   :  { %v9752_v30 = vpop.eup %9751 }
 0x846   :  { %8209 = vst.msk [vmem:[%s11805_s19] sm:$0xff] %vm8208_vm4, %v9752_v30 }
 0x847   :  { %8214 = vsyncpa [#allocation3], 1 }
 0x848   :  { %8215 = vsyncpa [#allocation5], 1 }
 0x849   :  { %8216 = vsyncpa [#allocation8], 1 }
 0x84a   :  { %8217 = vsyncpa [#allocation11], 1 }
 0x84b   :  { %8218 = vsyncpa [#allocation14], 1 }
 0x84c   :  { %8219 = vsyncpa [#allocation17], 1 }
 0x84d   :  { %8220 = vsyncpa [#allocation20], 1 }
 0x84e   :  { %8221 = vsyncpa [#allocation23], 1 }
 0x84f   :  { %8222 = vsyncpa [#allocation26], 1 }

</bundles_post_ra>
